<compile_context>
chip_gen: v7x
topology: tpu7x:2x2x1
jax: 0.10.0
libtpu: 0.0.40
codegen_flags: <defaults>
</compile_context>

<pallas_src>
import jax
import jax.numpy as jnp
from jax.experimental import pallas as pl
from jax.experimental.pallas import tpu as pltpu

IN_SIZE = 3 * 64 * 64    # 12288
HIDDEN = 100
OUT = 6

HIDDEN_PAD = 128         # lane-aligned hidden width (do NOT raise to 256; mem-bound)
OUT_PAD = 128            # lane-dense output block width


def _round_up(x, m):
    return (x + m - 1) // m * m


def _max_tile_b():
    """Largest batch tile that comfortably fits this chip's VMEM with f32 x tiles."""
    try:
        vmem_cap = pltpu.get_tpu_info().vmem_capacity_bytes
    except Exception:
        vmem_cap = 64 << 20  # assume the smallest (v7x-like) if the query fails
    # 128 MiB chips (v5e/v6e): 512-row f32 tiles (~68 MiB total); 64 MiB (v7x): 256 (~37 MiB).
    return 512 if vmem_cap >= (100 << 20) else 256


def _pick_tile_b(batch, max_tile):
    """Sublane-aligned batch tile; >= 2 grid steps for medium batches (v7x 2 TCs)."""
    n_tiles = max(pl.cdiv(batch, max_tile), 2 if batch > 8 else 1)
    return min(_round_up(pl.cdiv(batch, n_tiles), 8), max_tile)


def mlp_kernel(x_ref, w1_ref, b1_ref, w2_ref, b2_ref, o_ref):
    # x_ref:  (tile_b, 12288) f32      w1_ref: (12288, 128) bf16
    # b1_ref: (1, 128) f32             w2_ref: (128, 128)   bf16
    # b2_ref: (1, 128) f32             o_ref:  (tile_b, 128) f32
    x_bf16 = x_ref[...].astype(jnp.bfloat16)                    # in-kernel cast (VPU, hidden by DMA)
    h = jnp.dot(x_bf16, w1_ref[...], preferred_element_type=jnp.float32)
    h = jnp.maximum(h + b1_ref[...], 0.0)                       # bias + ReLU on the VPU
    y = jnp.dot(h.astype(jnp.bfloat16), w2_ref[...],
                preferred_element_type=jnp.float32)
    o_ref[...] = (y + b2_ref[...]).astype(o_ref.dtype)          # lane-dense 128-wide store


def prepare_params(w1, b1, w2, b2):
    """Pad HIDDEN 100->128 and OUT 6->128 with zeros; ship matmul weights as bf16.

    Zero hidden columns stay exactly zero through bias+ReLU, and zero W2 rows/columns
    contribute nothing, so logits[:, :6] equal the unpadded result.
    """
    w1p = jnp.zeros((IN_SIZE, HIDDEN_PAD), jnp.float32).at[:, :HIDDEN].set(w1)
    b1p = jnp.zeros((1, HIDDEN_PAD), jnp.float32).at[:, :HIDDEN].set(b1)
    w2p = jnp.zeros((HIDDEN_PAD, OUT_PAD), jnp.float32).at[:HIDDEN, :OUT].set(w2)
    b2p = jnp.zeros((1, OUT_PAD), jnp.float32).at[:, :OUT].set(b2)
    return (w1p.astype(jnp.bfloat16), b1p, w2p.astype(jnp.bfloat16), b2p)


def mlp_classifier_forward(x_nchw, params):
    """x_nchw: (B, 3, 64, 64) float32, params from prepare_params. Returns (B, 6) f32 logits."""
    w1p, b1p, w2p, b2p = params
    B = x_nchw.shape[0]

    # Flatten exactly like torch's x.view(B, -1); stays f32 -> no HBM convert pass.
    x_flat = x_nchw.reshape(B, -1)
    assert x_flat.shape[1] == IN_SIZE

    tile_b = _pick_tile_b(B, _max_tile_b())
    grid = (pl.cdiv(B, tile_b),)          # ragged last tile: OOB rows masked, sliced off below

    # Actual VMEM footprint (f32 x double-buffered, bf16 in-kernel copy, single-buffered
    # weights, f32 output double-buffered) plus headroom for biases/h/compiler scratch.
    vmem_bytes = (2 * tile_b * IN_SIZE * 4          # x tile, f32, double-buffered
                  + tile_b * IN_SIZE * 2            # in-kernel bf16 cast of the x tile
                  + IN_SIZE * HIDDEN_PAD * 2        # w1 bf16, single-buffered
                  + HIDDEN_PAD * OUT_PAD * 2        # w2 bf16, single-buffered
                  + 2 * tile_b * OUT_PAD * 4        # out tile, f32, double-buffered
                  + (2 << 20))                      # biases / h / scratch headroom
    vmem_bytes = int(_round_up(vmem_bytes, 1 << 20))

    resident = dict(pipeline_mode=pl.Buffered(1))   # constant index_map -> never re-fetched

    out_padded = pl.pallas_call(
        mlp_kernel,
        out_shape=jax.ShapeDtypeStruct((B, OUT_PAD), jnp.float32),
        grid=grid,
        in_specs=[
            pl.BlockSpec((tile_b, IN_SIZE), lambda i: (i, 0)),                  # x: tiled over batch
            pl.BlockSpec((IN_SIZE, HIDDEN_PAD), lambda i: (0, 0), **resident),  # w1: VMEM-resident
            pl.BlockSpec((1, HIDDEN_PAD), lambda i: (0, 0), **resident),        # b1
            pl.BlockSpec((HIDDEN_PAD, OUT_PAD), lambda i: (0, 0), **resident),  # w2
            pl.BlockSpec((1, OUT_PAD), lambda i: (0, 0), **resident),           # b2
        ],
        out_specs=pl.BlockSpec((tile_b, OUT_PAD), lambda i: (i, 0)),
        compiler_params=pltpu.CompilerParams(
            dimension_semantics=("parallel",),      # independent batch tiles (v7x 2-TC split)
            vmem_limit_bytes=vmem_bytes,
        ),
    )(x_flat, w1p, b1p, w2p, b2p)

    return out_padded[:, :OUT]


def init_params(key):
    """Deterministic init mimicking torch.nn.Linear defaults:
    U(-1/sqrt(fan_in), 1/sqrt(fan_in)) for weight and bias.
    Weights stored as (in, out) == torch_W.T so the kernel does x @ W + b."""
    k1, k2, k3, k4 = jax.random.split(key, 4)
    bound1 = 1.0 / jnp.sqrt(jnp.float32(IN_SIZE))
    bound2 = 1.0 / jnp.sqrt(jnp.float32(HIDDEN))
    w1 = jax.random.uniform(k1, (IN_SIZE, HIDDEN), jnp.float32, -bound1, bound1)
    b1 = jax.random.uniform(k2, (1, HIDDEN), jnp.float32, -bound1, bound1)
    w2 = jax.random.uniform(k3, (HIDDEN, OUT), jnp.float32, -bound2, bound2)
    b2 = jax.random.uniform(k4, (1, OUT), jnp.float32, -bound2, bound2)
    return w1, b1, w2, b2


if __name__ == "__main__":
    key = jax.random.PRNGKey(0)
    k_x, k_p = jax.random.split(key)

    # Module's forward implies NCHW input of shape (B, 3, 64, 64); keep batch small.
    B = 2
    x = jax.random.normal(k_x, (B, 3, 64, 64), jnp.float32)
    w1, b1, w2, b2 = init_params(k_p)
    params = prepare_params(w1, b1, w2, b2)

    logits = jax.block_until_ready(mlp_classifier_forward(x, params))
    assert logits.shape == (B, OUT)

    x_flat = x.reshape(B, -1)

    # Matched-precision reference (same bf16 rounding, f32 accumulation) — tight check.
    h_ref = jnp.dot(x_flat.astype(jnp.bfloat16), w1.astype(jnp.bfloat16),
                    preferred_element_type=jnp.float32) + b1
    h_ref = jnp.maximum(h_ref, 0.0)
    ref_bf16 = jnp.dot(h_ref.astype(jnp.bfloat16), w2.astype(jnp.bfloat16),
                       preferred_element_type=jnp.float32) + b2
    assert jnp.allclose(logits, ref_bf16, atol=1e-3, rtol=1e-3), "mismatch vs bf16-matched reference"

    # Full-f32 reference — loose check (intentional bf16 weight/activation rounding).
    ref_f32 = jnp.maximum(x_flat @ w1 + b1, 0.0) @ w2 + b2
    assert jnp.allclose(logits, ref_f32, atol=5e-2, rtol=5e-2), "mismatch vs f32 reference"

    print("KERNEL_OK")
</pallas_src>

<mosaic_0001>
module attributes {stable_mosaic.version = 11 : i64} {
  func.func @mlp_kernel(%arg0: i32, %arg1: memref<8x12288xf32, #tpu.memory_space<vmem>>, %arg2: memref<12288x128xbf16, #tpu.memory_space<vmem>>, %arg3: memref<1x128xf32, #tpu.memory_space<vmem>>, %arg4: memref<128x128xbf16, #tpu.memory_space<vmem>>, %arg5: memref<1x128xf32, #tpu.memory_space<vmem>>, %arg6: memref<8x128xf32, #tpu.memory_space<vmem>>) attributes {dimension_semantics = [#tpu.dimension_semantics<parallel>], iteration_bounds = array<i64: 1>, scalar_prefetch = 0 : i64, scratch_operands = 0 : i64, tpu.core_type = #tpu.core_type<tc>, window_params = [{transform_indices = @transform_0, window_bounds = array<i64: 8, 12288>}, {pipeline_mode = #tpu.pipeline_mode<synchronous>, transform_indices = @transform_1, window_bounds = array<i64: 12288, 128>}, {pipeline_mode = #tpu.pipeline_mode<synchronous>, transform_indices = @transform_2, window_bounds = array<i64: 1, 128>}, {pipeline_mode = #tpu.pipeline_mode<synchronous>, transform_indices = @transform_3, window_bounds = array<i64: 128, 128>}, {pipeline_mode = #tpu.pipeline_mode<synchronous>, transform_indices = @transform_4, window_bounds = array<i64: 1, 128>}, {transform_indices = @transform_5, window_bounds = array<i64: 8, 128>}]} {
    %c0 = arith.constant 0 : index
    %c0_0 = arith.constant 0 : index
    %0 = vector.load %arg1[%c0, %c0_0] : memref<8x12288xf32, #tpu.memory_space<vmem>>, vector<8x12288xf32>
    %1 = arith.truncf %0 : vector<8x12288xf32> to vector<8x12288xbf16>
    %c0_1 = arith.constant 0 : index
    %c0_2 = arith.constant 0 : index
    %2 = vector.load %arg2[%c0_1, %c0_2] : memref<12288x128xbf16, #tpu.memory_space<vmem>>, vector<12288x128xbf16>
    %cst = arith.constant dense<0.000000e+00> : vector<8x128xf32>
    %3 = tpu.matmul %1, %2, %cst {dimension_numbers = #tpu.dot_dimension_numbers<[1], [0], [0], [1], [0, 0, 1, 1], [], []>} : vector<8x12288xbf16>, vector<12288x128xbf16>, vector<8x128xf32> -> vector<8x128xf32>
    %c0_3 = arith.constant 0 : index
    %c0_4 = arith.constant 0 : index
    %4 = vector.load %arg3[%c0_3, %c0_4] : memref<1x128xf32, #tpu.memory_space<vmem>>, vector<1x128xf32>
    %5 = vector.broadcast %4 : vector<1x128xf32> to vector<8x128xf32>
    %6 = arith.addf %3, %5 : vector<8x128xf32>
    %cst_5 = arith.constant 0.000000e+00 : f32
    %7 = vector.broadcast %cst_5 : f32 to vector<8x128xf32>
    %8 = arith.maximumf %6, %7 : vector<8x128xf32>
    %9 = arith.truncf %8 : vector<8x128xf32> to vector<8x128xbf16>
    %c0_6 = arith.constant 0 : index
    %c0_7 = arith.constant 0 : index
    %10 = vector.load %arg4[%c0_6, %c0_7] : memref<128x128xbf16, #tpu.memory_space<vmem>>, vector<128x128xbf16>
    %cst_8 = arith.constant dense<0.000000e+00> : vector<8x128xf32>
    %11 = tpu.matmul %9, %10, %cst_8 {dimension_numbers = #tpu.dot_dimension_numbers<[1], [0], [0], [1], [0, 0, 1, 1], [], []>} : vector<8x128xbf16>, vector<128x128xbf16>, vector<8x128xf32> -> vector<8x128xf32>
    %c0_9 = arith.constant 0 : index
    %c0_10 = arith.constant 0 : index
    %12 = vector.load %arg5[%c0_9, %c0_10] : memref<1x128xf32, #tpu.memory_space<vmem>>, vector<1x128xf32>
    %13 = vector.broadcast %12 : vector<1x128xf32> to vector<8x128xf32>
    %14 = arith.addf %11, %13 : vector<8x128xf32>
    %c0_11 = arith.constant 0 : index
    %c0_12 = arith.constant 0 : index
    %15 = vector.load %arg6[%c0_11, %c0_12] : memref<8x128xf32, #tpu.memory_space<vmem>>, vector<8x128xf32>
    tpu.vector_store %arg6[%c0_11, %c0_12], %14 {strides = array<i32>} : memref<8x128xf32, #tpu.memory_space<vmem>>, vector<8x128xf32>,
    return
  }
  func.func @transform_0(%arg0: i32) -> (i32, i32) {
    %c0_i32 = arith.constant 0 : i32
    %c0_i32_0 = arith.constant 0 : i32
    return %arg0, %c0_i32 : i32, i32
  }
  func.func @transform_1(%arg0: i32) -> (i32, i32) {
    %c0_i32 = arith.constant 0 : i32
    %c0_i32_0 = arith.constant 0 : i32
    %c0_i32_1 = arith.constant 0 : i32
    return %c0_i32, %c0_i32_0 : i32, i32
  }
  func.func @transform_2(%arg0: i32) -> (i32, i32) {
    %c0_i32 = arith.constant 0 : i32
    %c0_i32_0 = arith.constant 0 : i32
    %c0_i32_1 = arith.constant 0 : i32
    return %c0_i32, %c0_i32_0 : i32, i32
  }
  func.func @transform_3(%arg0: i32) -> (i32, i32) {
    %c0_i32 = arith.constant 0 : i32
    %c0_i32_0 = arith.constant 0 : i32
    %c0_i32_1 = arith.constant 0 : i32
    return %c0_i32, %c0_i32_0 : i32, i32
  }
  func.func @transform_4(%arg0: i32) -> (i32, i32) {
    %c0_i32 = arith.constant 0 : i32
    %c0_i32_0 = arith.constant 0 : i32
    %c0_i32_1 = arith.constant 0 : i32
    return %c0_i32, %c0_i32_0 : i32, i32
  }
  func.func @transform_5(%arg0: i32) -> (i32, i32) {
    %c0_i32 = arith.constant 0 : i32
    %c0_i32_0 = arith.constant 0 : i32
    return %arg0, %c0_i32 : i32, i32
  }
}

</mosaic_0001>

<bundles_post_ra>
// kernel: tpu_custom_call.1
= control target key start
LH: loop header
LB: loop body
LE: loop exit
PB: predicated region body
PF: predicated region fallthrough
CT: control target
= control target key end

     0   :  { %10 = vsyncpa [#allocation3], 0  ;;  %s12595_s0 = inlined_call_operand.hbm [shape: f32[2,12288], index: 0, kind: input, shape index: {}]   ;;  %s12596_s1 = inlined_call_operand.hbm [shape: bf16[12288,128], index: 1, kind: input, shape index: {}]   ;;  %s12597_s2 = inlined_call_operand.hbm [shape: f32[1,128], index: 2, kind: input, shape index: {}]   ;;  %s12598_s3 = inlined_call_operand.hbm [shape: bf16[128,128], index: 3, kind: input, shape index: {}]   ;;  %s12599_s4 = inlined_call_operand.hbm [shape: f32[1,128], index: 4, kind: input, shape index: {}]   ;;  %s12600_s5 = inlined_call_operand.hbm [shape: f32[2,128], index: 5, kind: output, shape index: {}]  }
   0x1   :  { %11 = vsyncpa [#allocation6], 0 }
   0x2   :  { %12 = vsyncpa [#allocation9], 0 }
   0x3   :  { %13 = vsyncpa [#allocation4], 0 }
   0x4   :  { %18 = vsyncadd [#allocation3], 9216  ;;  %s12332_s18 = smov [#allocation5]   ;;  %s12192_s22 = scalar_lea.hbm %s12596_s1, 98304 }
   0x5   :  { %s31_s19 = sshll.u32 %s12332_s18, 4  ;;  %p12193_p0 = scmp.ne.s32.totalorder %s12596_s1, %s12192_s22  ;;  %s32_s19 = int_to_ptr.vmem [resolvable:$true] %s31_s19 }
   0x6   :  { %p12196_p1 = scmp.lt.u32.totalorder %s12192_s22, %s12596_s1 }
   0x8   :  { %p12198_p2 = pnand %p12196_p1, %p12193_p0 }
   0xa   :  { %12201 = shalt.err (!%p12198_p2)
}
   0xb   :  { %s12202_s27 = scalar_lea.vmem %s32_s19, 98304  ;;  %p12207_p4 = scmp.lt.s32.totalorder %s32_s19, %s32_s19 }
   0xc   :  { %p12203_p3 = scmp.ne.s32.totalorder %s32_s19, %s12202_s27  ;;  %p12208_p5 = scmp.lt.s32.totalorder %s12202_s27, %s12202_s27 }
   0xe   :  { %p12209_p6 = por %p12208_p5, %p12207_p4 }
  0x10   :  { %p12210_p7 = pnand %p12209_p6, %p12203_p3 }
  0x12   :  { %12213 = shalt.err (!%p12210_p7)
}
  0x13   :  { %s12333_s28 = smov 64   ;;  %s12334_s29 = smov 4  }
  0x14   :  { %37 = dma.hbm_to_vmem [thread:$0]  %s12596_s1, 98304, %s32_s19, [#allocation6], %s12333_s28, %s12333_s28, %s12334_s29  }
  0x15   :  { %s12335_s7 = smov [#allocation8]   ;;  %s12336_s9 = smov [#allocation2]  }
  0x16   :  { %s53_s8 = sshll.u32 %s12335_s7, 4  ;;  %s19_s10 = sshll.u32 %s12336_s9, 4  ;;  %s54_s8 = int_to_ptr.vmem [resolvable:$true] %s53_s8  ;;  %s20_s10 = int_to_ptr.vmem [resolvable:$true] %s19_s10 }
  0x17   :  { %s12214_s13 = scalar_lea.hbm %s12598_s3, 1024 }
  0x18   :  { %p12215_p8 = scmp.ne.s32.totalorder %s12598_s3, %s12214_s13  ;;  %p12218_p9 = scmp.lt.u32.totalorder %s12214_s13, %s12598_s3 }
  0x1a   :  { %p12220_p10 = pnand %p12218_p9, %p12215_p8 }
  0x1c   :  { %12223 = shalt.err (!%p12220_p10)
}
  0x1d   :  { %s12224_s1 = scalar_lea.vmem %s54_s8, 1024  ;;  %p12229_p12 = scmp.lt.s32.totalorder %s54_s8, %s54_s8 }
  0x1e   :  { %p12225_p11 = scmp.ne.s32.totalorder %s54_s8, %s12224_s1  ;;  %p12230_p13 = scmp.lt.s32.totalorder %s12224_s1, %s12224_s1 }
  0x20   :  { %p12231_p0 = por %p12230_p13, %p12229_p12 }
  0x22   :  { %p12232_p1 = pnand %p12231_p0, %p12225_p11 }
  0x24   :  { %12235 = shalt.err (!%p12232_p1)
}
  0x25   :  { %59 = dma.hbm_to_vmem [thread:$0]  %s12598_s3, 1024, %s54_s8, [#allocation9], %s12333_s28, %s12333_s28, %s12334_s29  }
  0x26   :  { %s12236_s22 = scalar_lea.hbm %s12595_s0, 3072 }
  0x27   :  { %p12237_p2 = scmp.ne.s32.totalorder %s12595_s0, %s12236_s22  ;;  %p12240_p3 = scmp.lt.u32.totalorder %s12236_s22, %s12595_s0 }
  0x29   :  { %p12242_p4 = pnand %p12240_p3, %p12237_p2 }
  0x2b   :  { %12245 = shalt.err (!%p12242_p4)
}
  0x2c   :  { %s12246_s27 = scalar_lea.vmem %s20_s10, 3072  ;;  %s12250_s30 = scalar_lea.vmem %s20_s10, 12288 }
  0x2d   :  { %p12247_p5 = scmp.ne.s32.totalorder %s20_s10, %s12246_s27  ;;  %p12251_p6 = scmp.lt.s32.totalorder %s20_s10, %s20_s10 }
  0x2e   :  { %p12252_p7 = scmp.lt.s32.totalorder %s12250_s30, %s12246_s27 }
  0x30   :  { %p12253_p8 = por %p12252_p7, %p12251_p6 }
  0x32   :  { %p12254_p9 = pnand %p12253_p8, %p12247_p5 }
  0x34   :  { %12257 = shalt.err (!%p12254_p9)
}
  0x35   :  { %s12337_s3 = smov 3072   ;;  %s12338_s28 = smov 192  }
  0x36   :  { %25 = dma.hbm_to_vmem [thread:$0]  %s12595_s0, 3072, %s20_s10, [#allocation3], %s12337_s3, %s12337_s3, %s12338_s28  }
  0x37   :  { %s12339_s7 = smov [#allocation7]   ;;  %s12340_s9 = smov [#allocation10]  }
  0x38   :  { %s44_s8 = sshll.u32 %s12339_s7, 4  ;;  %s66_s11 = sshll.u32 %s12340_s9, 4  ;;  %s45_s8 = int_to_ptr.vmem [resolvable:$true] %s44_s8  ;;  %s67_s11 = int_to_ptr.vmem [resolvable:$true] %s66_s11 }
  0x39   :  { %s12258_s14 = scalar_lea.hbm %s12597_s2, 16 }
  0x3a   :  { %p12259_p10 = scmp.ne.s32.totalorder %s12597_s2, %s12258_s14  ;;  %p12262_p11 = scmp.lt.u32.totalorder %s12258_s14, %s12597_s2 }
  0x3c   :  { %p12264_p12 = pnand %p12262_p11, %p12259_p10 }
  0x3e   :  { %12267 = shalt.err (!%p12264_p12)
}
  0x3f   :  { %s12268_s0 = scalar_lea.vmem %s45_s8, 16  ;;  %s12272_s10 = scalar_lea.vmem %s45_s8, 32 }
  0x40   :  { %p12269_p13 = scmp.ne.s32.totalorder %s45_s8, %s12268_s0  ;;  %p12273_p0 = scmp.lt.s32.totalorder %s45_s8, %s45_s8 }
  0x41   :  { %p12274_p1 = scmp.lt.s32.totalorder %s12272_s10, %s12268_s0 }
  0x43   :  { %p12275_p2 = por %p12274_p1, %p12273_p0 }
  0x45   :  { %p12276_p3 = pnand %p12275_p2, %p12269_p13 }
  0x47   :  { %12279 = shalt.err (!%p12276_p3)
}
  0x48   :  { %47 = dma.hbm_to_vmem [thread:$0]  %s12597_s2, 16, %s45_s8, [#allocation6]  }
  0x49   :  { %s12280_s22 = scalar_lea.hbm %s12599_s4, 16 }
  0x4a   :  { %p12281_p4 = scmp.ne.s32.totalorder %s12599_s4, %s12280_s22  ;;  %p12284_p5 = scmp.lt.u32.totalorder %s12280_s22, %s12599_s4 }
  0x4c   :  { %p12286_p6 = pnand %p12284_p5, %p12281_p4 }
  0x4e   :  { %12289 = shalt.err (!%p12286_p6)
}
  0x4f   :  { %s12290_s27 = scalar_lea.vmem %s67_s11, 16  ;;  %s12294_s30 = scalar_lea.vmem %s67_s11, 32 }
  0x50   :  { %p12291_p7 = scmp.ne.s32.totalorder %s67_s11, %s12290_s27  ;;  %p12295_p8 = scmp.lt.s32.totalorder %s67_s11, %s67_s11 }
  0x51   :  { %p12296_p9 = scmp.lt.s32.totalorder %s12294_s30, %s12290_s27 }
  0x53   :  { %p12297_p10 = por %p12296_p9, %p12295_p8 }
  0x55   :  { %p12298_p11 = pnand %p12297_p10, %p12291_p7 }
  0x57   :  { %12301 = shalt.err (!%p12298_p11)
}
  0x58   :  { %69 = dma.hbm_to_vmem [thread:$0]  %s12599_s4, 16, %s67_s11, [#allocation9]  }
  0x59   :  { %12324 = dma.done.wait [#allocation3], 12288  }
  0x5a   :  { %12325 = vsyncadd [#allocation3], 4294955008 }
  0x5b   :  { %12326 = dma.done.wait [#allocation6], 98320  }
  0x5c   :  { %12327 = vsyncadd [#allocation6], 4294868976 }
  0x5d   :  { %12328 = dma.done.wait [#allocation9], 1040  }
  0x5e   :  { %12329 = vsyncadd [#allocation9], 4294966256  ;;  %v11416_v0 = vld [vmem:[#allocation5 + $0x40] sm:$0xff]   ;;  %v11420_v4 = vld [vmem:[#allocation5 + $0x48] sm:$0xff]   ;;  %v12341_v24 = vmov 1983009808   ;;  %v285_v26 = vlaneseq }
  0x5f   :  { %v11417_v1 = vld [vmem:[#allocation5 + $0xc0] sm:$0xff]   ;;  %10316 = vmatprep.subr.bf16.mxu0 %v11416_v0  ;;  %v11421_v5 = vld [vmem:[#allocation5 + $0xc8] sm:$0xff]   ;;  %v11424_v8 = vld [vmem:[#allocation5 + $0x50] sm:$0xff]   ;;  %v283_v25 = vunpack.c.l.s4 %v12341_v24  ;;  %vm12343_vm0 = vmmov 0  }
  0x60   :  { %v11418_v2 = vld [vmem:[#allocation5] sm:$0xff]   ;;  %10338 = vmatprep.subr.bf16.mxu1 %v11417_v1  ;;  %v11422_v6 = vld [vmem:[#allocation5 + $0x8] sm:$0xff]   ;;  %v11425_v9 = vld [vmem:[#allocation5 + $0xd0] sm:$0xff]   ;;  %v286_v32 = vshrl.u32 %v285_v26, 7 }
  0x61   :  { %v11419_v3 = vld [vmem:[#allocation5 + $0x80] sm:$0xff]   ;;  %10317 = vmatpush3.bf16.msra.mxu0 %v11418_v2  ;;  %v11423_v7 = vld [vmem:[#allocation5 + $0x88] sm:$0xff]   ;;  %v11426_v10 = vld [vmem:[#allocation5 + $0x10] sm:$0xff]   ;;  %v284_v31 = vunpack.c.0.s8 %v283_v25 }
  0x62   :  { %10339 = vmatpush3.bf16.msra.mxu1 %v11419_v3  ;;  %10318 = vmatprep.subr.bf16.mxu0 %v11420_v4  ;;  %v11427_v11 = vld [vmem:[#allocation5 + $0x90] sm:$0xff]   ;;  %v11428_v12 = vld [vmem:[#allocation5 + $0x58] sm:$0xff]   ;;  %v11432_v16 = vld [vmem:[#allocation5 + $0x60] sm:$0xff]  }
  0x63   :  { %10340 = vmatprep.subr.bf16.mxu1 %v11421_v5  ;;  %v11429_v13 = vld [vmem:[#allocation5 + $0xd8] sm:$0xff]   ;;  %v11433_v17 = vld [vmem:[#allocation5 + $0xe0] sm:$0xff]   ;;  %v11436_v20 = vld [vmem:[#allocation5 + $0x68] sm:$0xff]   ;;  %v12437_v37 = vsub.s32 %v284_v31, %v286_v32 }
  0x64   :  { %v11430_v14 = vld [vmem:[#allocation5 + $0x18] sm:$0xff]   ;;  %v11434_v18 = vld [vmem:[#allocation5 + $0x20] sm:$0xff]   ;;  %v11437_v21 = vld [vmem:[#allocation5 + $0xe8] sm:$0xff]  }
  0x65   :  { %10319 = vmatpush3.bf16.msra.mxu0 %v11422_v6  ;;  %v11431_v15 = vld [vmem:[#allocation5 + $0x98] sm:$0xff]   ;;  %v11435_v19 = vld [vmem:[#allocation5 + $0xa0] sm:$0xff]   ;;  %v11438_v22 = vld [vmem:[#allocation5 + $0x28] sm:$0xff]  }
  0x66   :  { %10341 = vmatpush3.bf16.msra.mxu1 %v11423_v7  ;;  %10320 = vmatprep.subr.bf16.mxu0 %v11424_v8  ;;  %v11439_v23 = vld [vmem:[#allocation5 + $0xa8] sm:$0xff]   ;;  %v11440_v27 = vld [vmem:[#allocation5 + $0x70] sm:$0xff]   ;;  %v11444_v33 = vld [vmem:[#allocation5 + $0x78] sm:$0xff]  }
  0x67   :  { %10342 = vmatprep.subr.bf16.mxu1 %v11425_v9  ;;  %v11441_v28 = vld [vmem:[#allocation5 + $0xf0] sm:$0xff]   ;;  %v11445_v34 = vld [vmem:[#allocation5 + $0xf8] sm:$0xff]   ;;  %v86_v38 = vld [vmem:[#allocation2] sm:$0xff] }
  0x68   :  { %v11442_v29 = vld [vmem:[#allocation5 + $0x30] sm:$0xff]   ;;  %v11446_v35 = vld [vmem:[#allocation5 + $0x38] sm:$0xff]   ;;  %v110_v39 = vld [vmem:[#allocation2 + $0xc0] sm:$0xff] }
  0x69   :  { %10321 = vmatpush3.bf16.msra.mxu0 %v11426_v10  ;;  %v11443_v30 = vld [vmem:[#allocation5 + $0xb0] sm:$0xff]   ;;  %v11447_v36 = vld [vmem:[#allocation5 + $0xb8] sm:$0xff]   ;;  %v134_v40 = vld [vmem:[#allocation2 + $0x180] sm:$0xff]  ;;  %v278_v42 = vcombine.low %v86_v38, %v110_v39  ;;  %v279_v43 = vcombine.high %v86_v38, %v110_v39 }
  0x6a   :  { %10343 = vmatpush3.bf16.msra.mxu1 %v11427_v11  ;;  %10322 = vmatprep.subr.bf16.mxu0 %v11428_v12  ;;  %v158_v41 = vld [vmem:[#allocation2 + $0x240] sm:$0xff]  ;;  %v11452_v62 = vld [vmem:[#allocation5 + $0x148] sm:$0xff]   ;;  %v11456_v2 = vld [vmem:[#allocation5 + $0x150] sm:$0xff]  }
  0x6b   :  { %10344 = vmatprep.subr.bf16.mxu1 %v11429_v13  ;;  %v280_v44 = vcombine.low %v134_v40, %v158_v41  ;;  %v281_v45 = vcombine.high %v134_v40, %v158_v41  ;;  %v11448_v46 = vld [vmem:[#allocation5 + $0x140] sm:$0xff]   ;;  %v288_v47 = vrot.slane %v278_v42, %v12437_v37  ;;  %v295_v48 = vrot.slane %v279_v43, %v12437_v37  ;;  %v11453_v63 = vld [vmem:[#allocation5 + $0x1c8] sm:$0xff]   ;;  %v11457_v3 = vld [vmem:[#allocation5 + $0x1d0] sm:$0xff]  }
  0x6c   :  { %v11449_v49 = vld [vmem:[#allocation5 + $0x1c0] sm:$0xff]   ;;  %v11454_v0 = vld [vmem:[#allocation5 + $0x108] sm:$0xff]   ;;  %v11458_v4 = vld [vmem:[#allocation5 + $0x110] sm:$0xff]  }
  0x6d   :  { %10323 = vmatpush3.bf16.msra.mxu0 %v11430_v14  ;;  %v302_v50 = vrot.slane %v280_v44, %v12437_v37  ;;  %v309_v51 = vrot.slane %v281_v45, %v12437_v37  ;;  %v11450_v56 = vld [vmem:[#allocation5 + $0x100] sm:$0xff]   ;;  %v11455_v1 = vld [vmem:[#allocation5 + $0x188] sm:$0xff]   ;;  %v11459_v5 = vld [vmem:[#allocation5 + $0x190] sm:$0xff]  }
  0x6e   :  { %10345 = vmatpush3.bf16.msra.mxu1 %v11431_v15  ;;  %10324 = vmatprep.subr.bf16.mxu0 %v11432_v16  ;;  %v11451_v57 = vld [vmem:[#allocation5 + $0x180] sm:$0xff]   ;;  %v11460_v6 = vld [vmem:[#allocation5 + $0x158] sm:$0xff]   ;;  %v11468_v14 = vld [vmem:[#allocation5 + $0x168] sm:$0xff]  }
  0x6f   :  { %10346 = vmatprep.subr.bf16.mxu1 %v11433_v17  ;;  %v311_v52 = vcombine.high %v288_v47, %v302_v50  ;;  %v313_v53 = vcombine.high %v295_v48, %v309_v51  ;;  %v310_v54 = vcombine.low %v288_v47, %v302_v50  ;;  %v312_v55 = vcombine.low %v295_v48, %v309_v51  ;;  %v11461_v7 = vld [vmem:[#allocation5 + $0x1d8] sm:$0xff]   ;;  %v11464_v10 = vld [vmem:[#allocation5 + $0x160] sm:$0xff]   ;;  %v11469_v15 = vld [vmem:[#allocation5 + $0x1e8] sm:$0xff]  }
  0x70   :  { %v11462_v8 = vld [vmem:[#allocation5 + $0x118] sm:$0xff]   ;;  %v11465_v11 = vld [vmem:[#allocation5 + $0x1e0] sm:$0xff]   ;;  %v11470_v16 = vld [vmem:[#allocation5 + $0x128] sm:$0xff]  }
  0x71   :  { %10325 = vmatpush3.bf16.msra.mxu0 %v11434_v18  ;;  %v1239_v58 = vpack.c.bf16 %v311_v52, %v311_v52  ;;  %v1241_v59 = vpack.c.bf16 %v313_v53, %v313_v53  ;;  %v1238_v60 = vpack.c.bf16 %v310_v54, %v310_v54  ;;  %v1240_v61 = vpack.c.bf16 %v312_v55, %v312_v55  ;;  %v11463_v9 = vld [vmem:[#allocation5 + $0x198] sm:$0xff]   ;;  %v11466_v12 = vld [vmem:[#allocation5 + $0x120] sm:$0xff]   ;;  %v11471_v17 = vld [vmem:[#allocation5 + $0x1a8] sm:$0xff]  }
  0x72   :  { %10347 = vmatpush3.bf16.msra.mxu1 %v11435_v19  ;;  %10326 = vmatprep.subr.bf16.mxu0 %v11436_v20  ;;  %v11467_v13 = vld [vmem:[#allocation5 + $0x1a0] sm:$0xff]   ;;  %v11472_v18 = vld [vmem:[#allocation5 + $0x170] sm:$0xff]   ;;  %v87_v24 = vld [vmem:[#allocation2 + $0x8] sm:$0xff] }
  0x73   :  { %10348 = vmatprep.subr.bf16.mxu1 %v11437_v21  ;;  %7517 = vmatprep.mubr.bf16.mxu0 %v1239_v58  ;;  %v11473_v19 = vld [vmem:[#allocation5 + $0x1f0] sm:$0xff]   ;;  %v111_v25 = vld [vmem:[#allocation2 + $0xc8] sm:$0xff]  ;;  %v11480_v39 = vld [vmem:[#allocation5 + $0x240] sm:$0xff]  }
  0x74   :  { %7557 = vmatprep.mubr.bf16.mxu1 %v1241_v59  ;;  %v11474_v20 = vld [vmem:[#allocation5 + $0x130] sm:$0xff]   ;;  %v135_v26 = vld [vmem:[#allocation2 + $0x188] sm:$0xff]  ;;  %v11481_v40 = vld [vmem:[#allocation5 + $0x2c0] sm:$0xff]  }
  0x75   :  { %10327 = vmatpush3.bf16.msra.mxu0 %v11438_v22  ;;  %v11475_v21 = vld [vmem:[#allocation5 + $0x1b0] sm:$0xff]   ;;  %v11476_v22 = vld [vmem:[#allocation5 + $0x178] sm:$0xff]   ;;  %v11482_v45 = vld [vmem:[#allocation5 + $0x200] sm:$0xff]  }
  0x76   :  { %10349 = vmatpush3.bf16.msra.mxu1 %v11439_v23  ;;  %10328 = vmatprep.subr.bf16.mxu0 %v11440_v27  ;;  %v11477_v23 = vld [vmem:[#allocation5 + $0x1f8] sm:$0xff]   ;;  %v159_v27 = vld [vmem:[#allocation2 + $0x248] sm:$0xff]  ;;  %v11488_v55 = vld [vmem:[#allocation5 + $0x250] sm:$0xff]  }
  0x77   :  { %10350 = vmatprep.subr.bf16.mxu1 %v11441_v28  ;;  %v314_v28 = vcombine.low %v87_v24, %v111_v25  ;;  %v316_v31 = vcombine.low %v135_v26, %v159_v27  ;;  %v317_v32 = vcombine.high %v135_v26, %v159_v27  ;;  %v11484_v51 = vld [vmem:[#allocation5 + $0x248] sm:$0xff]   ;;  %v11491_v58 = vld [vmem:[#allocation5 + $0x290] sm:$0xff]   ;;  %v11492_v59 = vld [vmem:[#allocation5 + $0x258] sm:$0xff]  }
  0x78   :  { %v11485_v52 = vld [vmem:[#allocation5 + $0x2c8] sm:$0xff]   ;;  %v11513_v27 = vld [vmem:[#allocation5 + $0x3c0] sm:$0xff]  }
  0x79   :  { %10329 = vmatpush3.bf16.msra.mxu0 %v11442_v29  ;;  %v315_v29 = vcombine.high %v87_v24, %v111_v25  ;;  %v345_v38 = vrot.slane %v317_v32, %v12437_v37  ;;  %v11486_v53 = vld [vmem:[#allocation5 + $0x208] sm:$0xff]  }
  0x7a   :  { %10351 = vmatpush3.bf16.msra.mxu1 %v11443_v30  ;;  %10330 = vmatprep.subr.bf16.mxu0 %v11444_v33  ;;  %v11478_v30 = vld [vmem:[#allocation5 + $0x138] sm:$0xff]   ;;  %v11487_v54 = vld [vmem:[#allocation5 + $0x288] sm:$0xff]  }
  0x7b   :  { %10352 = vmatprep.subr.bf16.mxu1 %v11445_v34  ;;  %v11479_v33 = vld [vmem:[#allocation5 + $0x1b8] sm:$0xff]   ;;  %v324_v34 = vrot.slane %v314_v28, %v12437_v37 }
  0x7d   :  { %10331 = vmatpush3.bf16.msra.mxu0 %v11446_v35  ;;  %v331_v35 = vrot.slane %v315_v29, %v12437_v37 }
  0x7e   :  { %10353 = vmatpush3.bf16.msra.mxu1 %v11447_v36  ;;  %10360 = vmatprep.subr.bf16.mxu0 %v11448_v46  ;;  %v338_v36 = vrot.slane %v316_v31, %v12437_v37  ;;  %v11483_v46 = vld [vmem:[#allocation5 + $0x280] sm:$0xff]  }
  0x7f   :  { %10382 = vmatprep.subr.bf16.mxu1 %v11449_v49  ;;  %v349_v42 = vcombine.high %v331_v35, %v345_v38  ;;  %v348_v44 = vcombine.low %v331_v35, %v345_v38  ;;  %v11514_v31 = vld [vmem:[#allocation5 + $0x300] sm:$0xff]   ;;  %v11516_v38 = vld [vmem:[#allocation5 + $0x348] sm:$0xff]  }
  0x80   :  { %7518 = vmatmul.mubr.bf16.vlgmr.msra.gmra.mrb[0].mxu0 %v1238_v60  ;;  %v347_v41 = vcombine.high %v324_v34, %v338_v36  ;;  %v346_v43 = vcombine.low %v324_v34, %v338_v36  ;;  %v11493_v60 = vld [vmem:[#allocation5 + $0x2d8] sm:$0xff]   ;;  %v11515_v34 = vld [vmem:[#allocation5 + $0x380] sm:$0xff]  }
  0x81   :  { %7558 = vmatmul.mubr.bf16.vlgmr.msra.gmra.mrb[0].mxu1 %v1240_v61  ;;  %10361 = vmatpush3.bf16.msra.mxu0 %v11450_v56  ;;  %v1245_v48 = vpack.c.bf16 %v349_v42, %v349_v42  ;;  %v1244_v50 = vpack.c.bf16 %v348_v44, %v348_v44  ;;  %v11489_v56 = vld [vmem:[#allocation5 + $0x2d0] sm:$0xff]   ;;  %v11494_v61 = vld [vmem:[#allocation5 + $0x218] sm:$0xff]   ;;  %v11518_v42 = vld [vmem:[#allocation5 + $0x308] sm:$0xff]  }
  0x82   :  { %10383 = vmatpush3.bf16.msra.mxu1 %v11451_v57  ;;  %10362 = vmatprep.subr.bf16.mxu0 %v11452_v62  ;;  %v1243_v47 = vpack.c.bf16 %v347_v41, %v347_v41  ;;  %v1242_v49 = vpack.c.bf16 %v346_v43, %v346_v43  ;;  %v11490_v57 = vld [vmem:[#allocation5 + $0x210] sm:$0xff]   ;;  %v11495_v62 = vld [vmem:[#allocation5 + $0x298] sm:$0xff]   ;;  %v11517_v41 = vld [vmem:[#allocation5 + $0x3c8] sm:$0xff]  }
  0x83   :  { %10384 = vmatprep.subr.bf16.mxu1 %v11453_v63  ;;  %7637 = vmatprep.mubr.bf16.mxu1 %v1245_v48  ;;  %v11496_v63 = vld [vmem:[#allocation5 + $0x260] sm:$0xff]   ;;  %v11519_v43 = vld [vmem:[#allocation5 + $0x388] sm:$0xff]   ;;  %v11520_v44 = vld [vmem:[#allocation5 + $0x350] sm:$0xff]  }
  0x84   :  { %7597 = vmatprep.mubr.bf16.mxu0 %v1243_v47  ;;  %v11523_v47 = vld [vmem:[#allocation5 + $0x390] sm:$0xff]   ;;  %v11524_v48 = vld [vmem:[#allocation5 + $0x358] sm:$0xff]  }
  0x85   :  { %10363 = vmatpush3.bf16.msra.mxu0 %v11454_v0  ;;  %v11497_v0 = vld [vmem:[#allocation5 + $0x2e0] sm:$0xff]  }
  0x86   :  { %10385 = vmatpush3.bf16.msra.mxu1 %v11455_v1  ;;  %10364 = vmatprep.subr.bf16.mxu0 %v11456_v2  ;;  %v11498_v1 = vld [vmem:[#allocation5 + $0x220] sm:$0xff]  }
  0x87   :  { %10386 = vmatprep.subr.bf16.mxu1 %v11457_v3  ;;  %v11499_v2 = vld [vmem:[#allocation5 + $0x2a0] sm:$0xff]   ;;  %v11500_v3 = vld [vmem:[#allocation5 + $0x268] sm:$0xff]  }
  0x89   :  { %10365 = vmatpush3.bf16.msra.mxu0 %v11458_v4  ;;  %v11501_v4 = vld [vmem:[#allocation5 + $0x2e8] sm:$0xff]  }
  0x8a   :  { %10387 = vmatpush3.bf16.msra.mxu1 %v11459_v5  ;;  %10366 = vmatprep.subr.bf16.mxu0 %v11460_v6  ;;  %v11502_v5 = vld [vmem:[#allocation5 + $0x228] sm:$0xff]  }
  0x8b   :  { %10388 = vmatprep.subr.bf16.mxu1 %v11461_v7  ;;  %v11503_v6 = vld [vmem:[#allocation5 + $0x2a8] sm:$0xff]   ;;  %v11504_v7 = vld [vmem:[#allocation5 + $0x270] sm:$0xff]  }
  0x8d   :  { %10367 = vmatpush3.bf16.msra.mxu0 %v11462_v8  ;;  %v11505_v8 = vld [vmem:[#allocation5 + $0x2f0] sm:$0xff]  }
  0x8e   :  { %10389 = vmatpush3.bf16.msra.mxu1 %v11463_v9  ;;  %10368 = vmatprep.subr.bf16.mxu0 %v11464_v10  ;;  %v11506_v9 = vld [vmem:[#allocation5 + $0x230] sm:$0xff]  }
  0x8f   :  { %10390 = vmatprep.subr.bf16.mxu1 %v11465_v11  ;;  %v11507_v10 = vld [vmem:[#allocation5 + $0x2b0] sm:$0xff]   ;;  %v11508_v11 = vld [vmem:[#allocation5 + $0x278] sm:$0xff]  }
  0x91   :  { %10369 = vmatpush3.bf16.msra.mxu0 %v11466_v12  ;;  %v11509_v12 = vld [vmem:[#allocation5 + $0x2f8] sm:$0xff]  }
  0x92   :  { %10391 = vmatpush3.bf16.msra.mxu1 %v11467_v13  ;;  %10370 = vmatprep.subr.bf16.mxu0 %v11468_v14  ;;  %v88_v13 = vld [vmem:[#allocation2 + $0x10] sm:$0xff]  ;;  %v11510_v14 = vld [vmem:[#allocation5 + $0x238] sm:$0xff]  }
  0x93   :  { %10392 = vmatprep.subr.bf16.mxu1 %v11469_v15  ;;  %v112_v15 = vld [vmem:[#allocation2 + $0xd0] sm:$0xff] }
  0x95   :  { %10371 = vmatpush3.bf16.msra.mxu0 %v11470_v16  ;;  %v136_v16 = vld [vmem:[#allocation2 + $0x190] sm:$0xff] }
  0x96   :  { %10393 = vmatpush3.bf16.msra.mxu1 %v11471_v17  ;;  %10372 = vmatprep.subr.bf16.mxu0 %v11472_v18  ;;  %v160_v17 = vld [vmem:[#allocation2 + $0x250] sm:$0xff]  ;;  %v11511_v18 = vld [vmem:[#allocation5 + $0x2b8] sm:$0xff]  }
  0x97   :  { %10394 = vmatprep.subr.bf16.mxu1 %v11473_v19  ;;  %v350_v19 = vcombine.low %v88_v13, %v112_v15 }
  0x99   :  { %10373 = vmatpush3.bf16.msra.mxu0 %v11474_v20  ;;  %v352_v20 = vcombine.low %v136_v16, %v160_v17  ;;  %v360_v24 = vrot.slane %v350_v19, %v12437_v37 }
  0x9a   :  { %10395 = vmatpush3.bf16.msra.mxu1 %v11475_v21  ;;  %10374 = vmatprep.subr.bf16.mxu0 %v11476_v22  ;;  %v351_v21 = vcombine.high %v88_v13, %v112_v15  ;;  %v353_v22 = vcombine.high %v136_v16, %v160_v17  ;;  %v11545_v17 = vld [vmem:[#allocation5 + $0x4c0] sm:$0xff]  }
  0x9b   :  { %10396 = vmatprep.subr.bf16.mxu1 %v11477_v23  ;;  %v11512_v23 = vld [vmem:[#allocation5 + $0x340] sm:$0xff]   ;;  %v374_v25 = vrot.slane %v352_v20, %v12437_v37 }
  0x9c   :  { %v367_v26 = vrot.slane %v351_v21, %v12437_v37  ;;  %v381_v28 = vrot.slane %v353_v22, %v12437_v37  ;;  %v11546_v22 = vld [vmem:[#allocation5 + $0x400] sm:$0xff]  }
  0x9d   :  { %10375 = vmatpush3.bf16.msra.mxu0 %v11478_v30  ;;  %v383_v29 = vcombine.high %v360_v24, %v374_v25  ;;  %v382_v30 = vcombine.low %v360_v24, %v374_v25 }
  0x9e   :  { %10397 = vmatpush3.bf16.msra.mxu1 %v11479_v33  ;;  %10404 = vmatprep.subr.bf16.mxu0 %v11480_v39  ;;  %v385_v32 = vcombine.high %v367_v26, %v381_v28  ;;  %v384_v33 = vcombine.low %v367_v26, %v381_v28  ;;  %v11548_v28 = vld [vmem:[#allocation5 + $0x448] sm:$0xff]  }
  0x9f   :  { %10426 = vmatprep.subr.bf16.mxu1 %v11481_v40  ;;  %v1247_v35 = vpack.c.bf16 %v383_v29, %v383_v29  ;;  %v1246_v36 = vpack.c.bf16 %v382_v30, %v382_v30  ;;  %v11549_v29 = vld [vmem:[#allocation5 + $0x4c8] sm:$0xff]  }
  0xa0   :  { %7598 = vmatmul.mubr.bf16.vlgmr.msra.gmra.mrb[4].mxu0 %v1242_v49  ;;  %v1249_v39 = vpack.c.bf16 %v385_v32, %v385_v32  ;;  %v1248_v40 = vpack.c.bf16 %v384_v33, %v384_v33  ;;  %v11525_v49 = vld [vmem:[#allocation5 + $0x3d8] sm:$0xff]   ;;  %v11550_v30 = vld [vmem:[#allocation5 + $0x408] sm:$0xff]   ;;  %v11552_v32 = vld [vmem:[#allocation5 + $0x450] sm:$0xff]  }
  0xa1   :  { %7638 = vmatmul.mubr.bf16.vlgmr.msra.gmra.mrb[4].mxu1 %v1244_v50  ;;  %10405 = vmatpush3.bf16.msra.mxu0 %v11482_v45  ;;  %v11521_v45 = vld [vmem:[#allocation5 + $0x3d0] sm:$0xff]   ;;  %v11526_v50 = vld [vmem:[#allocation5 + $0x318] sm:$0xff]  }
  0xa2   :  { %10427 = vmatpush3.bf16.msra.mxu1 %v11483_v46  ;;  %10406 = vmatprep.subr.bf16.mxu0 %v11484_v51  ;;  %v11522_v46 = vld [vmem:[#allocation5 + $0x310] sm:$0xff]   ;;  %v11527_v51 = vld [vmem:[#allocation5 + $0x398] sm:$0xff]  }
  0xa3   :  { %10428 = vmatprep.subr.bf16.mxu1 %v11485_v52  ;;  %7677 = vmatprep.mubr.bf16.mxu0 %v1247_v35  ;;  %v11528_v52 = vld [vmem:[#allocation5 + $0x360] sm:$0xff]   ;;  %v11553_v33 = vld [vmem:[#allocation5 + $0x4d0] sm:$0xff]  }
  0xa4   :  { %7717 = vmatprep.mubr.bf16.mxu1 %v1249_v39  ;;  %v11555_v35 = vld [vmem:[#allocation5 + $0x490] sm:$0xff]   ;;  %v11558_v39 = vld [vmem:[#allocation5 + $0x418] sm:$0xff]  }
  0xa5   :  { %10407 = vmatpush3.bf16.msra.mxu0 %v11486_v53  ;;  %v11529_v53 = vld [vmem:[#allocation5 + $0x3e0] sm:$0xff]  }
  0xa6   :  { %10429 = vmatpush3.bf16.msra.mxu1 %v11487_v54  ;;  %10408 = vmatprep.subr.bf16.mxu0 %v11488_v55  ;;  %v11530_v54 = vld [vmem:[#allocation5 + $0x320] sm:$0xff]  }
  0xa7   :  { %10430 = vmatprep.subr.bf16.mxu1 %v11489_v56  ;;  %v11531_v55 = vld [vmem:[#allocation5 + $0x3a0] sm:$0xff]   ;;  %v11532_v56 = vld [vmem:[#allocation5 + $0x368] sm:$0xff]  }
  0xa9   :  { %10409 = vmatpush3.bf16.msra.mxu0 %v11490_v57  ;;  %v11533_v57 = vld [vmem:[#allocation5 + $0x3e8] sm:$0xff]  }
  0xaa   :  { %10431 = vmatpush3.bf16.msra.mxu1 %v11491_v58  ;;  %10410 = vmatprep.subr.bf16.mxu0 %v11492_v59  ;;  %v11534_v58 = vld [vmem:[#allocation5 + $0x328] sm:$0xff]  }
  0xab   :  { %10432 = vmatprep.subr.bf16.mxu1 %v11493_v60  ;;  %v11535_v59 = vld [vmem:[#allocation5 + $0x3a8] sm:$0xff]   ;;  %v11536_v60 = vld [vmem:[#allocation5 + $0x370] sm:$0xff]  }
  0xad   :  { %10411 = vmatpush3.bf16.msra.mxu0 %v11494_v61  ;;  %v11537_v61 = vld [vmem:[#allocation5 + $0x3f0] sm:$0xff]  }
  0xae   :  { %10433 = vmatpush3.bf16.msra.mxu1 %v11495_v62  ;;  %10412 = vmatprep.subr.bf16.mxu0 %v11496_v63  ;;  %v11538_v62 = vld [vmem:[#allocation5 + $0x330] sm:$0xff]  }
  0xaf   :  { %10434 = vmatprep.subr.bf16.mxu1 %v11497_v0  ;;  %v11539_v63 = vld [vmem:[#allocation5 + $0x3b0] sm:$0xff]   ;;  %v11540_v0 = vld [vmem:[#allocation5 + $0x378] sm:$0xff]  }
  0xb1   :  { %10413 = vmatpush3.bf16.msra.mxu0 %v11498_v1  ;;  %v11541_v1 = vld [vmem:[#allocation5 + $0x3f8] sm:$0xff]  }
  0xb2   :  { %10435 = vmatpush3.bf16.msra.mxu1 %v11499_v2  ;;  %10414 = vmatprep.subr.bf16.mxu0 %v11500_v3  ;;  %v11542_v2 = vld [vmem:[#allocation5 + $0x338] sm:$0xff]  }
  0xb3   :  { %10436 = vmatprep.subr.bf16.mxu1 %v11501_v4  ;;  %v89_v3 = vld [vmem:[#allocation2 + $0x18] sm:$0xff] }
  0xb4   :  { %v113_v4 = vld [vmem:[#allocation2 + $0xd8] sm:$0xff] }
  0xb5   :  { %10415 = vmatpush3.bf16.msra.mxu0 %v11502_v5  ;;  %v137_v5 = vld [vmem:[#allocation2 + $0x198] sm:$0xff] }
  0xb6   :  { %10437 = vmatpush3.bf16.msra.mxu1 %v11503_v6  ;;  %10416 = vmatprep.subr.bf16.mxu0 %v11504_v7  ;;  %v161_v6 = vld [vmem:[#allocation2 + $0x258] sm:$0xff]  ;;  %v386_v7 = vcombine.low %v89_v3, %v113_v4 }
  0xb7   :  { %10438 = vmatprep.subr.bf16.mxu1 %v11505_v8  ;;  %v387_v8 = vcombine.high %v89_v3, %v113_v4 }
  0xb9   :  { %10417 = vmatpush3.bf16.msra.mxu0 %v11506_v9  ;;  %v11543_v9 = vld [vmem:[#allocation5 + $0x3b8] sm:$0xff]   ;;  %v403_v13 = vrot.slane %v387_v8, %v12437_v37 }
  0xba   :  { %10439 = vmatpush3.bf16.msra.mxu1 %v11507_v10  ;;  %10418 = vmatprep.subr.bf16.mxu0 %v11508_v11  ;;  %v388_v10 = vcombine.low %v137_v5, %v161_v6  ;;  %v389_v11 = vcombine.high %v137_v5, %v161_v6  ;;  %v11576_v5 = vld [vmem:[#allocation5 + $0x540] sm:$0xff]  }
  0xbb   :  { %10440 = vmatprep.subr.bf16.mxu1 %v11509_v12  ;;  %v396_v12 = vrot.slane %v386_v7, %v12437_v37  ;;  %v11577_v6 = vld [vmem:[#allocation5 + $0x5c0] sm:$0xff]  }
  0xbc   :  { %v410_v15 = vrot.slane %v388_v10, %v12437_v37  ;;  %v417_v16 = vrot.slane %v389_v11, %v12437_v37  ;;  %v11578_v11 = vld [vmem:[#allocation5 + $0x500] sm:$0xff]  }
  0xbd   :  { %10419 = vmatpush3.bf16.msra.mxu0 %v11510_v14  ;;  %v11544_v14 = vld [vmem:[#allocation5 + $0x440] sm:$0xff]  }
  0xbe   :  { %10441 = vmatpush3.bf16.msra.mxu1 %v11511_v18  ;;  %10448 = vmatprep.subr.bf16.mxu0 %v11512_v23  ;;  %v419_v18 = vcombine.high %v396_v12, %v410_v15  ;;  %v421_v19 = vcombine.high %v403_v13, %v417_v16  ;;  %v418_v20 = vcombine.low %v396_v12, %v410_v15  ;;  %v11547_v23 = vld [vmem:[#allocation5 + $0x480] sm:$0xff]  }
  0xbf   :  { %10470 = vmatprep.subr.bf16.mxu1 %v11513_v27  ;;  %v420_v21 = vcombine.low %v403_v13, %v417_v16  ;;  %v11579_v12 = vld [vmem:[#allocation5 + $0x580] sm:$0xff]  }
  0xc0   :  { %7678 = vmatmul.mubr.bf16.vlgmr.msra.gmra.mrb[8].mxu0 %v1246_v36  ;;  %v1251_v24 = vpack.c.bf16 %v419_v18, %v419_v18  ;;  %v1253_v25 = vpack.c.bf16 %v421_v19, %v421_v19  ;;  %v1250_v26 = vpack.c.bf16 %v418_v20, %v418_v20  ;;  %v11556_v36 = vld [vmem:[#allocation5 + $0x458] sm:$0xff]   ;;  %v11581_v18 = vld [vmem:[#allocation5 + $0x5c8] sm:$0xff]  }
  0xc1   :  { %7718 = vmatmul.mubr.bf16.vlgmr.msra.gmra.mrb[8].mxu1 %v1248_v40  ;;  %10449 = vmatpush3.bf16.msra.mxu0 %v11514_v31  ;;  %v1252_v27 = vpack.c.bf16 %v420_v21, %v420_v21  ;;  %v11551_v31 = vld [vmem:[#allocation5 + $0x488] sm:$0xff]   ;;  %v11559_v40 = vld [vmem:[#allocation5 + $0x498] sm:$0xff]   ;;  %v11584_v21 = vld [vmem:[#allocation5 + $0x550] sm:$0xff]  }
  0xc2   :  { %10471 = vmatpush3.bf16.msra.mxu1 %v11515_v34  ;;  %10450 = vmatprep.subr.bf16.mxu0 %v11516_v38  ;;  %v11554_v34 = vld [vmem:[#allocation5 + $0x410] sm:$0xff]   ;;  %v11557_v38 = vld [vmem:[#allocation5 + $0x4d8] sm:$0xff]   ;;  %v11582_v19 = vld [vmem:[#allocation5 + $0x508] sm:$0xff]  }
  0xc3   :  { %10472 = vmatprep.subr.bf16.mxu1 %v11517_v41  ;;  %7757 = vmatprep.mubr.bf16.mxu0 %v1251_v24  ;;  %v11560_v41 = vld [vmem:[#allocation5 + $0x460] sm:$0xff]   ;;  %v11583_v20 = vld [vmem:[#allocation5 + $0x588] sm:$0xff]   ;;  %v11587_v24 = vld [vmem:[#allocation5 + $0x590] sm:$0xff]  }
  0xc4   :  { %7797 = vmatprep.mubr.bf16.mxu1 %v1253_v25  ;;  %v11588_v25 = vld [vmem:[#allocation5 + $0x558] sm:$0xff]  }
  0xc5   :  { %10451 = vmatpush3.bf16.msra.mxu0 %v11518_v42  ;;  %v11561_v42 = vld [vmem:[#allocation5 + $0x4e0] sm:$0xff]  }
  0xc6   :  { %10473 = vmatpush3.bf16.msra.mxu1 %v11519_v43  ;;  %10452 = vmatprep.subr.bf16.mxu0 %v11520_v44  ;;  %v11562_v43 = vld [vmem:[#allocation5 + $0x420] sm:$0xff]  }
  0xc7   :  { %10474 = vmatprep.subr.bf16.mxu1 %v11521_v45  ;;  %v11563_v44 = vld [vmem:[#allocation5 + $0x4a0] sm:$0xff]   ;;  %v11564_v45 = vld [vmem:[#allocation5 + $0x468] sm:$0xff]  }
  0xc9   :  { %10453 = vmatpush3.bf16.msra.mxu0 %v11522_v46  ;;  %v11565_v46 = vld [vmem:[#allocation5 + $0x4e8] sm:$0xff]  }
  0xca   :  { %10475 = vmatpush3.bf16.msra.mxu1 %v11523_v47  ;;  %10454 = vmatprep.subr.bf16.mxu0 %v11524_v48  ;;  %v11566_v47 = vld [vmem:[#allocation5 + $0x428] sm:$0xff]  }
  0xcb   :  { %10476 = vmatprep.subr.bf16.mxu1 %v11525_v49  ;;  %v11567_v48 = vld [vmem:[#allocation5 + $0x4a8] sm:$0xff]   ;;  %v11568_v49 = vld [vmem:[#allocation5 + $0x470] sm:$0xff]  }
  0xcd   :  { %10455 = vmatpush3.bf16.msra.mxu0 %v11526_v50  ;;  %v11569_v50 = vld [vmem:[#allocation5 + $0x4f0] sm:$0xff]  }
  0xce   :  { %10477 = vmatpush3.bf16.msra.mxu1 %v11527_v51  ;;  %10456 = vmatprep.subr.bf16.mxu0 %v11528_v52  ;;  %v11570_v51 = vld [vmem:[#allocation5 + $0x430] sm:$0xff]  }
  0xcf   :  { %10478 = vmatprep.subr.bf16.mxu1 %v11529_v53  ;;  %v11571_v52 = vld [vmem:[#allocation5 + $0x4b0] sm:$0xff]   ;;  %v11572_v53 = vld [vmem:[#allocation5 + $0x478] sm:$0xff]  }
  0xd1   :  { %10457 = vmatpush3.bf16.msra.mxu0 %v11530_v54  ;;  %v11573_v54 = vld [vmem:[#allocation5 + $0x4f8] sm:$0xff]  }
  0xd2   :  { %10479 = vmatpush3.bf16.msra.mxu1 %v11531_v55  ;;  %10458 = vmatprep.subr.bf16.mxu0 %v11532_v56  ;;  %v90_v55 = vld [vmem:[#allocation2 + $0x20] sm:$0xff] }
  0xd3   :  { %10480 = vmatprep.subr.bf16.mxu1 %v11533_v57  ;;  %v114_v56 = vld [vmem:[#allocation2 + $0xe0] sm:$0xff] }
  0xd4   :  { %v138_v57 = vld [vmem:[#allocation2 + $0x1a0] sm:$0xff] }
  0xd5   :  { %10459 = vmatpush3.bf16.msra.mxu0 %v11534_v58  ;;  %v162_v58 = vld [vmem:[#allocation2 + $0x260] sm:$0xff] }
  0xd6   :  { %10481 = vmatpush3.bf16.msra.mxu1 %v11535_v59  ;;  %10460 = vmatprep.subr.bf16.mxu0 %v11536_v60  ;;  %v422_v59 = vcombine.low %v90_v55, %v114_v56  ;;  %v423_v60 = vcombine.high %v90_v55, %v114_v56 }
  0xd7   :  { %10482 = vmatprep.subr.bf16.mxu1 %v11537_v61  ;;  %v11574_v61 = vld [vmem:[#allocation5 + $0x438] sm:$0xff]  }
  0xd9   :  { %10461 = vmatpush3.bf16.msra.mxu0 %v11538_v62  ;;  %v424_v62 = vcombine.low %v138_v57, %v162_v58 }
  0xda   :  { %10483 = vmatpush3.bf16.msra.mxu1 %v11539_v63  ;;  %10462 = vmatprep.subr.bf16.mxu0 %v11540_v0  ;;  %v425_v63 = vcombine.high %v138_v57, %v162_v58  ;;  %v11575_v0 = vld [vmem:[#allocation5 + $0x4b8] sm:$0xff]   ;;  %v11609_v58 = vld [vmem:[#allocation5 + $0x6c0] sm:$0xff]  }
  0xdb   :  { %10484 = vmatprep.subr.bf16.mxu1 %v11541_v1  ;;  %v432_v1 = vrot.slane %v422_v59, %v12437_v37  ;;  %v446_v3 = vrot.slane %v424_v62, %v12437_v37  ;;  %v11610_v62 = vld [vmem:[#allocation5 + $0x600] sm:$0xff]  }
  0xdc   :  { %v453_v4 = vrot.slane %v425_v63, %v12437_v37 }
  0xdd   :  { %10463 = vmatpush3.bf16.msra.mxu0 %v11542_v2  ;;  %v439_v2 = vrot.slane %v423_v60, %v12437_v37  ;;  %v455_v7 = vcombine.high %v432_v1, %v446_v3 }
  0xde   :  { %10485 = vmatpush3.bf16.msra.mxu1 %v11543_v9  ;;  %10492 = vmatprep.subr.bf16.mxu0 %v11544_v14  ;;  %v454_v9 = vcombine.low %v432_v1, %v446_v3  ;;  %v11611_v1 = vld [vmem:[#allocation5 + $0x680] sm:$0xff]  }
  0xdf   :  { %10514 = vmatprep.subr.bf16.mxu1 %v11545_v17  ;;  %v457_v8 = vcombine.high %v439_v2, %v453_v4  ;;  %v456_v10 = vcombine.low %v439_v2, %v453_v4  ;;  %v1255_v13 = vpack.c.bf16 %v455_v7, %v455_v7  ;;  %v11580_v17 = vld [vmem:[#allocation5 + $0x548] sm:$0xff]  }
  0xe0   :  { %7758 = vmatmul.mubr.bf16.vlgmr.msra.gmra.mrb[12].mxu0 %v1250_v26  ;;  %v1254_v15 = vpack.c.bf16 %v454_v9, %v454_v9  ;;  %v11589_v26 = vld [vmem:[#allocation5 + $0x5d8] sm:$0xff]   ;;  %v11612_v4 = vld [vmem:[#allocation5 + $0x648] sm:$0xff]  }
  0xe1   :  { %7798 = vmatmul.mubr.bf16.vlgmr.msra.gmra.mrb[12].mxu1 %v1252_v27  ;;  %10493 = vmatpush3.bf16.msra.mxu0 %v11546_v22  ;;  %v1257_v14 = vpack.c.bf16 %v457_v8, %v457_v8  ;;  %v1256_v16 = vpack.c.bf16 %v456_v10, %v456_v10  ;;  %v11585_v22 = vld [vmem:[#allocation5 + $0x5d0] sm:$0xff]   ;;  %v11590_v27 = vld [vmem:[#allocation5 + $0x518] sm:$0xff]   ;;  %v11613_v7 = vld [vmem:[#allocation5 + $0x6c8] sm:$0xff]  }
  0xe2   :  { %10515 = vmatpush3.bf16.msra.mxu1 %v11547_v23  ;;  %10494 = vmatprep.subr.bf16.mxu0 %v11548_v28  ;;  %v11586_v23 = vld [vmem:[#allocation5 + $0x510] sm:$0xff]   ;;  %v11591_v28 = vld [vmem:[#allocation5 + $0x598] sm:$0xff]   ;;  %v11614_v8 = vld [vmem:[#allocation5 + $0x608] sm:$0xff]  }
  0xe3   :  { %10516 = vmatprep.subr.bf16.mxu1 %v11549_v29  ;;  %7837 = vmatprep.mubr.bf16.mxu0 %v1255_v13  ;;  %v11592_v29 = vld [vmem:[#allocation5 + $0x560] sm:$0xff]   ;;  %v11615_v9 = vld [vmem:[#allocation5 + $0x688] sm:$0xff]   ;;  %v11616_v10 = vld [vmem:[#allocation5 + $0x650] sm:$0xff]  }
  0xe4   :  { %7877 = vmatprep.mubr.bf16.mxu1 %v1257_v14  ;;  %v11619_v13 = vld [vmem:[#allocation5 + $0x690] sm:$0xff]   ;;  %v11620_v14 = vld [vmem:[#allocation5 + $0x658] sm:$0xff]  }
  0xe5   :  { %10495 = vmatpush3.bf16.msra.mxu0 %v11550_v30  ;;  %v11593_v30 = vld [vmem:[#allocation5 + $0x5e0] sm:$0xff]  }
  0xe6   :  { %10517 = vmatpush3.bf16.msra.mxu1 %v11551_v31  ;;  %10496 = vmatprep.subr.bf16.mxu0 %v11552_v32  ;;  %v11594_v31 = vld [vmem:[#allocation5 + $0x520] sm:$0xff]  }
  0xe7   :  { %10518 = vmatprep.subr.bf16.mxu1 %v11553_v33  ;;  %v11595_v32 = vld [vmem:[#allocation5 + $0x5a0] sm:$0xff]   ;;  %v11596_v33 = vld [vmem:[#allocation5 + $0x568] sm:$0xff]  }
  0xe9   :  { %10497 = vmatpush3.bf16.msra.mxu0 %v11554_v34  ;;  %v11597_v34 = vld [vmem:[#allocation5 + $0x5e8] sm:$0xff]  }
  0xea   :  { %10519 = vmatpush3.bf16.msra.mxu1 %v11555_v35  ;;  %10498 = vmatprep.subr.bf16.mxu0 %v11556_v36  ;;  %v11598_v35 = vld [vmem:[#allocation5 + $0x528] sm:$0xff]  }
  0xeb   :  { %10520 = vmatprep.subr.bf16.mxu1 %v11557_v38  ;;  %v11599_v36 = vld [vmem:[#allocation5 + $0x5a8] sm:$0xff]   ;;  %v11600_v38 = vld [vmem:[#allocation5 + $0x570] sm:$0xff]  }
  0xed   :  { %10499 = vmatpush3.bf16.msra.mxu0 %v11558_v39  ;;  %v11601_v39 = vld [vmem:[#allocation5 + $0x5f0] sm:$0xff]  }
  0xee   :  { %10521 = vmatpush3.bf16.msra.mxu1 %v11559_v40  ;;  %10500 = vmatprep.subr.bf16.mxu0 %v11560_v41  ;;  %v11602_v40 = vld [vmem:[#allocation5 + $0x530] sm:$0xff]  }
  0xef   :  { %10522 = vmatprep.subr.bf16.mxu1 %v11561_v42  ;;  %v11603_v41 = vld [vmem:[#allocation5 + $0x5b0] sm:$0xff]   ;;  %v11604_v42 = vld [vmem:[#allocation5 + $0x578] sm:$0xff]  }
  0xf1   :  { %10501 = vmatpush3.bf16.msra.mxu0 %v11562_v43  ;;  %v11605_v43 = vld [vmem:[#allocation5 + $0x5f8] sm:$0xff]  }
  0xf2   :  { %10523 = vmatpush3.bf16.msra.mxu1 %v11563_v44  ;;  %10502 = vmatprep.subr.bf16.mxu0 %v11564_v45  ;;  %v91_v44 = vld [vmem:[#allocation2 + $0x28] sm:$0xff]  ;;  %v11606_v45 = vld [vmem:[#allocation5 + $0x538] sm:$0xff]  }
  0xf3   :  { %10524 = vmatprep.subr.bf16.mxu1 %v11565_v46  ;;  %v115_v46 = vld [vmem:[#allocation2 + $0xe8] sm:$0xff] }
  0xf5   :  { %10503 = vmatpush3.bf16.msra.mxu0 %v11566_v47  ;;  %v139_v47 = vld [vmem:[#allocation2 + $0x1a8] sm:$0xff] }
  0xf6   :  { %10525 = vmatpush3.bf16.msra.mxu1 %v11567_v48  ;;  %10504 = vmatprep.subr.bf16.mxu0 %v11568_v49  ;;  %v163_v48 = vld [vmem:[#allocation2 + $0x268] sm:$0xff]  ;;  %v11607_v49 = vld [vmem:[#allocation5 + $0x5b8] sm:$0xff]  }
  0xf7   :  { %10526 = vmatprep.subr.bf16.mxu1 %v11569_v50  ;;  %v458_v50 = vcombine.low %v91_v44, %v115_v46 }
  0xf9   :  { %10505 = vmatpush3.bf16.msra.mxu0 %v11570_v51  ;;  %v460_v51 = vcombine.low %v139_v47, %v163_v48  ;;  %v468_v55 = vrot.slane %v458_v50, %v12437_v37 }
  0xfa   :  { %10527 = vmatpush3.bf16.msra.mxu1 %v11571_v52  ;;  %10506 = vmatprep.subr.bf16.mxu0 %v11572_v53  ;;  %v459_v52 = vcombine.high %v91_v44, %v115_v46  ;;  %v461_v53 = vcombine.high %v139_v47, %v163_v48  ;;  %v11641_v48 = vld [vmem:[#allocation5 + $0x7c0] sm:$0xff]  }
  0xfb   :  { %10528 = vmatprep.subr.bf16.mxu1 %v11573_v54  ;;  %v11608_v54 = vld [vmem:[#allocation5 + $0x640] sm:$0xff]   ;;  %v482_v56 = vrot.slane %v460_v51, %v12437_v37 }
  0xfc   :  { %v475_v57 = vrot.slane %v459_v52, %v12437_v37  ;;  %v489_v59 = vrot.slane %v461_v53, %v12437_v37  ;;  %v11642_v53 = vld [vmem:[#allocation5 + $0x700] sm:$0xff]  }
  0xfd   :  { %10507 = vmatpush3.bf16.msra.mxu0 %v11574_v61  ;;  %v491_v60 = vcombine.high %v468_v55, %v482_v56  ;;  %v490_v61 = vcombine.low %v468_v55, %v482_v56 }
  0xfe   :  { %10529 = vmatpush3.bf16.msra.mxu1 %v11575_v0  ;;  %10536 = vmatprep.subr.bf16.mxu0 %v11576_v5  ;;  %v493_v63 = vcombine.high %v475_v57, %v489_v59  ;;  %v492_v0 = vcombine.low %v475_v57, %v489_v59  ;;  %v11644_v59 = vld [vmem:[#allocation5 + $0x748] sm:$0xff]  }
  0xff   :  { %10558 = vmatprep.subr.bf16.mxu1 %v11577_v6  ;;  %v1259_v2 = vpack.c.bf16 %v491_v60, %v491_v60  ;;  %v1258_v3 = vpack.c.bf16 %v490_v61, %v490_v61  ;;  %v11645_v60 = vld [vmem:[#allocation5 + $0x7c8] sm:$0xff]  }
 0x100   :  { %7838 = vmatmul.mubr.bf16.vlgmr.msra.gmra.mrb[16].mxu0 %v1254_v15  ;;  %v1261_v5 = vpack.c.bf16 %v493_v63, %v493_v63  ;;  %v1260_v6 = vpack.c.bf16 %v492_v0, %v492_v0  ;;  %v11621_v15 = vld [vmem:[#allocation5 + $0x6d8] sm:$0xff]   ;;  %v11646_v61 = vld [vmem:[#allocation5 + $0x708] sm:$0xff]   ;;  %v11648_v63 = vld [vmem:[#allocation5 + $0x750] sm:$0xff]  }
 0x101   :  { %7878 = vmatmul.mubr.bf16.vlgmr.msra.gmra.mrb[16].mxu1 %v1256_v16  ;;  %10537 = vmatpush3.bf16.msra.mxu0 %v11578_v11  ;;  %v11617_v11 = vld [vmem:[#allocation5 + $0x6d0] sm:$0xff]   ;;  %v11622_v16 = vld [vmem:[#allocation5 + $0x618] sm:$0xff]  }
 0x102   :  { %10559 = vmatpush3.bf16.msra.mxu1 %v11579_v12  ;;  %10538 = vmatprep.subr.bf16.mxu0 %v11580_v17  ;;  %v11618_v12 = vld [vmem:[#allocation5 + $0x610] sm:$0xff]   ;;  %v11623_v17 = vld [vmem:[#allocation5 + $0x698] sm:$0xff]  }
 0x103   :  { %10560 = vmatprep.subr.bf16.mxu1 %v11581_v18  ;;  %7917 = vmatprep.mubr.bf16.mxu0 %v1259_v2  ;;  %v11624_v18 = vld [vmem:[#allocation5 + $0x660] sm:$0xff]   ;;  %v11649_v0 = vld [vmem:[#allocation5 + $0x7d0] sm:$0xff]  }
 0x104   :  { %7957 = vmatprep.mubr.bf16.mxu1 %v1261_v5  ;;  %v11651_v2 = vld [vmem:[#allocation5 + $0x790] sm:$0xff]   ;;  %v11654_v5 = vld [vmem:[#allocation5 + $0x718] sm:$0xff]  }
 0x105   :  { %10539 = vmatpush3.bf16.msra.mxu0 %v11582_v19  ;;  %v11625_v19 = vld [vmem:[#allocation5 + $0x6e0] sm:$0xff]  }
 0x106   :  { %10561 = vmatpush3.bf16.msra.mxu1 %v11583_v20  ;;  %10540 = vmatprep.subr.bf16.mxu0 %v11584_v21  ;;  %v11626_v20 = vld [vmem:[#allocation5 + $0x620] sm:$0xff]  }
 0x107   :  { %10562 = vmatprep.subr.bf16.mxu1 %v11585_v22  ;;  %v11627_v21 = vld [vmem:[#allocation5 + $0x6a0] sm:$0xff]   ;;  %v11628_v22 = vld [vmem:[#allocation5 + $0x668] sm:$0xff]  }
 0x109   :  { %10541 = vmatpush3.bf16.msra.mxu0 %v11586_v23  ;;  %v11629_v23 = vld [vmem:[#allocation5 + $0x6e8] sm:$0xff]  }
 0x10a   :  { %10563 = vmatpush3.bf16.msra.mxu1 %v11587_v24  ;;  %10542 = vmatprep.subr.bf16.mxu0 %v11588_v25  ;;  %v11630_v24 = vld [vmem:[#allocation5 + $0x628] sm:$0xff]  }
 0x10b   :  { %10564 = vmatprep.subr.bf16.mxu1 %v11589_v26  ;;  %v11631_v25 = vld [vmem:[#allocation5 + $0x6a8] sm:$0xff]   ;;  %v11632_v26 = vld [vmem:[#allocation5 + $0x670] sm:$0xff]  }
 0x10d   :  { %10543 = vmatpush3.bf16.msra.mxu0 %v11590_v27  ;;  %v11633_v27 = vld [vmem:[#allocation5 + $0x6f0] sm:$0xff]  }
 0x10e   :  { %10565 = vmatpush3.bf16.msra.mxu1 %v11591_v28  ;;  %10544 = vmatprep.subr.bf16.mxu0 %v11592_v29  ;;  %v11634_v28 = vld [vmem:[#allocation5 + $0x630] sm:$0xff]  }
 0x10f   :  { %10566 = vmatprep.subr.bf16.mxu1 %v11593_v30  ;;  %v11635_v29 = vld [vmem:[#allocation5 + $0x6b0] sm:$0xff]   ;;  %v11636_v30 = vld [vmem:[#allocation5 + $0x678] sm:$0xff]  }
 0x111   :  { %10545 = vmatpush3.bf16.msra.mxu0 %v11594_v31  ;;  %v11637_v31 = vld [vmem:[#allocation5 + $0x6f8] sm:$0xff]  }
 0x112   :  { %10567 = vmatpush3.bf16.msra.mxu1 %v11595_v32  ;;  %10546 = vmatprep.subr.bf16.mxu0 %v11596_v33  ;;  %v11638_v32 = vld [vmem:[#allocation5 + $0x638] sm:$0xff]   ;;  %v92_v33 = vld [vmem:[#allocation2 + $0x30] sm:$0xff] }
 0x113   :  { %10568 = vmatprep.subr.bf16.mxu1 %v11597_v34  ;;  %v116_v34 = vld [vmem:[#allocation2 + $0xf0] sm:$0xff] }
 0x115   :  { %10547 = vmatpush3.bf16.msra.mxu0 %v11598_v35  ;;  %v140_v35 = vld [vmem:[#allocation2 + $0x1b0] sm:$0xff] }
 0x116   :  { %10569 = vmatpush3.bf16.msra.mxu1 %v11599_v36  ;;  %10548 = vmatprep.subr.bf16.mxu0 %v11600_v38  ;;  %v164_v36 = vld [vmem:[#allocation2 + $0x270] sm:$0xff]  ;;  %v494_v38 = vcombine.low %v92_v33, %v116_v34 }
 0x117   :  { %10570 = vmatprep.subr.bf16.mxu1 %v11601_v39  ;;  %v495_v39 = vcombine.high %v92_v33, %v116_v34  ;;  %v11669_v33 = vld [vmem:[#allocation5 + $0x7f8] sm:$0xff]  }
 0x118   :  { %v11670_v34 = vld [vmem:[#allocation5 + $0x738] sm:$0xff]  }
 0x119   :  { %10549 = vmatpush3.bf16.msra.mxu0 %v11602_v40  ;;  %v11639_v40 = vld [vmem:[#allocation5 + $0x6b8] sm:$0xff]   ;;  %v511_v44 = vrot.slane %v495_v39, %v12437_v37 }
 0x11a   :  { %10571 = vmatpush3.bf16.msra.mxu1 %v11603_v41  ;;  %10550 = vmatprep.subr.bf16.mxu0 %v11604_v42  ;;  %v496_v41 = vcombine.low %v140_v35, %v164_v36  ;;  %v497_v42 = vcombine.high %v140_v35, %v164_v36  ;;  %v11671_v35 = vld [vmem:[#allocation5 + $0x7b8] sm:$0xff]  }
 0x11b   :  { %10572 = vmatprep.subr.bf16.mxu1 %v11605_v43  ;;  %v504_v43 = vrot.slane %v494_v38, %v12437_v37  ;;  %v93_v36 = vld [vmem:[#allocation2 + $0x38] sm:$0xff] }
 0x11c   :  { %v518_v46 = vrot.slane %v496_v41, %v12437_v37  ;;  %v525_v47 = vrot.slane %v497_v42, %v12437_v37  ;;  %v117_v38 = vld [vmem:[#allocation2 + $0xf8] sm:$0xff] }
 0x11d   :  { %10551 = vmatpush3.bf16.msra.mxu0 %v11606_v45  ;;  %v11640_v45 = vld [vmem:[#allocation5 + $0x740] sm:$0xff]   ;;  %v141_v39 = vld [vmem:[#allocation2 + $0x1b8] sm:$0xff]  ;;  %v530_v41 = vcombine.low %v93_v36, %v117_v38  ;;  %v531_v42 = vcombine.high %v93_v36, %v117_v38 }
 0x11e   :  { %10573 = vmatpush3.bf16.msra.mxu1 %v11607_v49  ;;  %10580 = vmatprep.subr.bf16.mxu0 %v11608_v54  ;;  %v527_v49 = vcombine.high %v504_v43, %v518_v46  ;;  %v529_v50 = vcombine.high %v511_v44, %v525_v47  ;;  %v526_v51 = vcombine.low %v504_v43, %v518_v46  ;;  %v11643_v54 = vld [vmem:[#allocation5 + $0x780] sm:$0xff]   ;;  %v11703_v36 = vld [vmem:[#allocation5 + $0x8b8] sm:$0xff]  }
 0x11f   :  { %10602 = vmatprep.subr.bf16.mxu1 %v11609_v58  ;;  %v528_v52 = vcombine.low %v511_v44, %v525_v47  ;;  %v540_v46 = vrot.slane %v530_v41, %v12437_v37  ;;  %v547_v47 = vrot.slane %v531_v42, %v12437_v37  ;;  %v94_v38 = vld [vmem:[#allocation2 + $0x40] sm:$0xff] }
 0x120   :  { %7918 = vmatmul.mubr.bf16.vlgmr.msra.gmra.mrb[20].mxu0 %v1258_v3  ;;  %v1263_v55 = vpack.c.bf16 %v527_v49, %v527_v49  ;;  %v1265_v56 = vpack.c.bf16 %v529_v50, %v529_v50  ;;  %v1262_v57 = vpack.c.bf16 %v526_v51, %v526_v51  ;;  %v11652_v3 = vld [vmem:[#allocation5 + $0x758] sm:$0xff]   ;;  %v166_v41 = vld [vmem:[#allocation2 + $0x280] sm:$0xff] }
 0x121   :  { %7958 = vmatmul.mubr.bf16.vlgmr.msra.gmra.mrb[20].mxu1 %v1260_v6  ;;  %10581 = vmatpush3.bf16.msra.mxu0 %v11610_v62  ;;  %v1264_v58 = vpack.c.bf16 %v528_v52, %v528_v52  ;;  %v11647_v62 = vld [vmem:[#allocation5 + $0x788] sm:$0xff]   ;;  %v11655_v6 = vld [vmem:[#allocation5 + $0x798] sm:$0xff]  }
 0x122   :  { %10603 = vmatpush3.bf16.msra.mxu1 %v11611_v1  ;;  %10582 = vmatprep.subr.bf16.mxu0 %v11612_v4  ;;  %v11650_v1 = vld [vmem:[#allocation5 + $0x710] sm:$0xff]   ;;  %v11653_v4 = vld [vmem:[#allocation5 + $0x7d8] sm:$0xff]  }
 0x123   :  { %10604 = vmatprep.subr.bf16.mxu1 %v11613_v7  ;;  %7997 = vmatprep.mubr.bf16.mxu0 %v1263_v55  ;;  %v11656_v7 = vld [vmem:[#allocation5 + $0x760] sm:$0xff]  }
 0x124   :  { %8037 = vmatprep.mubr.bf16.mxu1 %v1265_v56  ;;  %v11675_v56 = vld [vmem:[#allocation5 + $0x880] sm:$0xff]  }
 0x125   :  { %10583 = vmatpush3.bf16.msra.mxu0 %v11614_v8  ;;  %v11657_v8 = vld [vmem:[#allocation5 + $0x7e0] sm:$0xff]  }
 0x126   :  { %10605 = vmatpush3.bf16.msra.mxu1 %v11615_v9  ;;  %10584 = vmatprep.subr.bf16.mxu0 %v11616_v10  ;;  %v11658_v9 = vld [vmem:[#allocation5 + $0x720] sm:$0xff]  }
 0x127   :  { %10606 = vmatprep.subr.bf16.mxu1 %v11617_v11  ;;  %v11659_v10 = vld [vmem:[#allocation5 + $0x7a0] sm:$0xff]  }
 0x129   :  { %10585 = vmatpush3.bf16.msra.mxu0 %v11618_v12 }
 0x12a   :  { %10607 = vmatpush3.bf16.msra.mxu1 %v11619_v13  ;;  %10586 = vmatprep.subr.bf16.mxu0 %v11620_v14  ;;  %v9538_v13 = vld [vmem:[#allocation7] ss:$0 sm:$0xff] }
 0x12b   :  { %10608 = vmatprep.subr.bf16.mxu1 %v11621_v15 }
 0x12d   :  { %10587 = vmatpush3.bf16.msra.mxu0 %v11622_v16  ;;  %v11660_v16 = vld [vmem:[#allocation5 + $0x768] sm:$0xff]  }
 0x12e   :  { %10609 = vmatpush3.bf16.msra.mxu1 %v11623_v17  ;;  %10588 = vmatprep.subr.bf16.mxu0 %v11624_v18 }
 0x12f   :  { %10610 = vmatprep.subr.bf16.mxu1 %v11625_v19 }
 0x131   :  { %10589 = vmatpush3.bf16.msra.mxu0 %v11626_v20 }
 0x132   :  { %10611 = vmatpush3.bf16.msra.mxu1 %v11627_v21  ;;  %10590 = vmatprep.subr.bf16.mxu0 %v11628_v22  ;;  %v11661_v21 = vld [vmem:[#allocation5 + $0x7e8] sm:$0xff]  }
 0x133   :  { %10612 = vmatprep.subr.bf16.mxu1 %v11629_v23 }
 0x135   :  { %10591 = vmatpush3.bf16.msra.mxu0 %v11630_v24  ;;  %v11662_v24 = vld [vmem:[#allocation5 + $0x728] sm:$0xff]  }
 0x136   :  { %10613 = vmatpush3.bf16.msra.mxu1 %v11631_v25  ;;  %10592 = vmatprep.subr.bf16.mxu0 %v11632_v26  ;;  %v11663_v26 = vld [vmem:[#allocation5 + $0x7a8] sm:$0xff]  }
 0x137   :  { %10614 = vmatprep.subr.bf16.mxu1 %v11633_v27 }
 0x139   :  { %10593 = vmatpush3.bf16.msra.mxu0 %v11634_v28  ;;  %v11664_v28 = vld [vmem:[#allocation5 + $0x770] sm:$0xff]  }
 0x13a   :  { %10615 = vmatpush3.bf16.msra.mxu1 %v11635_v29  ;;  %10594 = vmatprep.subr.bf16.mxu0 %v11636_v30  ;;  %v11665_v29 = vld [vmem:[#allocation5 + $0x7f0] sm:$0xff]  }
 0x13b   :  { %10616 = vmatprep.subr.bf16.mxu1 %v11637_v31  ;;  %v11666_v30 = vld [vmem:[#allocation5 + $0x730] sm:$0xff]  }
 0x13c   :  { %v11667_v31 = vld [vmem:[#allocation5 + $0x7b0] sm:$0xff]  }
 0x13d   :  { %10595 = vmatpush3.bf16.msra.mxu0 %v11638_v32  ;;  %v11668_v32 = vld [vmem:[#allocation5 + $0x778] sm:$0xff]  }
 0x13e   :  { %10617 = vmatpush3.bf16.msra.mxu1 %v11639_v40  ;;  %10624 = vmatprep.subr.bf16.mxu0 %v11640_v45  ;;  %v165_v40 = vld [vmem:[#allocation2 + $0x278] sm:$0xff]  ;;  %v11672_v45 = vld [vmem:[#allocation5 + $0x840] sm:$0xff]  }
 0x13f   :  { %10646 = vmatprep.subr.bf16.mxu1 %v11641_v48  ;;  %v532_v43 = vcombine.low %v141_v39, %v165_v40  ;;  %v533_v44 = vcombine.high %v141_v39, %v165_v40  ;;  %v11673_v48 = vld [vmem:[#allocation5 + $0x8c0] sm:$0xff]  }
 0x140   :  { %7998 = vmatmul.mubr.bf16.vlgmr.msra.gmra.mrb[24].mxu0 %v1262_v57  ;;  %v118_v39 = vld [vmem:[#allocation2 + $0x100] sm:$0xff] }
 0x141   :  { %8038 = vmatmul.mubr.bf16.vlgmr.msra.gmra.mrb[24].mxu1 %v1264_v58  ;;  %10625 = vmatpush3.bf16.msra.mxu0 %v11642_v53  ;;  %v554_v49 = vrot.slane %v532_v43, %v12437_v37  ;;  %v561_v50 = vrot.slane %v533_v44, %v12437_v37  ;;  %v142_v40 = vld [vmem:[#allocation2 + $0x1c0] sm:$0xff]  ;;  %v566_v42 = vcombine.low %v94_v38, %v118_v39 }
 0x142   :  { %10647 = vmatpush3.bf16.msra.mxu1 %v11643_v54  ;;  %10626 = vmatprep.subr.bf16.mxu0 %v11644_v59  ;;  %v11674_v54 = vld [vmem:[#allocation5 + $0x800] sm:$0xff]   ;;  %v567_v43 = vcombine.high %v94_v38, %v118_v39  ;;  %v568_v44 = vcombine.low %v142_v40, %v166_v41  ;;  %v11734_v38 = vld [vmem:[#allocation5 + $0x938] sm:$0xff]   ;;  %v119_v39 = vld [vmem:[#allocation2 + $0x108] sm:$0xff] }
 0x143   :  { %10648 = vmatprep.subr.bf16.mxu1 %v11645_v60  ;;  %v563_v51 = vcombine.high %v540_v46, %v554_v49  ;;  %v565_v52 = vcombine.high %v547_v47, %v561_v50  ;;  %v562_v53 = vcombine.low %v540_v46, %v554_v49  ;;  %v564_v55 = vcombine.low %v547_v47, %v561_v50  ;;  %v11676_v60 = vld [vmem:[#allocation5 + $0x848] sm:$0xff]   ;;  %v11704_v46 = vld [vmem:[#allocation5 + $0x940] sm:$0xff]  }
 0x144   :  { %v576_v47 = vrot.slane %v566_v42, %v12437_v37  ;;  %v11705_v49 = vld [vmem:[#allocation5 + $0x9c0] sm:$0xff]   ;;  %v590_v50 = vrot.slane %v568_v44, %v12437_v37  ;;  %v11735_v42 = vld [vmem:[#allocation5 + $0x9b8] sm:$0xff]  }
 0x145   :  { %10627 = vmatpush3.bf16.msra.mxu0 %v11646_v61  ;;  %v1267_v57 = vpack.c.bf16 %v563_v51, %v563_v51  ;;  %v1269_v58 = vpack.c.bf16 %v565_v52, %v565_v52  ;;  %v1266_v59 = vpack.c.bf16 %v562_v53, %v562_v53  ;;  %v1268_v61 = vpack.c.bf16 %v564_v55, %v564_v55  ;;  %v11706_v55 = vld [vmem:[#allocation5 + $0x900] sm:$0xff]  }
 0x146   :  { %10649 = vmatpush3.bf16.msra.mxu1 %v11647_v62  ;;  %10628 = vmatprep.subr.bf16.mxu0 %v11648_v63  ;;  %v11677_v62 = vld [vmem:[#allocation5 + $0x8c8] sm:$0xff]   ;;  %v599_v52 = vcombine.high %v576_v47, %v590_v50 }
 0x147   :  { %10650 = vmatprep.subr.bf16.mxu1 %v11649_v0  ;;  %8077 = vmatprep.mubr.bf16.mxu0 %v1267_v57  ;;  %v11678_v63 = vld [vmem:[#allocation5 + $0x808] sm:$0xff]   ;;  %v11707_v57 = vld [vmem:[#allocation5 + $0x980] sm:$0xff]  }
 0x148   :  { %8117 = vmatprep.mubr.bf16.mxu1 %v1269_v58  ;;  %v11679_v0 = vld [vmem:[#allocation5 + $0x888] sm:$0xff]   ;;  %v1271_v58 = vpack.c.bf16 %v599_v52, %v599_v52 }
 0x149   :  { %10629 = vmatpush3.bf16.msra.mxu0 %v11650_v1  ;;  %v11680_v1 = vld [vmem:[#allocation5 + $0x850] sm:$0xff]  }
 0x14a   :  { %10651 = vmatpush3.bf16.msra.mxu1 %v11651_v2  ;;  %10630 = vmatprep.subr.bf16.mxu0 %v11652_v3  ;;  %v11681_v2 = vld [vmem:[#allocation5 + $0x8d0] sm:$0xff]  }
 0x14b   :  { %10652 = vmatprep.subr.bf16.mxu1 %v11653_v4  ;;  %v11682_v3 = vld [vmem:[#allocation5 + $0x810] sm:$0xff]  }
 0x14c   :  { %v11683_v4 = vld [vmem:[#allocation5 + $0x890] sm:$0xff]  }
 0x14d   :  { %10631 = vmatpush3.bf16.msra.mxu0 %v11654_v5  ;;  %v11684_v5 = vld [vmem:[#allocation5 + $0x858] sm:$0xff]  }
 0x14e   :  { %10653 = vmatpush3.bf16.msra.mxu1 %v11655_v6  ;;  %10632 = vmatprep.subr.bf16.mxu0 %v11656_v7  ;;  %v11685_v6 = vld [vmem:[#allocation5 + $0x8d8] sm:$0xff]  }
 0x14f   :  { %10654 = vmatprep.subr.bf16.mxu1 %v11657_v8  ;;  %v11686_v7 = vld [vmem:[#allocation5 + $0x818] sm:$0xff]  }
 0x150   :  { %v11687_v8 = vld [vmem:[#allocation5 + $0x898] sm:$0xff]  }
 0x151   :  { %10633 = vmatpush3.bf16.msra.mxu0 %v11658_v9  ;;  %v11688_v9 = vld [vmem:[#allocation5 + $0x860] sm:$0xff]  }
 0x152   :  { %10655 = vmatpush3.bf16.msra.mxu1 %v11659_v10  ;;  %10634 = vmatprep.subr.bf16.mxu0 %v11660_v16  ;;  %v11689_v10 = vld [vmem:[#allocation5 + $0x8e0] sm:$0xff]  }
 0x153   :  { %v10332_v11 = vpop.f32.mrb[0].mxu0  ;;  %10656 = vmatprep.subr.bf16.mxu1 %v11661_v21  ;;  %v11691_v16 = vld [vmem:[#allocation5 + $0x8a0] sm:$0xff]  }
 0x154   :  { %v10354_v12 = vpop.f32.mrb[0].mxu1  ;;  %v10333_v14 = vpop.f32.mrb[1].mxu0 }
 0x155   :  { %v10355_v15 = vpop.f32.mrb[1].mxu1  ;;  %v10334_v17 = vadd.f32 %v10333_v14, %v10332_v11  ;;  %v10335_v19 = vpop.f32.mrb[2].mxu0  ;;  %10635 = vmatpush3.bf16.msra.mxu0 %v11662_v24 }
 0x156   :  { %v10356_v18 = vadd.f32 %v10355_v15, %v10354_v12  ;;  %v10357_v20 = vpop.f32.mrb[2].mxu1  ;;  %v10336_v22 = vpop.f32.mrb[3].mxu0  ;;  %10657 = vmatpush3.bf16.msra.mxu1 %v11663_v26  ;;  %10636 = vmatprep.subr.bf16.mxu0 %v11664_v28 }
 0x157   :  { %v7520_v23 = vadd.f32 %v10334_v17, %v9538_v13  ;;  %v10358_v25 = vpop.f32.mrb[3].mxu1  ;;  %10658 = vmatprep.subr.bf16.mxu1 %v11665_v29  ;;  %v11690_v13 = vld [vmem:[#allocation5 + $0x820] sm:$0xff]   ;;  %v11692_v20 = vld [vmem:[#allocation5 + $0x868] sm:$0xff]  }
 0x158   :  { %v11694_v25 = vld [vmem:[#allocation5 + $0x828] sm:$0xff]  }
 0x159   :  { %v12467_v27 = vadd.f32 %v10356_v18, %v7520_v23  ;;  %10637 = vmatpush3.bf16.msra.mxu0 %v11666_v30  ;;  %v11693_v23 = vld [vmem:[#allocation5 + $0x8e8] sm:$0xff]   ;;  %v11696_v30 = vld [vmem:[#allocation5 + $0x870] sm:$0xff]  }
 0x15a   :  { %10659 = vmatpush3.bf16.msra.mxu1 %v11667_v31  ;;  %10638 = vmatprep.subr.bf16.mxu0 %v11668_v32  ;;  %v11695_v29 = vld [vmem:[#allocation5 + $0x8a8] sm:$0xff]   ;;  %v11697_v31 = vld [vmem:[#allocation5 + $0x8f0] sm:$0xff]  }
 0x15b   :  { %10660 = vmatprep.subr.bf16.mxu1 %v11669_v33  ;;  %v11698_v32 = vld [vmem:[#allocation5 + $0x830] sm:$0xff]  }
 0x15c   :  { %v11699_v33 = vld [vmem:[#allocation5 + $0x8b0] sm:$0xff]  }
 0x15d   :  { %10639 = vmatpush3.bf16.msra.mxu0 %v11670_v34  ;;  %v11700_v34 = vld [vmem:[#allocation5 + $0x878] sm:$0xff]  }
 0x15e   :  { %10661 = vmatpush3.bf16.msra.mxu1 %v11671_v35  ;;  %10668 = vmatprep.subr.bf16.mxu0 %v11672_v45  ;;  %v11702_v35 = vld [vmem:[#allocation5 + $0x838] sm:$0xff]   ;;  %v569_v45 = vcombine.high %v142_v40, %v166_v41  ;;  %v143_v40 = vld [vmem:[#allocation2 + $0x1c8] sm:$0xff] }
 0x15f   :  { %10690 = vmatprep.subr.bf16.mxu1 %v11673_v48  ;;  %v583_v48 = vrot.slane %v567_v43, %v12437_v37  ;;  %v167_v41 = vld [vmem:[#allocation2 + $0x288] sm:$0xff] }
 0x160   :  { %8078 = vmatmul.mubr.bf16.vlgmr.msra.gmra.mrb[28].mxu0 %v1266_v59  ;;  %v597_v51 = vrot.slane %v569_v45, %v12437_v37  ;;  %v604_v44 = vcombine.low %v143_v40, %v167_v41 }
 0x161   :  { %8118 = vmatmul.mubr.bf16.vlgmr.msra.gmra.mrb[28].mxu1 %v1268_v61  ;;  %10669 = vmatpush3.bf16.msra.mxu0 %v11674_v54  ;;  %v598_v54 = vcombine.low %v576_v47, %v590_v50  ;;  %v11708_v61 = vld [vmem:[#allocation5 + $0x948] sm:$0xff]   ;;  %v11736_v47 = vld [vmem:[#allocation5 + $0xa40] sm:$0xff]  }
 0x162   :  { %10691 = vmatpush3.bf16.msra.mxu1 %v11675_v56  ;;  %10670 = vmatprep.subr.bf16.mxu0 %v11676_v60  ;;  %v601_v53 = vcombine.high %v583_v48, %v597_v51  ;;  %v600_v56 = vcombine.low %v583_v48, %v597_v51  ;;  %v11737_v51 = vld [vmem:[#allocation5 + $0xac0] sm:$0xff]  }
 0x163   :  { %10692 = vmatprep.subr.bf16.mxu1 %v11677_v62  ;;  %v1270_v60 = vpack.c.bf16 %v598_v54, %v598_v54  ;;  %8157 = vmatprep.mubr.bf16.mxu0 %v1271_v58  ;;  %v11739_v58 = vld [vmem:[#allocation5 + $0xa80] sm:$0xff]  }
 0x164   :  { %v1273_v59 = vpack.c.bf16 %v601_v53, %v601_v53  ;;  %v1272_v62 = vpack.c.bf16 %v600_v56, %v600_v56 }
 0x165   :  { %10671 = vmatpush3.bf16.msra.mxu0 %v11678_v63  ;;  %v11709_v63 = vld [vmem:[#allocation5 + $0x9c8] sm:$0xff]  }
 0x166   :  { %10693 = vmatpush3.bf16.msra.mxu1 %v11679_v0  ;;  %10672 = vmatprep.subr.bf16.mxu0 %v11680_v1  ;;  %v11710_v0 = vld [vmem:[#allocation5 + $0x908] sm:$0xff]  }
 0x167   :  { %10694 = vmatprep.subr.bf16.mxu1 %v11681_v2  ;;  %8197 = vmatprep.mubr.bf16.mxu1 %v1273_v59  ;;  %v11711_v1 = vld [vmem:[#allocation5 + $0x988] sm:$0xff]   ;;  %v11712_v2 = vld [vmem:[#allocation5 + $0x950] sm:$0xff]  }
 0x169   :  { %10673 = vmatpush3.bf16.msra.mxu0 %v11682_v3  ;;  %v11713_v3 = vld [vmem:[#allocation5 + $0x9d0] sm:$0xff]  }
 0x16a   :  { %10695 = vmatpush3.bf16.msra.mxu1 %v11683_v4  ;;  %10674 = vmatprep.subr.bf16.mxu0 %v11684_v5  ;;  %v11714_v4 = vld [vmem:[#allocation5 + $0x910] sm:$0xff]  }
 0x16b   :  { %10696 = vmatprep.subr.bf16.mxu1 %v11685_v6  ;;  %v11715_v5 = vld [vmem:[#allocation5 + $0x990] sm:$0xff]   ;;  %v11716_v6 = vld [vmem:[#allocation5 + $0x958] sm:$0xff]  }
 0x16d   :  { %10675 = vmatpush3.bf16.msra.mxu0 %v11686_v7  ;;  %v11717_v7 = vld [vmem:[#allocation5 + $0x9d8] sm:$0xff]  }
 0x16e   :  { %10697 = vmatpush3.bf16.msra.mxu1 %v11687_v8  ;;  %10676 = vmatprep.subr.bf16.mxu0 %v11688_v9  ;;  %v11718_v8 = vld [vmem:[#allocation5 + $0x918] sm:$0xff]  }
 0x16f   :  { %10698 = vmatprep.subr.bf16.mxu1 %v11689_v10  ;;  %v11719_v9 = vld [vmem:[#allocation5 + $0x998] sm:$0xff]  }
 0x171   :  { %10677 = vmatpush3.bf16.msra.mxu0 %v11690_v13 }
 0x172   :  { %10699 = vmatpush3.bf16.msra.mxu1 %v11691_v16  ;;  %10678 = vmatprep.subr.bf16.mxu0 %v11692_v20  ;;  %v11723_v16 = vld [vmem:[#allocation5 + $0x9a0] sm:$0xff]  }
 0x173   :  { %v10376_v11 = vpop.f32.mrb[4].mxu0  ;;  %10700 = vmatprep.subr.bf16.mxu1 %v11693_v23  ;;  %v11724_v23 = vld [vmem:[#allocation5 + $0x968] sm:$0xff]  }
 0x174   :  { %v10398_v12 = vpop.f32.mrb[4].mxu1  ;;  %v10377_v14 = vpop.f32.mrb[5].mxu0 }
 0x175   :  { %v10399_v15 = vpop.f32.mrb[5].mxu1  ;;  %v10378_v17 = vadd.f32 %v10377_v14, %v10376_v11  ;;  %v10379_v19 = vpop.f32.mrb[6].mxu0  ;;  %10679 = vmatpush3.bf16.msra.mxu0 %v11694_v25  ;;  %v11720_v11 = vld [vmem:[#allocation5 + $0x960] sm:$0xff]   ;;  %v11725_v25 = vld [vmem:[#allocation5 + $0x9e8] sm:$0xff]  }
 0x176   :  { %v10400_v18 = vadd.f32 %v10399_v15, %v10398_v12  ;;  %v10401_v21 = vpop.f32.mrb[6].mxu1  ;;  %v10380_v24 = vpop.f32.mrb[7].mxu0  ;;  %10701 = vmatpush3.bf16.msra.mxu1 %v11695_v29  ;;  %10680 = vmatprep.subr.bf16.mxu0 %v11696_v30  ;;  %v11721_v12 = vld [vmem:[#allocation5 + $0x9e0] sm:$0xff]   ;;  %v11726_v30 = vld [vmem:[#allocation5 + $0x928] sm:$0xff]  }
 0x177   :  { %v7600_v22 = vadd.f32 %v10378_v17, %v12467_v27  ;;  %v10402_v26 = vpop.f32.mrb[7].mxu1  ;;  %10702 = vmatprep.subr.bf16.mxu1 %v11697_v31  ;;  %v11701_v27 = vld [vmem:[#allocation5 + $0x8f8] sm:$0xff]   ;;  %v11722_v15 = vld [vmem:[#allocation5 + $0x920] sm:$0xff]   ;;  %v11727_v31 = vld [vmem:[#allocation5 + $0x9a8] sm:$0xff]  }
 0x179   :  { %v12474_v28 = vadd.f32 %v10400_v18, %v7600_v22  ;;  %10681 = vmatpush3.bf16.msra.mxu0 %v11698_v32  ;;  %v11728_v32 = vld [vmem:[#allocation5 + $0x970] sm:$0xff]  }
 0x17a   :  { %10703 = vmatpush3.bf16.msra.mxu1 %v11699_v33  ;;  %10682 = vmatprep.subr.bf16.mxu0 %v11700_v34  ;;  %v11729_v33 = vld [vmem:[#allocation5 + $0x9f0] sm:$0xff]  }
 0x17b   :  { %10704 = vmatprep.subr.bf16.mxu1 %v11701_v27  ;;  %v11730_v34 = vld [vmem:[#allocation5 + $0x930] sm:$0xff]  }
 0x17c   :  { %v11731_v27 = vld [vmem:[#allocation5 + $0x9b0] sm:$0xff]  }
 0x17d   :  { %10683 = vmatpush3.bf16.msra.mxu0 %v11702_v35  ;;  %v11733_v35 = vld [vmem:[#allocation5 + $0x9f8] sm:$0xff]  }
 0x17e   :  { %10705 = vmatpush3.bf16.msra.mxu1 %v11703_v36  ;;  %10712 = vmatprep.subr.bf16.mxu0 %v11704_v46  ;;  %v95_v36 = vld [vmem:[#allocation2 + $0x48] sm:$0xff]  ;;  %v605_v46 = vcombine.high %v143_v40, %v167_v41  ;;  %v120_v40 = vld [vmem:[#allocation2 + $0x110] sm:$0xff] }
 0x17f   :  { %10734 = vmatprep.subr.bf16.mxu1 %v11705_v49  ;;  %v602_v43 = vcombine.low %v95_v36, %v119_v39  ;;  %v603_v45 = vcombine.high %v95_v36, %v119_v39  ;;  %v626_v49 = vrot.slane %v604_v44, %v12437_v37  ;;  %v11764_v36 = vld [vmem:[#allocation5 + $0xa78] sm:$0xff]   ;;  %v96_v39 = vld [vmem:[#allocation2 + $0x50] sm:$0xff] }
 0x180   :  { %8158 = vmatmul.mubr.bf16.vlgmr.msra.gmra.mrb[32].mxu0 %v1270_v60  ;;  %v633_v52 = vrot.slane %v605_v46, %v12437_v37  ;;  %v144_v41 = vld [vmem:[#allocation2 + $0x1d0] sm:$0xff]  ;;  %v639_v44 = vcombine.high %v96_v39, %v120_v40 }
 0x181   :  { %8198 = vmatmul.mubr.bf16.vlgmr.msra.gmra.mrb[32].mxu1 %v1272_v62  ;;  %10713 = vmatpush3.bf16.msra.mxu0 %v11706_v55  ;;  %v612_v48 = vrot.slane %v602_v43, %v12437_v37  ;;  %v619_v50 = vrot.slane %v603_v45, %v12437_v37  ;;  %v11738_v55 = vld [vmem:[#allocation5 + $0xa00] sm:$0xff]   ;;  %v638_v43 = vcombine.low %v96_v39, %v120_v40  ;;  %v11767_v45 = vld [vmem:[#allocation5 + $0xab8] sm:$0xff]  }
 0x182   :  { %10735 = vmatpush3.bf16.msra.mxu1 %v11707_v57  ;;  %10714 = vmatprep.subr.bf16.mxu0 %v11708_v61  ;;  %v11740_v61 = vld [vmem:[#allocation5 + $0xa48] sm:$0xff]   ;;  %v11798_v39 = vld [vmem:[#allocation5 + $0xb38] sm:$0xff]  }
 0x183   :  { %10736 = vmatprep.subr.bf16.mxu1 %v11709_v63  ;;  %v635_v53 = vcombine.high %v612_v48, %v626_v49  ;;  %v634_v54 = vcombine.low %v612_v48, %v626_v49  ;;  %v637_v56 = vcombine.high %v619_v50, %v633_v52  ;;  %v636_v57 = vcombine.low %v619_v50, %v633_v52  ;;  %v11768_v50 = vld [vmem:[#allocation5 + $0xb40] sm:$0xff]   ;;  %v11799_v40 = vld [vmem:[#allocation5 + $0xbb8] sm:$0xff]  }
 0x184   :  { %v648_v48 = vrot.slane %v638_v43, %v12437_v37  ;;  %v655_v49 = vrot.slane %v639_v44, %v12437_v37  ;;  %v145_v43 = vld [vmem:[#allocation2 + $0x1d8] sm:$0xff] }
 0x185   :  { %10715 = vmatpush3.bf16.msra.mxu0 %v11710_v0  ;;  %v1275_v59 = vpack.c.bf16 %v635_v53, %v635_v53  ;;  %v1274_v60 = vpack.c.bf16 %v634_v54, %v634_v54  ;;  %v1277_v62 = vpack.c.bf16 %v637_v56, %v637_v56  ;;  %v1276_v63 = vpack.c.bf16 %v636_v57, %v636_v57  ;;  %v11741_v0 = vld [vmem:[#allocation5 + $0xac8] sm:$0xff]   ;;  %v11769_v53 = vld [vmem:[#allocation5 + $0xbc0] sm:$0xff]   ;;  %v169_v44 = vld [vmem:[#allocation2 + $0x298] sm:$0xff] }
 0x186   :  { %10737 = vmatpush3.bf16.msra.mxu1 %v11711_v1  ;;  %10716 = vmatprep.subr.bf16.mxu0 %v11712_v2  ;;  %v11742_v1 = vld [vmem:[#allocation5 + $0xa08] sm:$0xff]  }
 0x187   :  { %10738 = vmatprep.subr.bf16.mxu1 %v11713_v3  ;;  %8237 = vmatprep.mubr.bf16.mxu0 %v1275_v59  ;;  %v11743_v2 = vld [vmem:[#allocation5 + $0xa88] sm:$0xff]   ;;  %v11744_v3 = vld [vmem:[#allocation5 + $0xa50] sm:$0xff]   ;;  %v11771_v59 = vld [vmem:[#allocation5 + $0xb80] sm:$0xff]  }
 0x188   :  { %8277 = vmatprep.mubr.bf16.mxu1 %v1277_v62 }
 0x189   :  { %10717 = vmatpush3.bf16.msra.mxu0 %v11714_v4  ;;  %v11745_v4 = vld [vmem:[#allocation5 + $0xad0] sm:$0xff]  }
 0x18a   :  { %10739 = vmatpush3.bf16.msra.mxu1 %v11715_v5  ;;  %10718 = vmatprep.subr.bf16.mxu0 %v11716_v6  ;;  %v11746_v5 = vld [vmem:[#allocation5 + $0xa10] sm:$0xff]  }
 0x18b   :  { %10740 = vmatprep.subr.bf16.mxu1 %v11717_v7  ;;  %v11747_v6 = vld [vmem:[#allocation5 + $0xa90] sm:$0xff]   ;;  %v11748_v7 = vld [vmem:[#allocation5 + $0xa58] sm:$0xff]  }
 0x18d   :  { %10719 = vmatpush3.bf16.msra.mxu0 %v11718_v8  ;;  %v11749_v8 = vld [vmem:[#allocation5 + $0xad8] sm:$0xff]  }
 0x18e   :  { %10741 = vmatpush3.bf16.msra.mxu1 %v11719_v9  ;;  %10720 = vmatprep.subr.bf16.mxu0 %v11720_v11  ;;  %v11750_v9 = vld [vmem:[#allocation5 + $0xa18] sm:$0xff]   ;;  %v11752_v11 = vld [vmem:[#allocation5 + $0xa60] sm:$0xff]  }
 0x18f   :  { %10742 = vmatprep.subr.bf16.mxu1 %v11721_v12  ;;  %v11753_v12 = vld [vmem:[#allocation5 + $0xae0] sm:$0xff]  }
 0x191   :  { %10721 = vmatpush3.bf16.msra.mxu0 %v11722_v15 }
 0x192   :  { %10743 = vmatpush3.bf16.msra.mxu1 %v11723_v16  ;;  %10722 = vmatprep.subr.bf16.mxu0 %v11724_v23  ;;  %v11754_v16 = vld [vmem:[#allocation5 + $0xa20] sm:$0xff]  }
 0x193   :  { %v10420_v10 = vpop.f32.mrb[8].mxu0  ;;  %10744 = vmatprep.subr.bf16.mxu1 %v11725_v25  ;;  %v11757_v25 = vld [vmem:[#allocation5 + $0xae8] sm:$0xff]  }
 0x194   :  { %v10442_v13 = vpop.f32.mrb[8].mxu1  ;;  %v10421_v14 = vpop.f32.mrb[9].mxu0 }
 0x195   :  { %v10422_v17 = vadd.f32 %v10421_v14, %v10420_v10  ;;  %v10443_v18 = vpop.f32.mrb[9].mxu1  ;;  %v10423_v20 = vpop.f32.mrb[10].mxu0  ;;  %10723 = vmatpush3.bf16.msra.mxu0 %v11726_v30  ;;  %v11751_v10 = vld [vmem:[#allocation5 + $0xa98] sm:$0xff]  }
 0x196   :  { %v10444_v19 = vadd.f32 %v10443_v18, %v10442_v13  ;;  %v10445_v21 = vpop.f32.mrb[10].mxu1  ;;  %v10424_v24 = vpop.f32.mrb[11].mxu0  ;;  %10745 = vmatpush3.bf16.msra.mxu1 %v11727_v31  ;;  %10724 = vmatprep.subr.bf16.mxu0 %v11728_v32 }
 0x197   :  { %v7680_v22 = vadd.f32 %v10422_v17, %v12474_v28  ;;  %v10446_v26 = vpop.f32.mrb[11].mxu1  ;;  %v11732_v28 = vld [vmem:[#allocation5 + $0x978] sm:$0xff]   ;;  %10746 = vmatprep.subr.bf16.mxu1 %v11729_v33  ;;  %v11756_v21 = vld [vmem:[#allocation5 + $0xa68] sm:$0xff]  }
 0x198   :  { %v11758_v26 = vld [vmem:[#allocation5 + $0xa28] sm:$0xff]  }
 0x199   :  { %v12481_v29 = vadd.f32 %v10444_v19, %v7680_v22  ;;  %10725 = vmatpush3.bf16.msra.mxu0 %v11730_v34  ;;  %v11755_v19 = vld [vmem:[#allocation5 + $0xaa0] sm:$0xff]   ;;  %v11759_v33 = vld [vmem:[#allocation5 + $0xaa8] sm:$0xff]   ;;  %v11760_v34 = vld [vmem:[#allocation5 + $0xa70] sm:$0xff]  }
 0x19a   :  { %10747 = vmatpush3.bf16.msra.mxu1 %v11731_v27  ;;  %10726 = vmatprep.subr.bf16.mxu0 %v11732_v28  ;;  %v11761_v27 = vld [vmem:[#allocation5 + $0xaf0] sm:$0xff]  }
 0x19b   :  { %10748 = vmatprep.subr.bf16.mxu1 %v11733_v35  ;;  %v11762_v28 = vld [vmem:[#allocation5 + $0xa30] sm:$0xff]  }
 0x19c   :  { %v11763_v35 = vld [vmem:[#allocation5 + $0xab0] sm:$0xff]  }
 0x19d   :  { %10727 = vmatpush3.bf16.msra.mxu0 %v11734_v38  ;;  %v11766_v38 = vld [vmem:[#allocation5 + $0xa38] sm:$0xff]  }
 0x19e   :  { %10749 = vmatpush3.bf16.msra.mxu1 %v11735_v42  ;;  %10756 = vmatprep.subr.bf16.mxu0 %v11736_v47  ;;  %v168_v42 = vld [vmem:[#allocation2 + $0x290] sm:$0xff] }
 0x19f   :  { %10778 = vmatprep.subr.bf16.mxu1 %v11737_v51  ;;  %v640_v46 = vcombine.low %v144_v41, %v168_v42  ;;  %v641_v47 = vcombine.high %v144_v41, %v168_v42  ;;  %v97_v41 = vld [vmem:[#allocation2 + $0x58] sm:$0xff] }
 0x1a0   :  { %8238 = vmatmul.mubr.bf16.vlgmr.msra.gmra.mrb[36].mxu0 %v1274_v60  ;;  %v121_v42 = vld [vmem:[#allocation2 + $0x118] sm:$0xff] }
 0x1a1   :  { %8278 = vmatmul.mubr.bf16.vlgmr.msra.gmra.mrb[36].mxu1 %v1276_v63  ;;  %10757 = vmatpush3.bf16.msra.mxu0 %v11738_v55  ;;  %v662_v51 = vrot.slane %v640_v46, %v12437_v37  ;;  %v669_v52 = vrot.slane %v641_v47, %v12437_v37  ;;  %v675_v46 = vcombine.high %v97_v41, %v121_v42 }
 0x1a2   :  { %10779 = vmatpush3.bf16.msra.mxu1 %v11739_v58  ;;  %10758 = vmatprep.subr.bf16.mxu0 %v11740_v61  ;;  %v11770_v58 = vld [vmem:[#allocation5 + $0xb00] sm:$0xff]   ;;  %v676_v47 = vcombine.low %v145_v43, %v169_v44 }
 0x1a3   :  { %10780 = vmatprep.subr.bf16.mxu1 %v11741_v0  ;;  %v671_v54 = vcombine.high %v648_v48, %v662_v51  ;;  %v673_v55 = vcombine.high %v655_v49, %v669_v52  ;;  %v670_v56 = vcombine.low %v648_v48, %v662_v51  ;;  %v672_v57 = vcombine.low %v655_v49, %v669_v52  ;;  %v11772_v0 = vld [vmem:[#allocation5 + $0xb48] sm:$0xff]   ;;  %v11800_v49 = vld [vmem:[#allocation5 + $0xc40] sm:$0xff]  }
 0x1a4   :  { %v677_v48 = vcombine.high %v145_v43, %v169_v44  ;;  %v691_v51 = vrot.slane %v675_v46, %v12437_v37  ;;  %v11801_v52 = vld [vmem:[#allocation5 + $0xcc0] sm:$0xff]   ;;  %v11830_v46 = vld [vmem:[#allocation5 + $0xc38] sm:$0xff]  }
 0x1a5   :  { %10759 = vmatpush3.bf16.msra.mxu0 %v11742_v1  ;;  %v1279_v60 = vpack.c.bf16 %v671_v54, %v671_v54  ;;  %v1281_v61 = vpack.c.bf16 %v673_v55, %v673_v55  ;;  %v1278_v62 = vpack.c.bf16 %v670_v56, %v670_v56  ;;  %v1280_v63 = vpack.c.bf16 %v672_v57, %v672_v57  ;;  %v11773_v1 = vld [vmem:[#allocation5 + $0xbc8] sm:$0xff]   ;;  %v170_v43 = vld [vmem:[#allocation2 + $0x2a0] sm:$0xff] }
 0x1a6   :  { %10781 = vmatpush3.bf16.msra.mxu1 %v11743_v2  ;;  %10760 = vmatprep.subr.bf16.mxu0 %v11744_v3  ;;  %v11774_v2 = vld [vmem:[#allocation5 + $0xb08] sm:$0xff]   ;;  %v705_v54 = vrot.slane %v677_v48, %v12437_v37 }
 0x1a7   :  { %10782 = vmatprep.subr.bf16.mxu1 %v11745_v4  ;;  %8317 = vmatprep.mubr.bf16.mxu0 %v1279_v60  ;;  %v11775_v3 = vld [vmem:[#allocation5 + $0xb88] sm:$0xff]   ;;  %v11776_v4 = vld [vmem:[#allocation5 + $0xb50] sm:$0xff]   ;;  %v11803_v60 = vld [vmem:[#allocation5 + $0xc80] sm:$0xff]  }
 0x1a8   :  { %8357 = vmatprep.mubr.bf16.mxu1 %v1281_v61  ;;  %v709_v56 = vcombine.high %v691_v51, %v705_v54 }
 0x1a9   :  { %10761 = vmatpush3.bf16.msra.mxu0 %v11746_v5  ;;  %v11777_v5 = vld [vmem:[#allocation5 + $0xbd0] sm:$0xff]  }
 0x1aa   :  { %10783 = vmatpush3.bf16.msra.mxu1 %v11747_v6  ;;  %10762 = vmatprep.subr.bf16.mxu0 %v11748_v7  ;;  %v11778_v6 = vld [vmem:[#allocation5 + $0xb10] sm:$0xff]  }
 0x1ab   :  { %10784 = vmatprep.subr.bf16.mxu1 %v11749_v8  ;;  %v11779_v7 = vld [vmem:[#allocation5 + $0xb90] sm:$0xff]   ;;  %v11780_v8 = vld [vmem:[#allocation5 + $0xb58] sm:$0xff]  }
 0x1ad   :  { %10763 = vmatpush3.bf16.msra.mxu0 %v11750_v9  ;;  %v11781_v9 = vld [vmem:[#allocation5 + $0xbd8] sm:$0xff]  }
 0x1ae   :  { %10785 = vmatpush3.bf16.msra.mxu1 %v11751_v10  ;;  %10764 = vmatprep.subr.bf16.mxu0 %v11752_v11  ;;  %v11782_v10 = vld [vmem:[#allocation5 + $0xb18] sm:$0xff]  }
 0x1af   :  { %10786 = vmatprep.subr.bf16.mxu1 %v11753_v12  ;;  %v11783_v11 = vld [vmem:[#allocation5 + $0xb98] sm:$0xff]  }
 0x1b1   :  { %10765 = vmatpush3.bf16.msra.mxu0 %v11754_v16 }
 0x1b2   :  { %10787 = vmatpush3.bf16.msra.mxu1 %v11755_v19  ;;  %10766 = vmatprep.subr.bf16.mxu0 %v11756_v21 }
 0x1b3   :  { %v10464_v13 = vpop.f32.mrb[12].mxu0  ;;  %10788 = vmatprep.subr.bf16.mxu1 %v11757_v25  ;;  %v11788_v25 = vld [vmem:[#allocation5 + $0xb68] sm:$0xff]  }
 0x1b4   :  { %v10486_v14 = vpop.f32.mrb[12].mxu1  ;;  %v10465_v15 = vpop.f32.mrb[13].mxu0 }
 0x1b5   :  { %v10466_v17 = vadd.f32 %v10465_v15, %v10464_v13  ;;  %v10487_v18 = vpop.f32.mrb[13].mxu1  ;;  %v10467_v22 = vpop.f32.mrb[14].mxu0  ;;  %10767 = vmatpush3.bf16.msra.mxu0 %v11758_v26  ;;  %v11784_v13 = vld [vmem:[#allocation5 + $0xb60] sm:$0xff]  }
 0x1b6   :  { %v10488_v20 = vadd.f32 %v10487_v18, %v10486_v14  ;;  %v10489_v23 = vpop.f32.mrb[14].mxu1  ;;  %v10468_v30 = vpop.f32.mrb[15].mxu0  ;;  %10789 = vmatpush3.bf16.msra.mxu1 %v11759_v33  ;;  %10768 = vmatprep.subr.bf16.mxu0 %v11760_v34  ;;  %v11785_v14 = vld [vmem:[#allocation5 + $0xbe0] sm:$0xff]   ;;  %v11790_v34 = vld [vmem:[#allocation5 + $0xb28] sm:$0xff]  }
 0x1b7   :  { %v7760_v24 = vadd.f32 %v10466_v17, %v12481_v29  ;;  %v10490_v31 = vpop.f32.mrb[15].mxu1  ;;  %v11765_v29 = vld [vmem:[#allocation5 + $0xaf8] sm:$0xff]   ;;  %10790 = vmatprep.subr.bf16.mxu1 %v11761_v27  ;;  %v11786_v17 = vld [vmem:[#allocation5 + $0xb20] sm:$0xff]   ;;  %v11789_v30 = vld [vmem:[#allocation5 + $0xbe8] sm:$0xff]  }
 0x1b8   :  { %v11787_v18 = vld [vmem:[#allocation5 + $0xba0] sm:$0xff]   ;;  %v11791_v27 = vld [vmem:[#allocation5 + $0xba8] sm:$0xff]  }
 0x1b9   :  { %v12488_v32 = vadd.f32 %v10488_v20, %v7760_v24  ;;  %10769 = vmatpush3.bf16.msra.mxu0 %v11762_v28  ;;  %v11792_v28 = vld [vmem:[#allocation5 + $0xb70] sm:$0xff]  }
 0x1ba   :  { %10791 = vmatpush3.bf16.msra.mxu1 %v11763_v35  ;;  %10770 = vmatprep.subr.bf16.mxu0 %v11764_v36  ;;  %v11793_v35 = vld [vmem:[#allocation5 + $0xbf0] sm:$0xff]  }
 0x1bb   :  { %10792 = vmatprep.subr.bf16.mxu1 %v11765_v29  ;;  %v11794_v36 = vld [vmem:[#allocation5 + $0xb30] sm:$0xff]  }
 0x1bc   :  { %v11795_v29 = vld [vmem:[#allocation5 + $0xbb0] sm:$0xff]  }
 0x1bd   :  { %10771 = vmatpush3.bf16.msra.mxu0 %v11766_v38  ;;  %v11797_v38 = vld [vmem:[#allocation5 + $0xbf8] sm:$0xff]  }
 0x1be   :  { %10793 = vmatpush3.bf16.msra.mxu1 %v11767_v45  ;;  %10800 = vmatprep.subr.bf16.mxu0 %v11768_v50  ;;  %v674_v45 = vcombine.low %v97_v41, %v121_v42  ;;  %v122_v41 = vld [vmem:[#allocation2 + $0x120] sm:$0xff] }
 0x1bf   :  { %10822 = vmatprep.subr.bf16.mxu1 %v11769_v53  ;;  %v698_v53 = vrot.slane %v676_v47, %v12437_v37  ;;  %v146_v42 = vld [vmem:[#allocation2 + $0x1e0] sm:$0xff] }
 0x1c0   :  { %8318 = vmatmul.mubr.bf16.vlgmr.msra.gmra.mrb[40].mxu0 %v1278_v62  ;;  %v684_v50 = vrot.slane %v674_v45, %v12437_v37  ;;  %v1285_v62 = vpack.c.bf16 %v709_v56, %v709_v56  ;;  %v712_v47 = vcombine.low %v146_v42, %v170_v43  ;;  %v713_v48 = vcombine.high %v146_v42, %v170_v43  ;;  %v11863_v42 = vld [vmem:[#allocation5 + $0xdb8] sm:$0xff]   ;;  %v99_v43 = vld [vmem:[#allocation2 + $0x68] sm:$0xff] }
 0x1c1   :  { %8358 = vmatmul.mubr.bf16.vlgmr.msra.gmra.mrb[40].mxu1 %v1280_v63  ;;  %10801 = vmatpush3.bf16.msra.mxu0 %v11770_v58  ;;  %v11802_v58 = vld [vmem:[#allocation5 + $0xc00] sm:$0xff]  }
 0x1c2   :  { %10823 = vmatpush3.bf16.msra.mxu1 %v11771_v59  ;;  %10802 = vmatprep.subr.bf16.mxu0 %v11772_v0  ;;  %v707_v55 = vcombine.high %v684_v50, %v698_v53  ;;  %v706_v57 = vcombine.low %v684_v50, %v698_v53  ;;  %v708_v59 = vcombine.low %v691_v51, %v705_v54  ;;  %v11804_v0 = vld [vmem:[#allocation5 + $0xc48] sm:$0xff]   ;;  %v11832_v54 = vld [vmem:[#allocation5 + $0xd40] sm:$0xff]  }
 0x1c3   :  { %10824 = vmatprep.subr.bf16.mxu1 %v11773_v1  ;;  %8437 = vmatprep.mubr.bf16.mxu1 %v1285_v62  ;;  %v741_v53 = vrot.slane %v713_v48, %v12437_v37 }
 0x1c4   :  { %v1283_v61 = vpack.c.bf16 %v707_v55, %v707_v55  ;;  %v1282_v63 = vpack.c.bf16 %v706_v57, %v706_v57  ;;  %v1284_v1 = vpack.c.bf16 %v708_v59, %v708_v59  ;;  %v11833_v55 = vld [vmem:[#allocation5 + $0xdc0] sm:$0xff]  }
 0x1c5   :  { %10803 = vmatpush3.bf16.msra.mxu0 %v11774_v2  ;;  %v11805_v2 = vld [vmem:[#allocation5 + $0xcc8] sm:$0xff]  }
 0x1c6   :  { %10825 = vmatpush3.bf16.msra.mxu1 %v11775_v3  ;;  %10804 = vmatprep.subr.bf16.mxu0 %v11776_v4  ;;  %v11806_v3 = vld [vmem:[#allocation5 + $0xc08] sm:$0xff]  }
 0x1c7   :  { %10826 = vmatprep.subr.bf16.mxu1 %v11777_v5  ;;  %8397 = vmatprep.mubr.bf16.mxu0 %v1283_v61  ;;  %v11807_v4 = vld [vmem:[#allocation5 + $0xc88] sm:$0xff]   ;;  %v11808_v5 = vld [vmem:[#allocation5 + $0xc50] sm:$0xff]   ;;  %v11835_v61 = vld [vmem:[#allocation5 + $0xd80] sm:$0xff]  }
 0x1c9   :  { %10805 = vmatpush3.bf16.msra.mxu0 %v11778_v6  ;;  %v11809_v6 = vld [vmem:[#allocation5 + $0xcd0] sm:$0xff]  }
 0x1ca   :  { %10827 = vmatpush3.bf16.msra.mxu1 %v11779_v7  ;;  %10806 = vmatprep.subr.bf16.mxu0 %v11780_v8  ;;  %v11810_v7 = vld [vmem:[#allocation5 + $0xc10] sm:$0xff]  }
 0x1cb   :  { %10828 = vmatprep.subr.bf16.mxu1 %v11781_v9  ;;  %v11811_v8 = vld [vmem:[#allocation5 + $0xc90] sm:$0xff]   ;;  %v11812_v9 = vld [vmem:[#allocation5 + $0xc58] sm:$0xff]  }
 0x1cd   :  { %10807 = vmatpush3.bf16.msra.mxu0 %v11782_v10  ;;  %v11813_v10 = vld [vmem:[#allocation5 + $0xcd8] sm:$0xff]  }
 0x1ce   :  { %10829 = vmatpush3.bf16.msra.mxu1 %v11783_v11  ;;  %10808 = vmatprep.subr.bf16.mxu0 %v11784_v13  ;;  %v11814_v11 = vld [vmem:[#allocation5 + $0xc18] sm:$0xff]  }
 0x1cf   :  { %10830 = vmatprep.subr.bf16.mxu1 %v11785_v14  ;;  %v11815_v13 = vld [vmem:[#allocation5 + $0xc98] sm:$0xff]  }
 0x1d1   :  { %10809 = vmatpush3.bf16.msra.mxu0 %v11786_v17 }
 0x1d2   :  { %10831 = vmatpush3.bf16.msra.mxu1 %v11787_v18  ;;  %10810 = vmatprep.subr.bf16.mxu0 %v11788_v25 }
 0x1d3   :  { %v10508_v12 = vpop.f32.mrb[16].mxu0  ;;  %10832 = vmatprep.subr.bf16.mxu1 %v11789_v30  ;;  %v11821_v30 = vld [vmem:[#allocation5 + $0xce8] sm:$0xff]  }
 0x1d4   :  { %v10530_v15 = vpop.f32.mrb[16].mxu1  ;;  %v10509_v16 = vpop.f32.mrb[17].mxu0 }
 0x1d5   :  { %v10510_v19 = vadd.f32 %v10509_v16, %v10508_v12  ;;  %v10531_v20 = vpop.f32.mrb[17].mxu1  ;;  %v10511_v22 = vpop.f32.mrb[18].mxu0  ;;  %10811 = vmatpush3.bf16.msra.mxu0 %v11790_v34  ;;  %v11817_v16 = vld [vmem:[#allocation5 + $0xce0] sm:$0xff]  }
 0x1d6   :  { %v10532_v21 = vadd.f32 %v10531_v20, %v10530_v15  ;;  %v10533_v23 = vpop.f32.mrb[18].mxu1  ;;  %v10512_v26 = vpop.f32.mrb[19].mxu0  ;;  %10833 = vmatpush3.bf16.msra.mxu1 %v11791_v27  ;;  %10812 = vmatprep.subr.bf16.mxu0 %v11792_v28  ;;  %v11816_v15 = vld [vmem:[#allocation5 + $0xc60] sm:$0xff]   ;;  %v11822_v28 = vld [vmem:[#allocation5 + $0xc28] sm:$0xff]  }
 0x1d7   :  { %v7840_v24 = vadd.f32 %v10510_v19, %v12488_v32  ;;  %v10534_v31 = vpop.f32.mrb[19].mxu1  ;;  %v11796_v32 = vld [vmem:[#allocation5 + $0xb78] sm:$0xff]   ;;  %10834 = vmatprep.subr.bf16.mxu1 %v11793_v35  ;;  %v11819_v22 = vld [vmem:[#allocation5 + $0xca0] sm:$0xff]   ;;  %v11820_v26 = vld [vmem:[#allocation5 + $0xc68] sm:$0xff]  }
 0x1d8   :  { %v11823_v35 = vld [vmem:[#allocation5 + $0xca8] sm:$0xff]  }
 0x1d9   :  { %v12495_v33 = vadd.f32 %v10532_v21, %v7840_v24  ;;  %10813 = vmatpush3.bf16.msra.mxu0 %v11794_v36  ;;  %v11818_v21 = vld [vmem:[#allocation5 + $0xc20] sm:$0xff]   ;;  %v11824_v36 = vld [vmem:[#allocation5 + $0xc70] sm:$0xff]  }
 0x1da   :  { %10835 = vmatpush3.bf16.msra.mxu1 %v11795_v29  ;;  %10814 = vmatprep.subr.bf16.mxu0 %v11796_v32  ;;  %v11825_v29 = vld [vmem:[#allocation5 + $0xcf0] sm:$0xff]  }
 0x1db   :  { %10836 = vmatprep.subr.bf16.mxu1 %v11797_v38  ;;  %v11826_v32 = vld [vmem:[#allocation5 + $0xc30] sm:$0xff]  }
 0x1dc   :  { %v11827_v38 = vld [vmem:[#allocation5 + $0xcb0] sm:$0xff]  }
 0x1dd   :  { %10815 = vmatpush3.bf16.msra.mxu0 %v11798_v39  ;;  %v11829_v39 = vld [vmem:[#allocation5 + $0xcf8] sm:$0xff]  }
 0x1de   :  { %10837 = vmatpush3.bf16.msra.mxu1 %v11799_v40  ;;  %10844 = vmatprep.subr.bf16.mxu0 %v11800_v49  ;;  %v98_v40 = vld [vmem:[#allocation2 + $0x60] sm:$0xff]  ;;  %v11831_v49 = vld [vmem:[#allocation5 + $0xcb8] sm:$0xff]  }
 0x1df   :  { %10866 = vmatprep.subr.bf16.mxu1 %v11801_v52  ;;  %v710_v44 = vcombine.low %v98_v40, %v122_v41  ;;  %v711_v45 = vcombine.high %v98_v40, %v122_v41  ;;  %v734_v52 = vrot.slane %v712_v47, %v12437_v37  ;;  %v11861_v40 = vld [vmem:[#allocation5 + $0xdf8] sm:$0xff]  }
 0x1e0   :  { %8398 = vmatmul.mubr.bf16.vlgmr.msra.gmra.mrb[44].mxu0 %v1282_v63  ;;  %v11862_v41 = vld [vmem:[#allocation5 + $0xd38] sm:$0xff]  }
 0x1e1   :  { %8438 = vmatmul.mubr.bf16.vlgmr.msra.gmra.mrb[44].mxu1 %v1284_v1  ;;  %10845 = vmatpush3.bf16.msra.mxu0 %v11802_v58  ;;  %v720_v50 = vrot.slane %v710_v44, %v12437_v37  ;;  %v727_v51 = vrot.slane %v711_v45, %v12437_v37  ;;  %v123_v44 = vld [vmem:[#allocation2 + $0x128] sm:$0xff] }
 0x1e2   :  { %10867 = vmatpush3.bf16.msra.mxu1 %v11803_v60  ;;  %10846 = vmatprep.subr.bf16.mxu0 %v11804_v0  ;;  %v11834_v60 = vld [vmem:[#allocation5 + $0xd00] sm:$0xff]   ;;  %v147_v45 = vld [vmem:[#allocation2 + $0x1e8] sm:$0xff]  ;;  %v746_v47 = vcombine.low %v99_v43, %v123_v44  ;;  %v747_v48 = vcombine.high %v99_v43, %v123_v44  ;;  %v11894_v43 = vld [vmem:[#allocation5 + $0xe38] sm:$0xff]  }
 0x1e3   :  { %10868 = vmatprep.subr.bf16.mxu1 %v11805_v2  ;;  %v743_v56 = vcombine.high %v720_v50, %v734_v52  ;;  %v745_v57 = vcombine.high %v727_v51, %v741_v53  ;;  %v742_v58 = vcombine.low %v720_v50, %v734_v52  ;;  %v744_v59 = vcombine.low %v727_v51, %v741_v53  ;;  %v11836_v2 = vld [vmem:[#allocation5 + $0xd48] sm:$0xff]   ;;  %v11864_v51 = vld [vmem:[#allocation5 + $0xe40] sm:$0xff]   ;;  %v124_v44 = vld [vmem:[#allocation2 + $0x130] sm:$0xff] }
 0x1e4   :  { %v756_v52 = vrot.slane %v746_v47, %v12437_v37  ;;  %v763_v53 = vrot.slane %v747_v48, %v12437_v37  ;;  %v11895_v47 = vld [vmem:[#allocation5 + $0xeb8] sm:$0xff]  }
 0x1e5   :  { %10847 = vmatpush3.bf16.msra.mxu0 %v11806_v3  ;;  %v1287_v62 = vpack.c.bf16 %v743_v56, %v743_v56  ;;  %v1289_v63 = vpack.c.bf16 %v745_v57, %v745_v57  ;;  %v1286_v0 = vpack.c.bf16 %v742_v58, %v742_v58  ;;  %v1288_v1 = vpack.c.bf16 %v744_v59, %v744_v59  ;;  %v11837_v3 = vld [vmem:[#allocation5 + $0xdc8] sm:$0xff]  }
 0x1e6   :  { %10869 = vmatpush3.bf16.msra.mxu1 %v11807_v4  ;;  %10848 = vmatprep.subr.bf16.mxu0 %v11808_v5  ;;  %v11838_v4 = vld [vmem:[#allocation5 + $0xd08] sm:$0xff]  }
 0x1e7   :  { %10870 = vmatprep.subr.bf16.mxu1 %v11809_v6  ;;  %8477 = vmatprep.mubr.bf16.mxu0 %v1287_v62  ;;  %v11839_v5 = vld [vmem:[#allocation5 + $0xd88] sm:$0xff]   ;;  %v11840_v6 = vld [vmem:[#allocation5 + $0xd50] sm:$0xff]   ;;  %v11867_v62 = vld [vmem:[#allocation5 + $0xe80] sm:$0xff]  }
 0x1e8   :  { %8517 = vmatprep.mubr.bf16.mxu1 %v1289_v63 }
 0x1e9   :  { %10849 = vmatpush3.bf16.msra.mxu0 %v11810_v7  ;;  %v11841_v7 = vld [vmem:[#allocation5 + $0xdd0] sm:$0xff]  }
 0x1ea   :  { %10871 = vmatpush3.bf16.msra.mxu1 %v11811_v8  ;;  %10850 = vmatprep.subr.bf16.mxu0 %v11812_v9  ;;  %v11842_v8 = vld [vmem:[#allocation5 + $0xd10] sm:$0xff]  }
 0x1eb   :  { %10872 = vmatprep.subr.bf16.mxu1 %v11813_v10  ;;  %v11843_v9 = vld [vmem:[#allocation5 + $0xd90] sm:$0xff]   ;;  %v11844_v10 = vld [vmem:[#allocation5 + $0xd58] sm:$0xff]  }
 0x1ed   :  { %10851 = vmatpush3.bf16.msra.mxu0 %v11814_v11  ;;  %v11845_v11 = vld [vmem:[#allocation5 + $0xdd8] sm:$0xff]  }
 0x1ee   :  { %10873 = vmatpush3.bf16.msra.mxu1 %v11815_v13  ;;  %10852 = vmatprep.subr.bf16.mxu0 %v11816_v15  ;;  %v11847_v13 = vld [vmem:[#allocation5 + $0xd98] sm:$0xff]   ;;  %v11848_v15 = vld [vmem:[#allocation5 + $0xd60] sm:$0xff]  }
 0x1ef   :  { %10874 = vmatprep.subr.bf16.mxu1 %v11817_v16  ;;  %v11849_v16 = vld [vmem:[#allocation5 + $0xde0] sm:$0xff]  }
 0x1f1   :  { %10853 = vmatpush3.bf16.msra.mxu0 %v11818_v21 }
 0x1f2   :  { %10875 = vmatpush3.bf16.msra.mxu1 %v11819_v22  ;;  %10854 = vmatprep.subr.bf16.mxu0 %v11820_v26 }
 0x1f3   :  { %v10552_v12 = vpop.f32.mrb[20].mxu0  ;;  %10876 = vmatprep.subr.bf16.mxu1 %v11821_v30  ;;  %v11852_v30 = vld [vmem:[#allocation5 + $0xd68] sm:$0xff]  }
 0x1f4   :  { %v10574_v14 = vpop.f32.mrb[20].mxu1  ;;  %v10553_v17 = vpop.f32.mrb[21].mxu0 }
 0x1f5   :  { %v10575_v18 = vpop.f32.mrb[21].mxu1  ;;  %v10554_v19 = vadd.f32 %v10553_v17, %v10552_v12  ;;  %v10555_v23 = vpop.f32.mrb[22].mxu0  ;;  %10855 = vmatpush3.bf16.msra.mxu0 %v11822_v28  ;;  %v11846_v12 = vld [vmem:[#allocation5 + $0xd18] sm:$0xff]  }
 0x1f6   :  { %v10576_v20 = vadd.f32 %v10575_v18, %v10574_v14  ;;  %v10577_v24 = vpop.f32.mrb[22].mxu1  ;;  %v10556_v31 = vpop.f32.mrb[23].mxu0  ;;  %10877 = vmatpush3.bf16.msra.mxu1 %v11823_v35  ;;  %10856 = vmatprep.subr.bf16.mxu0 %v11824_v36  ;;  %v11854_v36 = vld [vmem:[#allocation5 + $0xd28] sm:$0xff]  }
 0x1f7   :  { %v7920_v25 = vadd.f32 %v10554_v19, %v12495_v33  ;;  %v10578_v34 = vpop.f32.mrb[23].mxu1  ;;  %v11828_v33 = vld [vmem:[#allocation5 + $0xc78] sm:$0xff]   ;;  %10878 = vmatprep.subr.bf16.mxu1 %v11825_v29  ;;  %v11850_v19 = vld [vmem:[#allocation5 + $0xd20] sm:$0xff]   ;;  %v11855_v29 = vld [vmem:[#allocation5 + $0xda8] sm:$0xff]  }
 0x1f8   :  { %v11853_v34 = vld [vmem:[#allocation5 + $0xde8] sm:$0xff]  }
 0x1f9   :  { %v12502_v27 = vadd.f32 %v10576_v20, %v7920_v25  ;;  %10857 = vmatpush3.bf16.msra.mxu0 %v11826_v32  ;;  %v11851_v20 = vld [vmem:[#allocation5 + $0xda0] sm:$0xff]   ;;  %v11856_v32 = vld [vmem:[#allocation5 + $0xd70] sm:$0xff]  }
 0x1fa   :  { %10879 = vmatpush3.bf16.msra.mxu1 %v11827_v38  ;;  %10858 = vmatprep.subr.bf16.mxu0 %v11828_v33  ;;  %v11857_v38 = vld [vmem:[#allocation5 + $0xdf0] sm:$0xff]  }
 0x1fb   :  { %10880 = vmatprep.subr.bf16.mxu1 %v11829_v39  ;;  %v11858_v33 = vld [vmem:[#allocation5 + $0xd30] sm:$0xff]  }
 0x1fc   :  { %v11859_v39 = vld [vmem:[#allocation5 + $0xdb0] sm:$0xff]  }
 0x1fd   :  { %10859 = vmatpush3.bf16.msra.mxu0 %v11830_v46  ;;  %v171_v46 = vld [vmem:[#allocation2 + $0x2a8] sm:$0xff] }
 0x1fe   :  { %10881 = vmatpush3.bf16.msra.mxu1 %v11831_v49  ;;  %10888 = vmatprep.subr.bf16.mxu0 %v11832_v54  ;;  %v748_v49 = vcombine.low %v147_v45, %v171_v46  ;;  %v749_v50 = vcombine.high %v147_v45, %v171_v46  ;;  %v11865_v54 = vld [vmem:[#allocation5 + $0xec0] sm:$0xff]   ;;  %v148_v45 = vld [vmem:[#allocation2 + $0x1f0] sm:$0xff] }
 0x1ff   :  { %10910 = vmatprep.subr.bf16.mxu1 %v11833_v55  ;;  %v172_v46 = vld [vmem:[#allocation2 + $0x2b0] sm:$0xff] }
 0x200   :  { %8478 = vmatmul.mubr.bf16.vlgmr.msra.gmra.mrb[48].mxu0 %v1286_v0  ;;  %v770_v55 = vrot.slane %v748_v49, %v12437_v37  ;;  %v777_v56 = vrot.slane %v749_v50, %v12437_v37  ;;  %v784_v49 = vcombine.low %v148_v45, %v172_v46 }
 0x201   :  { %8518 = vmatmul.mubr.bf16.vlgmr.msra.gmra.mrb[48].mxu1 %v1288_v1  ;;  %10889 = vmatpush3.bf16.msra.mxu0 %v11834_v60  ;;  %v11866_v60 = vld [vmem:[#allocation5 + $0xe00] sm:$0xff]  }
 0x202   :  { %10911 = vmatpush3.bf16.msra.mxu1 %v11835_v61  ;;  %10890 = vmatprep.subr.bf16.mxu0 %v11836_v2  ;;  %v779_v57 = vcombine.high %v756_v52, %v770_v55  ;;  %v781_v58 = vcombine.high %v763_v53, %v777_v56  ;;  %v778_v59 = vcombine.low %v756_v52, %v770_v55  ;;  %v11868_v2 = vld [vmem:[#allocation5 + $0xe48] sm:$0xff]   ;;  %v11896_v52 = vld [vmem:[#allocation5 + $0xf40] sm:$0xff]  }
 0x203   :  { %10912 = vmatprep.subr.bf16.mxu1 %v11837_v3  ;;  %v780_v61 = vcombine.low %v763_v53, %v777_v56  ;;  %v11897_v56 = vld [vmem:[#allocation5 + $0xfc0] sm:$0xff]  }
 0x204   :  { %v1291_v63 = vpack.c.bf16 %v779_v57, %v779_v57  ;;  %v1293_v0 = vpack.c.bf16 %v781_v58, %v781_v58  ;;  %v1290_v1 = vpack.c.bf16 %v778_v59, %v778_v59 }
 0x205   :  { %10891 = vmatpush3.bf16.msra.mxu0 %v11838_v4  ;;  %v1292_v3 = vpack.c.bf16 %v780_v61, %v780_v61  ;;  %v11869_v4 = vld [vmem:[#allocation5 + $0xec8] sm:$0xff]  }
 0x206   :  { %10913 = vmatpush3.bf16.msra.mxu1 %v11839_v5  ;;  %10892 = vmatprep.subr.bf16.mxu0 %v11840_v6  ;;  %v11870_v5 = vld [vmem:[#allocation5 + $0xe08] sm:$0xff]  }
 0x207   :  { %10914 = vmatprep.subr.bf16.mxu1 %v11841_v7  ;;  %8557 = vmatprep.mubr.bf16.mxu0 %v1291_v63  ;;  %v11871_v6 = vld [vmem:[#allocation5 + $0xe88] sm:$0xff]   ;;  %v11872_v7 = vld [vmem:[#allocation5 + $0xe50] sm:$0xff]   ;;  %v11899_v63 = vld [vmem:[#allocation5 + $0xf80] sm:$0xff]  }
 0x208   :  { %8597 = vmatprep.mubr.bf16.mxu1 %v1293_v0 }
 0x209   :  { %10893 = vmatpush3.bf16.msra.mxu0 %v11842_v8  ;;  %v11873_v8 = vld [vmem:[#allocation5 + $0xed0] sm:$0xff]  }
 0x20a   :  { %10915 = vmatpush3.bf16.msra.mxu1 %v11843_v9  ;;  %10894 = vmatprep.subr.bf16.mxu0 %v11844_v10  ;;  %v11874_v9 = vld [vmem:[#allocation5 + $0xe10] sm:$0xff]  }
 0x20b   :  { %10916 = vmatprep.subr.bf16.mxu1 %v11845_v11  ;;  %v11875_v10 = vld [vmem:[#allocation5 + $0xe90] sm:$0xff]   ;;  %v11876_v11 = vld [vmem:[#allocation5 + $0xe58] sm:$0xff]  }
 0x20d   :  { %10895 = vmatpush3.bf16.msra.mxu0 %v11846_v12  ;;  %v11877_v12 = vld [vmem:[#allocation5 + $0xed8] sm:$0xff]  }
 0x20e   :  { %10917 = vmatpush3.bf16.msra.mxu1 %v11847_v13  ;;  %10896 = vmatprep.subr.bf16.mxu0 %v11848_v15  ;;  %v11878_v13 = vld [vmem:[#allocation5 + $0xe18] sm:$0xff]  }
 0x20f   :  { %10918 = vmatprep.subr.bf16.mxu1 %v11849_v16  ;;  %v11880_v16 = vld [vmem:[#allocation5 + $0xe60] sm:$0xff]  }
 0x211   :  { %10897 = vmatpush3.bf16.msra.mxu0 %v11850_v19 }
 0x212   :  { %10919 = vmatpush3.bf16.msra.mxu1 %v11851_v20  ;;  %10898 = vmatprep.subr.bf16.mxu0 %v11852_v30  ;;  %v11882_v20 = vld [vmem:[#allocation5 + $0xe20] sm:$0xff]  }
 0x213   :  { %v10596_v14 = vpop.f32.mrb[24].mxu0  ;;  %10920 = vmatprep.subr.bf16.mxu1 %v11853_v34 }
 0x214   :  { %v10618_v17 = vpop.f32.mrb[24].mxu1  ;;  %v10597_v18 = vpop.f32.mrb[25].mxu0 }
 0x215   :  { %v10598_v21 = vadd.f32 %v10597_v18, %v10596_v14  ;;  %v10619_v22 = vpop.f32.mrb[25].mxu1  ;;  %v10599_v24 = vpop.f32.mrb[26].mxu0  ;;  %10899 = vmatpush3.bf16.msra.mxu0 %v11854_v36  ;;  %v11879_v14 = vld [vmem:[#allocation5 + $0xe98] sm:$0xff]  }
 0x216   :  { %v10620_v23 = vadd.f32 %v10619_v22, %v10618_v17  ;;  %v10621_v25 = vpop.f32.mrb[26].mxu1  ;;  %v10600_v31 = vpop.f32.mrb[27].mxu0  ;;  %10921 = vmatpush3.bf16.msra.mxu1 %v11855_v29  ;;  %10900 = vmatprep.subr.bf16.mxu0 %v11856_v32  ;;  %v11881_v17 = vld [vmem:[#allocation5 + $0xee0] sm:$0xff]   ;;  %v11886_v32 = vld [vmem:[#allocation5 + $0xe28] sm:$0xff]  }
 0x217   :  { %v8000_v26 = vadd.f32 %v10598_v21, %v12502_v27  ;;  %v10622_v28 = vpop.f32.mrb[27].mxu1  ;;  %v11860_v27 = vld [vmem:[#allocation5 + $0xd78] sm:$0xff]   ;;  %10922 = vmatprep.subr.bf16.mxu1 %v11857_v38  ;;  %v11883_v21 = vld [vmem:[#allocation5 + $0xea0] sm:$0xff]   ;;  %v11884_v31 = vld [vmem:[#allocation5 + $0xe68] sm:$0xff]  }
 0x218   :  { %v11885_v28 = vld [vmem:[#allocation5 + $0xee8] sm:$0xff]  }
 0x219   :  { %v12509_v35 = vadd.f32 %v10620_v23, %v8000_v26  ;;  %10901 = vmatpush3.bf16.msra.mxu0 %v11858_v33  ;;  %v11887_v38 = vld [vmem:[#allocation5 + $0xea8] sm:$0xff]   ;;  %v11888_v33 = vld [vmem:[#allocation5 + $0xe70] sm:$0xff]  }
 0x21a   :  { %10923 = vmatpush3.bf16.msra.mxu1 %v11859_v39  ;;  %10902 = vmatprep.subr.bf16.mxu0 %v11860_v27  ;;  %v11889_v39 = vld [vmem:[#allocation5 + $0xef0] sm:$0xff]  }
 0x21b   :  { %10924 = vmatprep.subr.bf16.mxu1 %v11861_v40  ;;  %v11890_v27 = vld [vmem:[#allocation5 + $0xe30] sm:$0xff]  }
 0x21c   :  { %v11891_v40 = vld [vmem:[#allocation5 + $0xeb0] sm:$0xff]  }
 0x21d   :  { %10903 = vmatpush3.bf16.msra.mxu0 %v11862_v41  ;;  %v11893_v41 = vld [vmem:[#allocation5 + $0xef8] sm:$0xff]  }
 0x21e   :  { %10925 = vmatpush3.bf16.msra.mxu1 %v11863_v42  ;;  %10932 = vmatprep.subr.bf16.mxu0 %v11864_v51  ;;  %v100_v42 = vld [vmem:[#allocation2 + $0x70] sm:$0xff]  ;;  %v785_v51 = vcombine.high %v148_v45, %v172_v46  ;;  %v125_v45 = vld [vmem:[#allocation2 + $0x138] sm:$0xff] }
 0x21f   :  { %10954 = vmatprep.subr.bf16.mxu1 %v11865_v54  ;;  %v782_v48 = vcombine.low %v100_v42, %v124_v44  ;;  %v783_v50 = vcombine.high %v100_v42, %v124_v44  ;;  %v806_v54 = vrot.slane %v784_v49, %v12437_v37  ;;  %v11924_v42 = vld [vmem:[#allocation5 + $0xf78] sm:$0xff]  }
 0x220   :  { %8558 = vmatmul.mubr.bf16.vlgmr.msra.gmra.mrb[52].mxu0 %v1290_v1  ;;  %v813_v57 = vrot.slane %v785_v51, %v12437_v37  ;;  %v101_v44 = vld [vmem:[#allocation2 + $0x78] sm:$0xff] }
 0x221   :  { %8598 = vmatmul.mubr.bf16.vlgmr.msra.gmra.mrb[52].mxu1 %v1292_v3  ;;  %10933 = vmatpush3.bf16.msra.mxu0 %v11866_v60  ;;  %v792_v53 = vrot.slane %v782_v48, %v12437_v37  ;;  %v799_v55 = vrot.slane %v783_v50, %v12437_v37  ;;  %v11898_v60 = vld [vmem:[#allocation5 + $0xf00] sm:$0xff]   ;;  %v149_v46 = vld [vmem:[#allocation2 + $0x1f8] sm:$0xff]  ;;  %v818_v48 = vcombine.low %v101_v44, %v125_v45 }
 0x222   :  { %10955 = vmatpush3.bf16.msra.mxu1 %v11867_v62  ;;  %10934 = vmatprep.subr.bf16.mxu0 %v11868_v2  ;;  %v11900_v2 = vld [vmem:[#allocation5 + $0xf48] sm:$0xff]   ;;  %v819_v49 = vcombine.high %v101_v44, %v125_v45  ;;  %v11927_v50 = vld [vmem:[#allocation5 + $0xfb8] sm:$0xff]  }
 0x223   :  { %10956 = vmatprep.subr.bf16.mxu1 %v11869_v4  ;;  %v815_v58 = vcombine.high %v792_v53, %v806_v54  ;;  %v814_v59 = vcombine.low %v792_v53, %v806_v54  ;;  %v817_v61 = vcombine.high %v799_v55, %v813_v57  ;;  %v816_v62 = vcombine.low %v799_v55, %v813_v57  ;;  %v11928_v55 = vld [vmem:[#allocation5 + $0x1040] sm:$0xff]   ;;  %v11958_v44 = vld [vmem:[#allocation5 + $0x1038] sm:$0xff]  }
 0x224   :  { %v828_v53 = vrot.slane %v818_v48, %v12437_v37  ;;  %v835_v54 = vrot.slane %v819_v49, %v12437_v37  ;;  %v11959_v45 = vld [vmem:[#allocation5 + $0x10b8] sm:$0xff]   ;;  %v150_v48 = vld [vmem:[#allocation2 + $0x200] sm:$0xff] }
 0x225   :  { %10935 = vmatpush3.bf16.msra.mxu0 %v11870_v5  ;;  %v1295_v0 = vpack.c.bf16 %v815_v58, %v815_v58  ;;  %v1294_v1 = vpack.c.bf16 %v814_v59, %v814_v59  ;;  %v1297_v3 = vpack.c.bf16 %v817_v61, %v817_v61  ;;  %v1296_v4 = vpack.c.bf16 %v816_v62, %v816_v62  ;;  %v11901_v5 = vld [vmem:[#allocation5 + $0xfc8] sm:$0xff]   ;;  %v11929_v58 = vld [vmem:[#allocation5 + $0x10c0] sm:$0xff]  }
 0x226   :  { %10957 = vmatpush3.bf16.msra.mxu1 %v11871_v6  ;;  %10936 = vmatprep.subr.bf16.mxu0 %v11872_v7  ;;  %v11902_v6 = vld [vmem:[#allocation5 + $0xf08] sm:$0xff]   ;;  %v174_v49 = vld [vmem:[#allocation2 + $0x2c0] sm:$0xff] }
 0x227   :  { %10958 = vmatprep.subr.bf16.mxu1 %v11873_v8  ;;  %8637 = vmatprep.mubr.bf16.mxu0 %v1295_v0  ;;  %v11903_v7 = vld [vmem:[#allocation5 + $0xf88] sm:$0xff]   ;;  %v11904_v8 = vld [vmem:[#allocation5 + $0xf50] sm:$0xff]   ;;  %v11931_v0 = vld [vmem:[#allocation5 + $0x1080] sm:$0xff]  }
 0x228   :  { %8677 = vmatprep.mubr.bf16.mxu1 %v1297_v3 }
 0x229   :  { %10937 = vmatpush3.bf16.msra.mxu0 %v11874_v9  ;;  %v11905_v9 = vld [vmem:[#allocation5 + $0xfd0] sm:$0xff]  }
 0x22a   :  { %10959 = vmatpush3.bf16.msra.mxu1 %v11875_v10  ;;  %10938 = vmatprep.subr.bf16.mxu0 %v11876_v11  ;;  %v11906_v10 = vld [vmem:[#allocation5 + $0xf10] sm:$0xff]  }
 0x22b   :  { %10960 = vmatprep.subr.bf16.mxu1 %v11877_v12  ;;  %v11907_v11 = vld [vmem:[#allocation5 + $0xf90] sm:$0xff]   ;;  %v11908_v12 = vld [vmem:[#allocation5 + $0xf58] sm:$0xff]  }
 0x22d   :  { %10939 = vmatpush3.bf16.msra.mxu0 %v11878_v13  ;;  %v11909_v13 = vld [vmem:[#allocation5 + $0xfd8] sm:$0xff]  }
 0x22e   :  { %10961 = vmatpush3.bf16.msra.mxu1 %v11879_v14  ;;  %10940 = vmatprep.subr.bf16.mxu0 %v11880_v16  ;;  %v11910_v14 = vld [vmem:[#allocation5 + $0xf18] sm:$0xff]   ;;  %v11912_v16 = vld [vmem:[#allocation5 + $0xf60] sm:$0xff]  }
 0x22f   :  { %10962 = vmatprep.subr.bf16.mxu1 %v11881_v17  ;;  %v11913_v17 = vld [vmem:[#allocation5 + $0xfe0] sm:$0xff]  }
 0x231   :  { %10941 = vmatpush3.bf16.msra.mxu0 %v11882_v20 }
 0x232   :  { %10963 = vmatpush3.bf16.msra.mxu1 %v11883_v21  ;;  %10942 = vmatprep.subr.bf16.mxu0 %v11884_v31  ;;  %v11914_v21 = vld [vmem:[#allocation5 + $0xf20] sm:$0xff]  }
 0x233   :  { %v10640_v15 = vpop.f32.mrb[28].mxu0  ;;  %10964 = vmatprep.subr.bf16.mxu1 %v11885_v28  ;;  %v11917_v28 = vld [vmem:[#allocation5 + $0xfe8] sm:$0xff]  }
 0x234   :  { %v10662_v18 = vpop.f32.mrb[28].mxu1  ;;  %v10641_v19 = vpop.f32.mrb[29].mxu0 }
 0x235   :  { %v10642_v22 = vadd.f32 %v10641_v19, %v10640_v15  ;;  %v10663_v23 = vpop.f32.mrb[29].mxu1  ;;  %v10643_v25 = vpop.f32.mrb[30].mxu0  ;;  %10943 = vmatpush3.bf16.msra.mxu0 %v11886_v32  ;;  %v11911_v15 = vld [vmem:[#allocation5 + $0xf98] sm:$0xff]  }
 0x236   :  { %v10664_v24 = vadd.f32 %v10663_v23, %v10662_v18  ;;  %v10665_v26 = vpop.f32.mrb[30].mxu1  ;;  %v10644_v34 = vpop.f32.mrb[31].mxu0  ;;  %10965 = vmatpush3.bf16.msra.mxu1 %v11887_v38  ;;  %10944 = vmatprep.subr.bf16.mxu0 %v11888_v33 }
 0x237   :  { %v8080_v30 = vadd.f32 %v10642_v22, %v12509_v35  ;;  %v10666_v36 = vpop.f32.mrb[31].mxu1  ;;  %v11892_v35 = vld [vmem:[#allocation5 + $0xe78] sm:$0xff]   ;;  %10966 = vmatprep.subr.bf16.mxu1 %v11889_v39  ;;  %v11916_v26 = vld [vmem:[#allocation5 + $0xf68] sm:$0xff]  }
 0x238   :  { %v11918_v36 = vld [vmem:[#allocation5 + $0xf28] sm:$0xff]  }
 0x239   :  { %v12516_v29 = vadd.f32 %v10664_v24, %v8080_v30  ;;  %10945 = vmatpush3.bf16.msra.mxu0 %v11890_v27  ;;  %v11915_v24 = vld [vmem:[#allocation5 + $0xfa0] sm:$0xff]   ;;  %v11919_v39 = vld [vmem:[#allocation5 + $0xfa8] sm:$0xff]   ;;  %v11920_v27 = vld [vmem:[#allocation5 + $0xf70] sm:$0xff]  }
 0x23a   :  { %10967 = vmatpush3.bf16.msra.mxu1 %v11891_v40  ;;  %10946 = vmatprep.subr.bf16.mxu0 %v11892_v35  ;;  %v11921_v40 = vld [vmem:[#allocation5 + $0xff0] sm:$0xff]  }
 0x23b   :  { %10968 = vmatprep.subr.bf16.mxu1 %v11893_v41  ;;  %v11922_v35 = vld [vmem:[#allocation5 + $0xf30] sm:$0xff]  }
 0x23c   :  { %v11923_v41 = vld [vmem:[#allocation5 + $0xfb0] sm:$0xff]  }
 0x23d   :  { %10947 = vmatpush3.bf16.msra.mxu0 %v11894_v43  ;;  %v11926_v43 = vld [vmem:[#allocation5 + $0xf38] sm:$0xff]  }
 0x23e   :  { %10969 = vmatpush3.bf16.msra.mxu1 %v11895_v47  ;;  %10976 = vmatprep.subr.bf16.mxu0 %v11896_v52  ;;  %v173_v47 = vld [vmem:[#allocation2 + $0x2b8] sm:$0xff] }
 0x23f   :  { %10998 = vmatprep.subr.bf16.mxu1 %v11897_v56  ;;  %v820_v51 = vcombine.low %v149_v46, %v173_v47  ;;  %v821_v52 = vcombine.high %v149_v46, %v173_v47  ;;  %v102_v46 = vld [vmem:[#allocation2 + $0x80] sm:$0xff] }
 0x240   :  { %8638 = vmatmul.mubr.bf16.vlgmr.msra.gmra.mrb[56].mxu0 %v1294_v1  ;;  %v126_v47 = vld [vmem:[#allocation2 + $0x140] sm:$0xff] }
 0x241   :  { %8678 = vmatmul.mubr.bf16.vlgmr.msra.gmra.mrb[56].mxu1 %v1296_v4  ;;  %10977 = vmatpush3.bf16.msra.mxu0 %v11898_v60  ;;  %v842_v56 = vrot.slane %v820_v51, %v12437_v37  ;;  %v849_v57 = vrot.slane %v821_v52, %v12437_v37  ;;  %v855_v51 = vcombine.high %v102_v46, %v126_v47 }
 0x242   :  { %10999 = vmatpush3.bf16.msra.mxu1 %v11899_v63  ;;  %10978 = vmatprep.subr.bf16.mxu0 %v11900_v2  ;;  %v11930_v63 = vld [vmem:[#allocation5 + $0x1000] sm:$0xff]   ;;  %v856_v52 = vcombine.low %v150_v48, %v174_v49 }
 0x243   :  { %11000 = vmatprep.subr.bf16.mxu1 %v11901_v5  ;;  %v851_v59 = vcombine.high %v828_v53, %v842_v56  ;;  %v853_v60 = vcombine.high %v835_v54, %v849_v57  ;;  %v850_v61 = vcombine.low %v828_v53, %v842_v56  ;;  %v852_v62 = vcombine.low %v835_v54, %v849_v57  ;;  %v11932_v5 = vld [vmem:[#allocation5 + $0x1048] sm:$0xff]   ;;  %v11960_v54 = vld [vmem:[#allocation5 + $0x1140] sm:$0xff]  }
 0x244   :  { %v857_v53 = vcombine.high %v150_v48, %v174_v49  ;;  %v871_v56 = vrot.slane %v855_v51, %v12437_v37  ;;  %v11961_v57 = vld [vmem:[#allocation5 + $0x11c0] sm:$0xff]   ;;  %v151_v48 = vld [vmem:[#allocation2 + $0x208] sm:$0xff] }
 0x245   :  { %10979 = vmatpush3.bf16.msra.mxu0 %v11902_v6  ;;  %v1299_v1 = vpack.c.bf16 %v851_v59, %v851_v59  ;;  %v1301_v2 = vpack.c.bf16 %v853_v60, %v853_v60  ;;  %v1298_v3 = vpack.c.bf16 %v850_v61, %v850_v61  ;;  %v1300_v4 = vpack.c.bf16 %v852_v62, %v852_v62  ;;  %v11933_v6 = vld [vmem:[#allocation5 + $0x10c8] sm:$0xff]  }
 0x246   :  { %11001 = vmatpush3.bf16.msra.mxu1 %v11903_v7  ;;  %10980 = vmatprep.subr.bf16.mxu0 %v11904_v8  ;;  %v11934_v7 = vld [vmem:[#allocation5 + $0x1008] sm:$0xff]   ;;  %v885_v59 = vrot.slane %v857_v53, %v12437_v37 }
 0x247   :  { %11002 = vmatprep.subr.bf16.mxu1 %v11905_v9  ;;  %8717 = vmatprep.mubr.bf16.mxu0 %v1299_v1  ;;  %v11935_v8 = vld [vmem:[#allocation5 + $0x1088] sm:$0xff]   ;;  %v11936_v9 = vld [vmem:[#allocation5 + $0x1050] sm:$0xff]   ;;  %v11963_v1 = vld [vmem:[#allocation5 + $0x1180] sm:$0xff]  }
 0x248   :  { %8757 = vmatprep.mubr.bf16.mxu1 %v1301_v2  ;;  %v889_v61 = vcombine.high %v871_v56, %v885_v59  ;;  %v175_v49 = vld [vmem:[#allocation2 + $0x2c8] sm:$0xff] }
 0x249   :  { %10981 = vmatpush3.bf16.msra.mxu0 %v11906_v10  ;;  %v11937_v10 = vld [vmem:[#allocation5 + $0x10d0] sm:$0xff]  }
 0x24a   :  { %11003 = vmatpush3.bf16.msra.mxu1 %v11907_v11  ;;  %10982 = vmatprep.subr.bf16.mxu0 %v11908_v12  ;;  %v11938_v11 = vld [vmem:[#allocation5 + $0x1010] sm:$0xff]  }
 0x24b   :  { %11004 = vmatprep.subr.bf16.mxu1 %v11909_v13  ;;  %v11939_v12 = vld [vmem:[#allocation5 + $0x1090] sm:$0xff]   ;;  %v11940_v13 = vld [vmem:[#allocation5 + $0x1058] sm:$0xff]  }
 0x24d   :  { %10983 = vmatpush3.bf16.msra.mxu0 %v11910_v14  ;;  %v11941_v14 = vld [vmem:[#allocation5 + $0x10d8] sm:$0xff]  }
 0x24e   :  { %11005 = vmatpush3.bf16.msra.mxu1 %v11911_v15  ;;  %10984 = vmatprep.subr.bf16.mxu0 %v11912_v16  ;;  %v11942_v15 = vld [vmem:[#allocation5 + $0x1018] sm:$0xff]  }
 0x24f   :  { %11006 = vmatprep.subr.bf16.mxu1 %v11913_v17  ;;  %v11943_v16 = vld [vmem:[#allocation5 + $0x1098] sm:$0xff]  }
 0x251   :  { %10985 = vmatpush3.bf16.msra.mxu0 %v11914_v21 }
 0x252   :  { %11007 = vmatpush3.bf16.msra.mxu1 %v11915_v24  ;;  %10986 = vmatprep.subr.bf16.mxu0 %v11916_v26 }
 0x253   :  { %v10684_v18 = vpop.f32.mrb[32].mxu0  ;;  %11008 = vmatprep.subr.bf16.mxu1 %v11917_v28  ;;  %v11948_v28 = vld [vmem:[#allocation5 + $0x1068] sm:$0xff]  }
 0x254   :  { %v10706_v19 = vpop.f32.mrb[32].mxu1  ;;  %v10685_v20 = vpop.f32.mrb[33].mxu0 }
 0x255   :  { %v10686_v22 = vadd.f32 %v10685_v20, %v10684_v18  ;;  %v10707_v23 = vpop.f32.mrb[33].mxu1  ;;  %v10687_v30 = vpop.f32.mrb[34].mxu0  ;;  %10987 = vmatpush3.bf16.msra.mxu0 %v11918_v36  ;;  %v11944_v18 = vld [vmem:[#allocation5 + $0x1060] sm:$0xff]  }
 0x256   :  { %v10708_v25 = vadd.f32 %v10707_v23, %v10706_v19  ;;  %v10709_v31 = vpop.f32.mrb[34].mxu1  ;;  %v10688_v32 = vpop.f32.mrb[35].mxu0  ;;  %11009 = vmatpush3.bf16.msra.mxu1 %v11919_v39  ;;  %10988 = vmatprep.subr.bf16.mxu0 %v11920_v27  ;;  %v11945_v19 = vld [vmem:[#allocation5 + $0x10e0] sm:$0xff]   ;;  %v11950_v27 = vld [vmem:[#allocation5 + $0x1028] sm:$0xff]  }
 0x257   :  { %v8160_v34 = vadd.f32 %v10686_v22, %v12516_v29  ;;  %v10710_v38 = vpop.f32.mrb[35].mxu1  ;;  %v11925_v29 = vld [vmem:[#allocation5 + $0xff8] sm:$0xff]   ;;  %11010 = vmatprep.subr.bf16.mxu1 %v11921_v40  ;;  %v11946_v22 = vld [vmem:[#allocation5 + $0x1020] sm:$0xff]   ;;  %v11949_v32 = vld [vmem:[#allocation5 + $0x10e8] sm:$0xff]  }
 0x258   :  { %v11947_v23 = vld [vmem:[#allocation5 + $0x10a0] sm:$0xff]   ;;  %v11951_v40 = vld [vmem:[#allocation5 + $0x10a8] sm:$0xff]  }
 0x259   :  { %v12523_v33 = vadd.f32 %v10708_v25, %v8160_v34  ;;  %10989 = vmatpush3.bf16.msra.mxu0 %v11922_v35  ;;  %v11952_v35 = vld [vmem:[#allocation5 + $0x1070] sm:$0xff]  }
 0x25a   :  { %11011 = vmatpush3.bf16.msra.mxu1 %v11923_v41  ;;  %10990 = vmatprep.subr.bf16.mxu0 %v11924_v42  ;;  %v11953_v41 = vld [vmem:[#allocation5 + $0x10f0] sm:$0xff]  }
 0x25b   :  { %11012 = vmatprep.subr.bf16.mxu1 %v11925_v29  ;;  %v11954_v42 = vld [vmem:[#allocation5 + $0x1030] sm:$0xff]  }
 0x25c   :  { %v11955_v29 = vld [vmem:[#allocation5 + $0x10b0] sm:$0xff]  }
 0x25d   :  { %10991 = vmatpush3.bf16.msra.mxu0 %v11926_v43  ;;  %v11957_v43 = vld [vmem:[#allocation5 + $0x10f8] sm:$0xff]  }
 0x25e   :  { %11013 = vmatpush3.bf16.msra.mxu1 %v11927_v50  ;;  %11020 = vmatprep.subr.bf16.mxu0 %v11928_v55  ;;  %v854_v50 = vcombine.low %v102_v46, %v126_v47  ;;  %v11990_v46 = vld [vmem:[#allocation5 + $0x1138] sm:$0xff]   ;;  %v127_v47 = vld [vmem:[#allocation2 + $0x148] sm:$0xff] }
 0x25f   :  { %11042 = vmatprep.subr.bf16.mxu1 %v11929_v58  ;;  %v878_v58 = vrot.slane %v856_v52, %v12437_v37  ;;  %v892_v52 = vcombine.low %v151_v48, %v175_v49 }
 0x260   :  { %8718 = vmatmul.mubr.bf16.vlgmr.msra.gmra.mrb[60].mxu0 %v1298_v3  ;;  %v864_v55 = vrot.slane %v854_v50, %v12437_v37  ;;  %v1305_v3 = vpack.c.bf16 %v889_v61, %v889_v61  ;;  %v11991_v50 = vld [vmem:[#allocation5 + $0x11b8] sm:$0xff]  }
 0x261   :  { %8758 = vmatmul.mubr.bf16.vlgmr.msra.gmra.mrb[60].mxu1 %v1300_v4  ;;  %11021 = vmatpush3.bf16.msra.mxu0 %v11930_v63  ;;  %v11962_v63 = vld [vmem:[#allocation5 + $0x1100] sm:$0xff]  }
 0x262   :  { %11043 = vmatpush3.bf16.msra.mxu1 %v11931_v0  ;;  %11022 = vmatprep.subr.bf16.mxu0 %v11932_v5  ;;  %v887_v60 = vcombine.high %v864_v55, %v878_v58  ;;  %v886_v62 = vcombine.low %v864_v55, %v878_v58  ;;  %v888_v0 = vcombine.low %v871_v56, %v885_v59  ;;  %v11964_v5 = vld [vmem:[#allocation5 + $0x1148] sm:$0xff]   ;;  %v11992_v55 = vld [vmem:[#allocation5 + $0x1240] sm:$0xff]  }
 0x263   :  { %11044 = vmatprep.subr.bf16.mxu1 %v11933_v6  ;;  %8837 = vmatprep.mubr.bf16.mxu1 %v1305_v3  ;;  %v11993_v59 = vld [vmem:[#allocation5 + $0x12c0] sm:$0xff]  }
 0x264   :  { %v1303_v2 = vpack.c.bf16 %v887_v60, %v887_v60  ;;  %v1302_v4 = vpack.c.bf16 %v886_v62, %v886_v62  ;;  %v1304_v6 = vpack.c.bf16 %v888_v0, %v888_v0 }
 0x265   :  { %11023 = vmatpush3.bf16.msra.mxu0 %v11934_v7  ;;  %v11965_v7 = vld [vmem:[#allocation5 + $0x11c8] sm:$0xff]  }
 0x266   :  { %11045 = vmatpush3.bf16.msra.mxu1 %v11935_v8  ;;  %11024 = vmatprep.subr.bf16.mxu0 %v11936_v9  ;;  %v11966_v8 = vld [vmem:[#allocation5 + $0x1108] sm:$0xff]  }
 0x267   :  { %11046 = vmatprep.subr.bf16.mxu1 %v11937_v10  ;;  %8797 = vmatprep.mubr.bf16.mxu0 %v1303_v2  ;;  %v11967_v9 = vld [vmem:[#allocation5 + $0x1188] sm:$0xff]   ;;  %v11968_v10 = vld [vmem:[#allocation5 + $0x1150] sm:$0xff]   ;;  %v11995_v2 = vld [vmem:[#allocation5 + $0x1280] sm:$0xff]  }
 0x269   :  { %11025 = vmatpush3.bf16.msra.mxu0 %v11938_v11  ;;  %v11969_v11 = vld [vmem:[#allocation5 + $0x11d0] sm:$0xff]  }
 0x26a   :  { %11047 = vmatpush3.bf16.msra.mxu1 %v11939_v12  ;;  %11026 = vmatprep.subr.bf16.mxu0 %v11940_v13  ;;  %v11970_v12 = vld [vmem:[#allocation5 + $0x1110] sm:$0xff]  }
 0x26b   :  { %11048 = vmatprep.subr.bf16.mxu1 %v11941_v14  ;;  %v11971_v13 = vld [vmem:[#allocation5 + $0x1190] sm:$0xff]   ;;  %v11972_v14 = vld [vmem:[#allocation5 + $0x1158] sm:$0xff]  }
 0x26d   :  { %11027 = vmatpush3.bf16.msra.mxu0 %v11942_v15  ;;  %v11973_v15 = vld [vmem:[#allocation5 + $0x11d8] sm:$0xff]  }
 0x26e   :  { %11049 = vmatpush3.bf16.msra.mxu1 %v11943_v16  ;;  %11028 = vmatprep.subr.bf16.mxu0 %v11944_v18  ;;  %v11974_v16 = vld [vmem:[#allocation5 + $0x1118] sm:$0xff]  }
 0x26f   :  { %11050 = vmatprep.subr.bf16.mxu1 %v11945_v19  ;;  %v11976_v19 = vld [vmem:[#allocation5 + $0x1160] sm:$0xff]  }
 0x271   :  { %11029 = vmatpush3.bf16.msra.mxu0 %v11946_v22 }
 0x272   :  { %11051 = vmatpush3.bf16.msra.mxu1 %v11947_v23  ;;  %11030 = vmatprep.subr.bf16.mxu0 %v11948_v28  ;;  %v11978_v23 = vld [vmem:[#allocation5 + $0x1120] sm:$0xff]  }
 0x273   :  { %v10728_v17 = vpop.f32.mrb[36].mxu0  ;;  %11052 = vmatprep.subr.bf16.mxu1 %v11949_v32 }
 0x274   :  { %v10750_v20 = vpop.f32.mrb[36].mxu1  ;;  %v10729_v21 = vpop.f32.mrb[37].mxu0 }
 0x275   :  { %v10730_v24 = vadd.f32 %v10729_v21, %v10728_v17  ;;  %v10751_v25 = vpop.f32.mrb[37].mxu1  ;;  %v10731_v30 = vpop.f32.mrb[38].mxu0  ;;  %11031 = vmatpush3.bf16.msra.mxu0 %v11950_v27  ;;  %v11975_v17 = vld [vmem:[#allocation5 + $0x1198] sm:$0xff]  }
 0x276   :  { %v10752_v26 = vadd.f32 %v10751_v25, %v10750_v20  ;;  %v10753_v31 = vpop.f32.mrb[38].mxu1  ;;  %v10732_v36 = vpop.f32.mrb[39].mxu0  ;;  %11053 = vmatpush3.bf16.msra.mxu1 %v11951_v40  ;;  %11032 = vmatprep.subr.bf16.mxu0 %v11952_v35  ;;  %v11977_v20 = vld [vmem:[#allocation5 + $0x11e0] sm:$0xff]   ;;  %v11982_v35 = vld [vmem:[#allocation5 + $0x1128] sm:$0xff]  }
 0x277   :  { %v8240_v34 = vadd.f32 %v10730_v24, %v12523_v33  ;;  %v10754_v38 = vpop.f32.mrb[39].mxu1  ;;  %v11956_v33 = vld [vmem:[#allocation5 + $0x1078] sm:$0xff]   ;;  %11054 = vmatprep.subr.bf16.mxu1 %v11953_v41  ;;  %v11979_v24 = vld [vmem:[#allocation5 + $0x11a0] sm:$0xff]   ;;  %v11980_v36 = vld [vmem:[#allocation5 + $0x1168] sm:$0xff]  }
 0x278   :  { %v11981_v38 = vld [vmem:[#allocation5 + $0x11e8] sm:$0xff]  }
 0x279   :  { %v12530_v39 = vadd.f32 %v10752_v26, %v8240_v34  ;;  %11033 = vmatpush3.bf16.msra.mxu0 %v11954_v42  ;;  %v11983_v41 = vld [vmem:[#allocation5 + $0x11a8] sm:$0xff]   ;;  %v11984_v42 = vld [vmem:[#allocation5 + $0x1170] sm:$0xff]  }
 0x27a   :  { %11055 = vmatpush3.bf16.msra.mxu1 %v11955_v29  ;;  %11034 = vmatprep.subr.bf16.mxu0 %v11956_v33  ;;  %v11985_v29 = vld [vmem:[#allocation5 + $0x11f0] sm:$0xff]  }
 0x27b   :  { %11056 = vmatprep.subr.bf16.mxu1 %v11957_v43  ;;  %v11986_v33 = vld [vmem:[#allocation5 + $0x1130] sm:$0xff]  }
 0x27c   :  { %v11987_v43 = vld [vmem:[#allocation5 + $0x11b0] sm:$0xff]  }
 0x27d   :  { %11035 = vmatpush3.bf16.msra.mxu0 %v11958_v44  ;;  %v11989_v44 = vld [vmem:[#allocation5 + $0x11f8] sm:$0xff]  }
 0x27e   :  { %11057 = vmatpush3.bf16.msra.mxu1 %v11959_v45  ;;  %11064 = vmatprep.subr.bf16.mxu0 %v11960_v54  ;;  %v103_v45 = vld [vmem:[#allocation2 + $0x88] sm:$0xff]  ;;  %v893_v54 = vcombine.high %v151_v48, %v175_v49  ;;  %v128_v48 = vld [vmem:[#allocation2 + $0x150] sm:$0xff] }
 0x27f   :  { %11086 = vmatprep.subr.bf16.mxu1 %v11961_v57  ;;  %v890_v51 = vcombine.low %v103_v45, %v127_v47  ;;  %v891_v53 = vcombine.high %v103_v45, %v127_v47  ;;  %v914_v57 = vrot.slane %v892_v52, %v12437_v37  ;;  %v12020_v45 = vld [vmem:[#allocation5 + $0x1278] sm:$0xff]   ;;  %v104_v47 = vld [vmem:[#allocation2 + $0x90] sm:$0xff] }
 0x280   :  { %8798 = vmatmul.mubr.bf16.vlgmr.msra.gmra.mrb[64].mxu0 %v1302_v4  ;;  %v921_v60 = vrot.slane %v893_v54, %v12437_v37  ;;  %v152_v49 = vld [vmem:[#allocation2 + $0x210] sm:$0xff]  ;;  %v927_v52 = vcombine.high %v104_v47, %v128_v48 }
 0x281   :  { %8838 = vmatmul.mubr.bf16.vlgmr.msra.gmra.mrb[64].mxu1 %v1304_v6  ;;  %11065 = vmatpush3.bf16.msra.mxu0 %v11962_v63  ;;  %v900_v56 = vrot.slane %v890_v51, %v12437_v37  ;;  %v907_v58 = vrot.slane %v891_v53, %v12437_v37  ;;  %v11994_v63 = vld [vmem:[#allocation5 + $0x1200] sm:$0xff]   ;;  %v926_v51 = vcombine.low %v104_v47, %v128_v48  ;;  %v12023_v53 = vld [vmem:[#allocation5 + $0x12b8] sm:$0xff]  }
 0x282   :  { %11087 = vmatpush3.bf16.msra.mxu1 %v11963_v1  ;;  %11066 = vmatprep.subr.bf16.mxu0 %v11964_v5  ;;  %v11996_v5 = vld [vmem:[#allocation5 + $0x1248] sm:$0xff]   ;;  %v12054_v47 = vld [vmem:[#allocation5 + $0x1338] sm:$0xff]  }
 0x283   :  { %11088 = vmatprep.subr.bf16.mxu1 %v11965_v7  ;;  %v923_v61 = vcombine.high %v900_v56, %v914_v57  ;;  %v922_v62 = vcombine.low %v900_v56, %v914_v57  ;;  %v925_v0 = vcombine.high %v907_v58, %v921_v60  ;;  %v924_v1 = vcombine.low %v907_v58, %v921_v60  ;;  %v12024_v58 = vld [vmem:[#allocation5 + $0x1340] sm:$0xff]   ;;  %v12055_v48 = vld [vmem:[#allocation5 + $0x13b8] sm:$0xff]  }
 0x284   :  { %v936_v56 = vrot.slane %v926_v51, %v12437_v37  ;;  %v943_v57 = vrot.slane %v927_v52, %v12437_v37  ;;  %v153_v51 = vld [vmem:[#allocation2 + $0x218] sm:$0xff] }
 0x285   :  { %11067 = vmatpush3.bf16.msra.mxu0 %v11966_v8  ;;  %v1307_v3 = vpack.c.bf16 %v923_v61, %v923_v61  ;;  %v1306_v4 = vpack.c.bf16 %v922_v62, %v922_v62  ;;  %v1309_v6 = vpack.c.bf16 %v925_v0, %v925_v0  ;;  %v1308_v7 = vpack.c.bf16 %v924_v1, %v924_v1  ;;  %v11997_v8 = vld [vmem:[#allocation5 + $0x12c8] sm:$0xff]   ;;  %v12025_v61 = vld [vmem:[#allocation5 + $0x13c0] sm:$0xff]   ;;  %v177_v52 = vld [vmem:[#allocation2 + $0x2d8] sm:$0xff] }
 0x286   :  { %11089 = vmatpush3.bf16.msra.mxu1 %v11967_v9  ;;  %11068 = vmatprep.subr.bf16.mxu0 %v11968_v10  ;;  %v11998_v9 = vld [vmem:[#allocation5 + $0x1208] sm:$0xff]  }
 0x287   :  { %11090 = vmatprep.subr.bf16.mxu1 %v11969_v11  ;;  %8877 = vmatprep.mubr.bf16.mxu0 %v1307_v3  ;;  %v11999_v10 = vld [vmem:[#allocation5 + $0x1288] sm:$0xff]   ;;  %v12000_v11 = vld [vmem:[#allocation5 + $0x1250] sm:$0xff]   ;;  %v12027_v3 = vld [vmem:[#allocation5 + $0x1380] sm:$0xff]  }
 0x288   :  { %8917 = vmatprep.mubr.bf16.mxu1 %v1309_v6 }
 0x289   :  { %11069 = vmatpush3.bf16.msra.mxu0 %v11970_v12  ;;  %v12001_v12 = vld [vmem:[#allocation5 + $0x12d0] sm:$0xff]  }
 0x28a   :  { %11091 = vmatpush3.bf16.msra.mxu1 %v11971_v13  ;;  %11070 = vmatprep.subr.bf16.mxu0 %v11972_v14  ;;  %v12002_v13 = vld [vmem:[#allocation5 + $0x1210] sm:$0xff]  }
 0x28b   :  { %11092 = vmatprep.subr.bf16.mxu1 %v11973_v15  ;;  %v12003_v14 = vld [vmem:[#allocation5 + $0x1290] sm:$0xff]   ;;  %v12004_v15 = vld [vmem:[#allocation5 + $0x1258] sm:$0xff]  }
 0x28d   :  { %11071 = vmatpush3.bf16.msra.mxu0 %v11974_v16  ;;  %v12005_v16 = vld [vmem:[#allocation5 + $0x12d8] sm:$0xff]  }
 0x28e   :  { %11093 = vmatpush3.bf16.msra.mxu1 %v11975_v17  ;;  %11072 = vmatprep.subr.bf16.mxu0 %v11976_v19  ;;  %v12006_v17 = vld [vmem:[#allocation5 + $0x1218] sm:$0xff]   ;;  %v12008_v19 = vld [vmem:[#allocation5 + $0x1260] sm:$0xff]  }
 0x28f   :  { %11094 = vmatprep.subr.bf16.mxu1 %v11977_v20  ;;  %v12009_v20 = vld [vmem:[#allocation5 + $0x12e0] sm:$0xff]  }
 0x291   :  { %11073 = vmatpush3.bf16.msra.mxu0 %v11978_v23 }
 0x292   :  { %11095 = vmatpush3.bf16.msra.mxu1 %v11979_v24  ;;  %11074 = vmatprep.subr.bf16.mxu0 %v11980_v36  ;;  %v12010_v24 = vld [vmem:[#allocation5 + $0x1220] sm:$0xff]  }
 0x293   :  { %v10772_v18 = vpop.f32.mrb[40].mxu0  ;;  %11096 = vmatprep.subr.bf16.mxu1 %v11981_v38  ;;  %v12013_v38 = vld [vmem:[#allocation5 + $0x12e8] sm:$0xff]  }
 0x294   :  { %v10794_v21 = vpop.f32.mrb[40].mxu1  ;;  %v10773_v22 = vpop.f32.mrb[41].mxu0 }
 0x295   :  { %v10774_v25 = vadd.f32 %v10773_v22, %v10772_v18  ;;  %v10795_v26 = vpop.f32.mrb[41].mxu1  ;;  %v10775_v31 = vpop.f32.mrb[42].mxu0  ;;  %11075 = vmatpush3.bf16.msra.mxu0 %v11982_v35  ;;  %v12007_v18 = vld [vmem:[#allocation5 + $0x1298] sm:$0xff]  }
 0x296   :  { %v10796_v30 = vadd.f32 %v10795_v26, %v10794_v21  ;;  %v10797_v34 = vpop.f32.mrb[42].mxu1  ;;  %v10776_v32 = vpop.f32.mrb[43].mxu0  ;;  %11097 = vmatpush3.bf16.msra.mxu1 %v11983_v41  ;;  %11076 = vmatprep.subr.bf16.mxu0 %v11984_v42 }
 0x297   :  { %v8320_v28 = vadd.f32 %v10774_v25, %v12530_v39  ;;  %v10798_v27 = vpop.f32.mrb[43].mxu1  ;;  %v11988_v39 = vld [vmem:[#allocation5 + $0x1178] sm:$0xff]   ;;  %11098 = vmatprep.subr.bf16.mxu1 %v11985_v29  ;;  %v12012_v34 = vld [vmem:[#allocation5 + $0x1268] sm:$0xff]  }
 0x298   :  { %v12014_v27 = vld [vmem:[#allocation5 + $0x1228] sm:$0xff]  }
 0x299   :  { %v12537_v40 = vadd.f32 %v10796_v30, %v8320_v28  ;;  %11077 = vmatpush3.bf16.msra.mxu0 %v11986_v33  ;;  %v12011_v30 = vld [vmem:[#allocation5 + $0x12a0] sm:$0xff]   ;;  %v12015_v29 = vld [vmem:[#allocation5 + $0x12a8] sm:$0xff]   ;;  %v12016_v33 = vld [vmem:[#allocation5 + $0x1270] sm:$0xff]  }
 0x29a   :  { %11099 = vmatpush3.bf16.msra.mxu1 %v11987_v43  ;;  %11078 = vmatprep.subr.bf16.mxu0 %v11988_v39  ;;  %v12017_v43 = vld [vmem:[#allocation5 + $0x12f0] sm:$0xff]  }
 0x29b   :  { %11100 = vmatprep.subr.bf16.mxu1 %v11989_v44  ;;  %v12018_v39 = vld [vmem:[#allocation5 + $0x1230] sm:$0xff]  }
 0x29c   :  { %v12019_v44 = vld [vmem:[#allocation5 + $0x12b0] sm:$0xff]  }
 0x29d   :  { %11079 = vmatpush3.bf16.msra.mxu0 %v11990_v46  ;;  %v12022_v46 = vld [vmem:[#allocation5 + $0x1238] sm:$0xff]  }
 0x29e   :  { %11101 = vmatpush3.bf16.msra.mxu1 %v11991_v50  ;;  %11108 = vmatprep.subr.bf16.mxu0 %v11992_v55  ;;  %v176_v50 = vld [vmem:[#allocation2 + $0x2d0] sm:$0xff] }
 0x29f   :  { %11130 = vmatprep.subr.bf16.mxu1 %v11993_v59  ;;  %v928_v54 = vcombine.low %v152_v49, %v176_v50  ;;  %v929_v55 = vcombine.high %v152_v49, %v176_v50  ;;  %v105_v49 = vld [vmem:[#allocation2 + $0x98] sm:$0xff] }
 0x2a0   :  { %8878 = vmatmul.mubr.bf16.vlgmr.msra.gmra.mrb[68].mxu0 %v1306_v4  ;;  %v129_v50 = vld [vmem:[#allocation2 + $0x158] sm:$0xff] }
 0x2a1   :  { %8918 = vmatmul.mubr.bf16.vlgmr.msra.gmra.mrb[68].mxu1 %v1308_v7  ;;  %11109 = vmatpush3.bf16.msra.mxu0 %v11994_v63  ;;  %v950_v59 = vrot.slane %v928_v54, %v12437_v37  ;;  %v957_v60 = vrot.slane %v929_v55, %v12437_v37  ;;  %v963_v54 = vcombine.high %v105_v49, %v129_v50 }
 0x2a2   :  { %11131 = vmatpush3.bf16.msra.mxu1 %v11995_v2  ;;  %11110 = vmatprep.subr.bf16.mxu0 %v11996_v5  ;;  %v12026_v2 = vld [vmem:[#allocation5 + $0x1300] sm:$0xff]   ;;  %v964_v55 = vcombine.low %v153_v51, %v177_v52 }
 0x2a3   :  { %11132 = vmatprep.subr.bf16.mxu1 %v11997_v8  ;;  %v959_v62 = vcombine.high %v936_v56, %v950_v59  ;;  %v961_v63 = vcombine.high %v943_v57, %v957_v60  ;;  %v958_v0 = vcombine.low %v936_v56, %v950_v59  ;;  %v960_v1 = vcombine.low %v943_v57, %v957_v60  ;;  %v12028_v8 = vld [vmem:[#allocation5 + $0x1348] sm:$0xff]   ;;  %v12056_v57 = vld [vmem:[#allocation5 + $0x1440] sm:$0xff]  }
 0x2a4   :  { %v965_v56 = vcombine.high %v153_v51, %v177_v52  ;;  %v979_v59 = vrot.slane %v963_v54, %v12437_v37  ;;  %v12057_v60 = vld [vmem:[#allocation5 + $0x14c0] sm:$0xff]  }
 0x2a5   :  { %11111 = vmatpush3.bf16.msra.mxu0 %v11998_v9  ;;  %v1311_v4 = vpack.c.bf16 %v959_v62, %v959_v62  ;;  %v1313_v5 = vpack.c.bf16 %v961_v63, %v961_v63  ;;  %v1310_v6 = vpack.c.bf16 %v958_v0, %v958_v0  ;;  %v1312_v7 = vpack.c.bf16 %v960_v1, %v960_v1  ;;  %v12029_v9 = vld [vmem:[#allocation5 + $0x13c8] sm:$0xff]   ;;  %v154_v51 = vld [vmem:[#allocation2 + $0x220] sm:$0xff] }
 0x2a6   :  { %11133 = vmatpush3.bf16.msra.mxu1 %v11999_v10  ;;  %11112 = vmatprep.subr.bf16.mxu0 %v12000_v11  ;;  %v12030_v10 = vld [vmem:[#allocation5 + $0x1308] sm:$0xff]   ;;  %v993_v62 = vrot.slane %v965_v56, %v12437_v37  ;;  %v178_v52 = vld [vmem:[#allocation2 + $0x2e0] sm:$0xff] }
 0x2a7   :  { %11134 = vmatprep.subr.bf16.mxu1 %v12001_v12  ;;  %8957 = vmatprep.mubr.bf16.mxu0 %v1311_v4  ;;  %v12031_v11 = vld [vmem:[#allocation5 + $0x1388] sm:$0xff]   ;;  %v12032_v12 = vld [vmem:[#allocation5 + $0x1350] sm:$0xff]   ;;  %v12059_v4 = vld [vmem:[#allocation5 + $0x1480] sm:$0xff]  }
 0x2a8   :  { %8997 = vmatprep.mubr.bf16.mxu1 %v1313_v5  ;;  %v997_v0 = vcombine.high %v979_v59, %v993_v62 }
 0x2a9   :  { %11113 = vmatpush3.bf16.msra.mxu0 %v12002_v13  ;;  %v12033_v13 = vld [vmem:[#allocation5 + $0x13d0] sm:$0xff]  }
 0x2aa   :  { %11135 = vmatpush3.bf16.msra.mxu1 %v12003_v14  ;;  %11114 = vmatprep.subr.bf16.mxu0 %v12004_v15  ;;  %v12034_v14 = vld [vmem:[#allocation5 + $0x1310] sm:$0xff]  }
 0x2ab   :  { %11136 = vmatprep.subr.bf16.mxu1 %v12005_v16  ;;  %v12035_v15 = vld [vmem:[#allocation5 + $0x1390] sm:$0xff]   ;;  %v12036_v16 = vld [vmem:[#allocation5 + $0x1358] sm:$0xff]  }
 0x2ad   :  { %11115 = vmatpush3.bf16.msra.mxu0 %v12006_v17  ;;  %v12037_v17 = vld [vmem:[#allocation5 + $0x13d8] sm:$0xff]  }
 0x2ae   :  { %11137 = vmatpush3.bf16.msra.mxu1 %v12007_v18  ;;  %11116 = vmatprep.subr.bf16.mxu0 %v12008_v19  ;;  %v12038_v18 = vld [vmem:[#allocation5 + $0x1318] sm:$0xff]  }
 0x2af   :  { %11138 = vmatprep.subr.bf16.mxu1 %v12009_v20  ;;  %v12039_v19 = vld [vmem:[#allocation5 + $0x1398] sm:$0xff]  }
 0x2b1   :  { %11117 = vmatpush3.bf16.msra.mxu0 %v12010_v24 }
 0x2b2   :  { %11139 = vmatpush3.bf16.msra.mxu1 %v12011_v30  ;;  %11118 = vmatprep.subr.bf16.mxu0 %v12012_v34 }
 0x2b3   :  { %v10816_v21 = vpop.f32.mrb[44].mxu0  ;;  %11140 = vmatprep.subr.bf16.mxu1 %v12013_v38  ;;  %v12044_v38 = vld [vmem:[#allocation5 + $0x1368] sm:$0xff]  }
 0x2b4   :  { %v10838_v22 = vpop.f32.mrb[44].mxu1  ;;  %v10817_v23 = vpop.f32.mrb[45].mxu0 }
 0x2b5   :  { %v10818_v25 = vadd.f32 %v10817_v23, %v10816_v21  ;;  %v10839_v26 = vpop.f32.mrb[45].mxu1  ;;  %v10819_v28 = vpop.f32.mrb[46].mxu0  ;;  %11119 = vmatpush3.bf16.msra.mxu0 %v12014_v27  ;;  %v12040_v21 = vld [vmem:[#allocation5 + $0x1360] sm:$0xff]  }
 0x2b6   :  { %v10840_v31 = vadd.f32 %v10839_v26, %v10838_v22  ;;  %v10841_v36 = vpop.f32.mrb[46].mxu1  ;;  %v10820_v35 = vpop.f32.mrb[47].mxu0  ;;  %11141 = vmatpush3.bf16.msra.mxu1 %v12015_v29  ;;  %11120 = vmatprep.subr.bf16.mxu0 %v12016_v33  ;;  %v12041_v22 = vld [vmem:[#allocation5 + $0x13e0] sm:$0xff]   ;;  %v12046_v33 = vld [vmem:[#allocation5 + $0x1328] sm:$0xff]  }
 0x2b7   :  { %v8400_v32 = vadd.f32 %v10818_v25, %v12537_v40  ;;  %v10842_v41 = vpop.f32.mrb[47].mxu1  ;;  %v12021_v40 = vld [vmem:[#allocation5 + $0x12f8] sm:$0xff]   ;;  %11142 = vmatprep.subr.bf16.mxu1 %v12017_v43  ;;  %v12042_v25 = vld [vmem:[#allocation5 + $0x1320] sm:$0xff]   ;;  %v12045_v35 = vld [vmem:[#allocation5 + $0x13e8] sm:$0xff]  }
 0x2b8   :  { %v12043_v26 = vld [vmem:[#allocation5 + $0x13a0] sm:$0xff]   ;;  %v12047_v43 = vld [vmem:[#allocation5 + $0x13a8] sm:$0xff]  }
 0x2b9   :  { %v12544_v42 = vadd.f32 %v10840_v31, %v8400_v32  ;;  %11121 = vmatpush3.bf16.msra.mxu0 %v12018_v39  ;;  %v12048_v39 = vld [vmem:[#allocation5 + $0x1370] sm:$0xff]  }
 0x2ba   :  { %11143 = vmatpush3.bf16.msra.mxu1 %v12019_v44  ;;  %11122 = vmatprep.subr.bf16.mxu0 %v12020_v45  ;;  %v12049_v44 = vld [vmem:[#allocation5 + $0x13f0] sm:$0xff]  }
 0x2bb   :  { %11144 = vmatprep.subr.bf16.mxu1 %v12021_v40  ;;  %v12050_v45 = vld [vmem:[#allocation5 + $0x1330] sm:$0xff]  }
 0x2bc   :  { %v12051_v40 = vld [vmem:[#allocation5 + $0x13b0] sm:$0xff]  }
 0x2bd   :  { %11123 = vmatpush3.bf16.msra.mxu0 %v12022_v46  ;;  %v12053_v46 = vld [vmem:[#allocation5 + $0x13f8] sm:$0xff]  }
 0x2be   :  { %11145 = vmatpush3.bf16.msra.mxu1 %v12023_v53  ;;  %11152 = vmatprep.subr.bf16.mxu0 %v12024_v58  ;;  %v962_v53 = vcombine.low %v105_v49, %v129_v50  ;;  %v12086_v49 = vld [vmem:[#allocation5 + $0x1438] sm:$0xff]   ;;  %v130_v50 = vld [vmem:[#allocation2 + $0x160] sm:$0xff] }
 0x2bf   :  { %11174 = vmatprep.subr.bf16.mxu1 %v12025_v61  ;;  %v986_v61 = vrot.slane %v964_v55, %v12437_v37  ;;  %v1000_v55 = vcombine.low %v154_v51, %v178_v52 }
 0x2c0   :  { %8958 = vmatmul.mubr.bf16.vlgmr.msra.gmra.mrb[72].mxu0 %v1310_v6  ;;  %v972_v58 = vrot.slane %v962_v53, %v12437_v37  ;;  %v1317_v6 = vpack.c.bf16 %v997_v0, %v997_v0  ;;  %v12087_v53 = vld [vmem:[#allocation5 + $0x14b8] sm:$0xff]  }
 0x2c1   :  { %8998 = vmatmul.mubr.bf16.vlgmr.msra.gmra.mrb[72].mxu1 %v1312_v7  ;;  %11153 = vmatpush3.bf16.msra.mxu0 %v12026_v2  ;;  %v12058_v2 = vld [vmem:[#allocation5 + $0x1400] sm:$0xff]  }
 0x2c2   :  { %11175 = vmatpush3.bf16.msra.mxu1 %v12027_v3  ;;  %11154 = vmatprep.subr.bf16.mxu0 %v12028_v8  ;;  %v995_v63 = vcombine.high %v972_v58, %v986_v61  ;;  %v994_v1 = vcombine.low %v972_v58, %v986_v61  ;;  %v996_v3 = vcombine.low %v979_v59, %v993_v62  ;;  %v12060_v8 = vld [vmem:[#allocation5 + $0x1448] sm:$0xff]   ;;  %v12088_v58 = vld [vmem:[#allocation5 + $0x1540] sm:$0xff]  }
 0x2c3   :  { %11176 = vmatprep.subr.bf16.mxu1 %v12029_v9  ;;  %9077 = vmatprep.mubr.bf16.mxu1 %v1317_v6  ;;  %v12089_v62 = vld [vmem:[#allocation5 + $0x15c0] sm:$0xff]  }
 0x2c4   :  { %v1315_v5 = vpack.c.bf16 %v995_v63, %v995_v63  ;;  %v1314_v7 = vpack.c.bf16 %v994_v1, %v994_v1  ;;  %v1316_v9 = vpack.c.bf16 %v996_v3, %v996_v3 }
 0x2c5   :  { %11155 = vmatpush3.bf16.msra.mxu0 %v12030_v10  ;;  %v12061_v10 = vld [vmem:[#allocation5 + $0x14c8] sm:$0xff]  }
 0x2c6   :  { %11177 = vmatpush3.bf16.msra.mxu1 %v12031_v11  ;;  %11156 = vmatprep.subr.bf16.mxu0 %v12032_v12  ;;  %v12062_v11 = vld [vmem:[#allocation5 + $0x1408] sm:$0xff]  }
 0x2c7   :  { %11178 = vmatprep.subr.bf16.mxu1 %v12033_v13  ;;  %9037 = vmatprep.mubr.bf16.mxu0 %v1315_v5  ;;  %v12063_v12 = vld [vmem:[#allocation5 + $0x1488] sm:$0xff]   ;;  %v12064_v13 = vld [vmem:[#allocation5 + $0x1450] sm:$0xff]   ;;  %v12091_v5 = vld [vmem:[#allocation5 + $0x1580] sm:$0xff]  }
 0x2c9   :  { %11157 = vmatpush3.bf16.msra.mxu0 %v12034_v14  ;;  %v12065_v14 = vld [vmem:[#allocation5 + $0x14d0] sm:$0xff]  }
 0x2ca   :  { %11179 = vmatpush3.bf16.msra.mxu1 %v12035_v15  ;;  %11158 = vmatprep.subr.bf16.mxu0 %v12036_v16  ;;  %v12066_v15 = vld [vmem:[#allocation5 + $0x1410] sm:$0xff]  }
 0x2cb   :  { %11180 = vmatprep.subr.bf16.mxu1 %v12037_v17  ;;  %v12067_v16 = vld [vmem:[#allocation5 + $0x1490] sm:$0xff]   ;;  %v12068_v17 = vld [vmem:[#allocation5 + $0x1458] sm:$0xff]  }
 0x2cd   :  { %11159 = vmatpush3.bf16.msra.mxu0 %v12038_v18  ;;  %v12069_v18 = vld [vmem:[#allocation5 + $0x14d8] sm:$0xff]  }
 0x2ce   :  { %11181 = vmatpush3.bf16.msra.mxu1 %v12039_v19  ;;  %11160 = vmatprep.subr.bf16.mxu0 %v12040_v21  ;;  %v12070_v19 = vld [vmem:[#allocation5 + $0x1418] sm:$0xff]  }
 0x2cf   :  { %11182 = vmatprep.subr.bf16.mxu1 %v12041_v22  ;;  %v12072_v22 = vld [vmem:[#allocation5 + $0x1460] sm:$0xff]  }
 0x2d1   :  { %11161 = vmatpush3.bf16.msra.mxu0 %v12042_v25 }
 0x2d2   :  { %11183 = vmatpush3.bf16.msra.mxu1 %v12043_v26  ;;  %11162 = vmatprep.subr.bf16.mxu0 %v12044_v38  ;;  %v12074_v26 = vld [vmem:[#allocation5 + $0x1420] sm:$0xff]  }
 0x2d3   :  { %v10860_v20 = vpop.f32.mrb[48].mxu0  ;;  %11184 = vmatprep.subr.bf16.mxu1 %v12045_v35 }
 0x2d4   :  { %v10882_v23 = vpop.f32.mrb[48].mxu1  ;;  %v10861_v24 = vpop.f32.mrb[49].mxu0 }
 0x2d5   :  { %v10862_v30 = vadd.f32 %v10861_v24, %v10860_v20  ;;  %v10883_v31 = vpop.f32.mrb[49].mxu1  ;;  %v10863_v28 = vpop.f32.mrb[50].mxu0  ;;  %11163 = vmatpush3.bf16.msra.mxu0 %v12046_v33  ;;  %v12071_v20 = vld [vmem:[#allocation5 + $0x1498] sm:$0xff]  }
 0x2d6   :  { %v10884_v34 = vadd.f32 %v10883_v31, %v10882_v23  ;;  %v10885_v36 = vpop.f32.mrb[50].mxu1  ;;  %v10864_v27 = vpop.f32.mrb[51].mxu0  ;;  %11185 = vmatpush3.bf16.msra.mxu1 %v12047_v43  ;;  %11164 = vmatprep.subr.bf16.mxu0 %v12048_v39  ;;  %v12073_v23 = vld [vmem:[#allocation5 + $0x14e0] sm:$0xff]   ;;  %v12078_v39 = vld [vmem:[#allocation5 + $0x1428] sm:$0xff]  }
 0x2d7   :  { %v8480_v32 = vadd.f32 %v10862_v30, %v12544_v42  ;;  %v10886_v41 = vpop.f32.mrb[51].mxu1  ;;  %v12052_v42 = vld [vmem:[#allocation5 + $0x1378] sm:$0xff]   ;;  %11186 = vmatprep.subr.bf16.mxu1 %v12049_v44  ;;  %v12075_v30 = vld [vmem:[#allocation5 + $0x14a0] sm:$0xff]   ;;  %v12076_v27 = vld [vmem:[#allocation5 + $0x1468] sm:$0xff]  }
 0x2d8   :  { %v12077_v41 = vld [vmem:[#allocation5 + $0x14e8] sm:$0xff]  }
 0x2d9   :  { %v12551_v29 = vadd.f32 %v10884_v34, %v8480_v32  ;;  %11165 = vmatpush3.bf16.msra.mxu0 %v12050_v45  ;;  %v12079_v44 = vld [vmem:[#allocation5 + $0x14a8] sm:$0xff]   ;;  %v12080_v45 = vld [vmem:[#allocation5 + $0x1470] sm:$0xff]  }
 0x2da   :  { %11187 = vmatpush3.bf16.msra.mxu1 %v12051_v40  ;;  %11166 = vmatprep.subr.bf16.mxu0 %v12052_v42  ;;  %v12081_v40 = vld [vmem:[#allocation5 + $0x14f0] sm:$0xff]  }
 0x2db   :  { %11188 = vmatprep.subr.bf16.mxu1 %v12053_v46  ;;  %v12082_v42 = vld [vmem:[#allocation5 + $0x1430] sm:$0xff]  }
 0x2dc   :  { %v12083_v46 = vld [vmem:[#allocation5 + $0x14b0] sm:$0xff]  }
 0x2dd   :  { %11167 = vmatpush3.bf16.msra.mxu0 %v12054_v47  ;;  %v12085_v47 = vld [vmem:[#allocation5 + $0x14f8] sm:$0xff]  }
 0x2de   :  { %11189 = vmatpush3.bf16.msra.mxu1 %v12055_v48  ;;  %11196 = vmatprep.subr.bf16.mxu0 %v12056_v57  ;;  %v106_v48 = vld [vmem:[#allocation2 + $0xa0] sm:$0xff]  ;;  %v1001_v57 = vcombine.high %v154_v51, %v178_v52  ;;  %v131_v51 = vld [vmem:[#allocation2 + $0x168] sm:$0xff] }
 0x2df   :  { %11218 = vmatprep.subr.bf16.mxu1 %v12057_v60  ;;  %v998_v54 = vcombine.low %v106_v48, %v130_v50  ;;  %v999_v56 = vcombine.high %v106_v48, %v130_v50  ;;  %v1022_v60 = vrot.slane %v1000_v55, %v12437_v37  ;;  %v12116_v48 = vld [vmem:[#allocation5 + $0x1578] sm:$0xff]   ;;  %v107_v50 = vld [vmem:[#allocation2 + $0xa8] sm:$0xff] }
 0x2e0   :  { %9038 = vmatmul.mubr.bf16.vlgmr.msra.gmra.mrb[76].mxu0 %v1314_v7  ;;  %v1029_v63 = vrot.slane %v1001_v57, %v12437_v37  ;;  %v155_v52 = vld [vmem:[#allocation2 + $0x228] sm:$0xff]  ;;  %v1035_v55 = vcombine.high %v107_v50, %v131_v51 }
 0x2e1   :  { %9078 = vmatmul.mubr.bf16.vlgmr.msra.gmra.mrb[76].mxu1 %v1316_v9  ;;  %11197 = vmatpush3.bf16.msra.mxu0 %v12058_v2  ;;  %v1008_v59 = vrot.slane %v998_v54, %v12437_v37  ;;  %v1015_v61 = vrot.slane %v999_v56, %v12437_v37  ;;  %v12090_v2 = vld [vmem:[#allocation5 + $0x1500] sm:$0xff]   ;;  %v1034_v54 = vcombine.low %v107_v50, %v131_v51  ;;  %v12119_v56 = vld [vmem:[#allocation5 + $0x15b8] sm:$0xff]  }
 0x2e2   :  { %11219 = vmatpush3.bf16.msra.mxu1 %v12059_v4  ;;  %11198 = vmatprep.subr.bf16.mxu0 %v12060_v8  ;;  %v12092_v8 = vld [vmem:[#allocation5 + $0x1548] sm:$0xff]   ;;  %v12150_v50 = vld [vmem:[#allocation5 + $0x1638] sm:$0xff]  }
 0x2e3   :  { %11220 = vmatprep.subr.bf16.mxu1 %v12061_v10  ;;  %v1031_v0 = vcombine.high %v1008_v59, %v1022_v60  ;;  %v1030_v1 = vcombine.low %v1008_v59, %v1022_v60  ;;  %v1033_v3 = vcombine.high %v1015_v61, %v1029_v63  ;;  %v1032_v4 = vcombine.low %v1015_v61, %v1029_v63  ;;  %v12120_v61 = vld [vmem:[#allocation5 + $0x1640] sm:$0xff]   ;;  %v12151_v51 = vld [vmem:[#allocation5 + $0x16b8] sm:$0xff]  }
 0x2e4   :  { %v1044_v59 = vrot.slane %v1034_v54, %v12437_v37  ;;  %v1051_v60 = vrot.slane %v1035_v55, %v12437_v37  ;;  %v156_v54 = vld [vmem:[#allocation2 + $0x230] sm:$0xff] }
 0x2e5   :  { %11199 = vmatpush3.bf16.msra.mxu0 %v12062_v11  ;;  %v1319_v6 = vpack.c.bf16 %v1031_v0, %v1031_v0  ;;  %v1318_v7 = vpack.c.bf16 %v1030_v1, %v1030_v1  ;;  %v1321_v9 = vpack.c.bf16 %v1033_v3, %v1033_v3  ;;  %v1320_v10 = vpack.c.bf16 %v1032_v4, %v1032_v4  ;;  %v12093_v11 = vld [vmem:[#allocation5 + $0x15c8] sm:$0xff]   ;;  %v12121_v0 = vld [vmem:[#allocation5 + $0x16c0] sm:$0xff]   ;;  %v180_v55 = vld [vmem:[#allocation2 + $0x2f0] sm:$0xff] }
 0x2e6   :  { %11221 = vmatpush3.bf16.msra.mxu1 %v12063_v12  ;;  %11200 = vmatprep.subr.bf16.mxu0 %v12064_v13  ;;  %v12094_v12 = vld [vmem:[#allocation5 + $0x1508] sm:$0xff]  }
 0x2e7   :  { %11222 = vmatprep.subr.bf16.mxu1 %v12065_v14  ;;  %9117 = vmatprep.mubr.bf16.mxu0 %v1319_v6  ;;  %v12095_v13 = vld [vmem:[#allocation5 + $0x1588] sm:$0xff]   ;;  %v12096_v14 = vld [vmem:[#allocation5 + $0x1550] sm:$0xff]   ;;  %v12123_v6 = vld [vmem:[#allocation5 + $0x1680] sm:$0xff]  }
 0x2e8   :  { %9157 = vmatprep.mubr.bf16.mxu1 %v1321_v9 }
 0x2e9   :  { %11201 = vmatpush3.bf16.msra.mxu0 %v12066_v15  ;;  %v12097_v15 = vld [vmem:[#allocation5 + $0x15d0] sm:$0xff]  }
 0x2ea   :  { %11223 = vmatpush3.bf16.msra.mxu1 %v12067_v16  ;;  %11202 = vmatprep.subr.bf16.mxu0 %v12068_v17  ;;  %v12098_v16 = vld [vmem:[#allocation5 + $0x1510] sm:$0xff]  }
 0x2eb   :  { %11224 = vmatprep.subr.bf16.mxu1 %v12069_v18  ;;  %v12099_v17 = vld [vmem:[#allocation5 + $0x1590] sm:$0xff]   ;;  %v12100_v18 = vld [vmem:[#allocation5 + $0x1558] sm:$0xff]  }
 0x2ed   :  { %11203 = vmatpush3.bf16.msra.mxu0 %v12070_v19  ;;  %v12101_v19 = vld [vmem:[#allocation5 + $0x15d8] sm:$0xff]  }
 0x2ee   :  { %11225 = vmatpush3.bf16.msra.mxu1 %v12071_v20  ;;  %11204 = vmatprep.subr.bf16.mxu0 %v12072_v22  ;;  %v12102_v20 = vld [vmem:[#allocation5 + $0x1518] sm:$0xff]   ;;  %v12104_v22 = vld [vmem:[#allocation5 + $0x1560] sm:$0xff]  }
 0x2ef   :  { %11226 = vmatprep.subr.bf16.mxu1 %v12073_v23 }
 0x2f1   :  { %11205 = vmatpush3.bf16.msra.mxu0 %v12074_v26  ;;  %v12106_v26 = vld [vmem:[#allocation5 + $0x1520] sm:$0xff]  }
 0x2f2   :  { %11227 = vmatpush3.bf16.msra.mxu1 %v12075_v30  ;;  %11206 = vmatprep.subr.bf16.mxu0 %v12076_v27 }
 0x2f3   :  { %v10904_v21 = vpop.f32.mrb[52].mxu0  ;;  %11228 = vmatprep.subr.bf16.mxu1 %v12077_v41  ;;  %v12109_v41 = vld [vmem:[#allocation5 + $0x15e8] sm:$0xff]  }
 0x2f4   :  { %v10926_v24 = vpop.f32.mrb[52].mxu1  ;;  %v10905_v25 = vpop.f32.mrb[53].mxu0 }
 0x2f5   :  { %v10906_v31 = vadd.f32 %v10905_v25, %v10904_v21  ;;  %v10927_v34 = vpop.f32.mrb[53].mxu1  ;;  %v10907_v36 = vpop.f32.mrb[54].mxu0  ;;  %11207 = vmatpush3.bf16.msra.mxu0 %v12078_v39  ;;  %v12103_v21 = vld [vmem:[#allocation5 + $0x1598] sm:$0xff]   ;;  %v12110_v39 = vld [vmem:[#allocation5 + $0x1528] sm:$0xff]  }
 0x2f6   :  { %v10928_v28 = vadd.f32 %v10927_v34, %v10926_v24  ;;  %v10929_v32 = vpop.f32.mrb[54].mxu1  ;;  %v10908_v35 = vpop.f32.mrb[55].mxu0  ;;  %11229 = vmatpush3.bf16.msra.mxu1 %v12079_v44  ;;  %11208 = vmatprep.subr.bf16.mxu0 %v12080_v45  ;;  %v12105_v24 = vld [vmem:[#allocation5 + $0x15e0] sm:$0xff]  }
 0x2f7   :  { %v8560_v38 = vadd.f32 %v10906_v31, %v12551_v29  ;;  %v10930_v33 = vpop.f32.mrb[55].mxu1  ;;  %v12084_v29 = vld [vmem:[#allocation5 + $0x1478] sm:$0xff]   ;;  %11230 = vmatprep.subr.bf16.mxu1 %v12081_v40  ;;  %v12107_v34 = vld [vmem:[#allocation5 + $0x15a0] sm:$0xff]   ;;  %v12111_v40 = vld [vmem:[#allocation5 + $0x15a8] sm:$0xff]  }
 0x2f9   :  { %v12558_v43 = vadd.f32 %v10928_v28, %v8560_v38  ;;  %11209 = vmatpush3.bf16.msra.mxu0 %v12082_v42  ;;  %v12108_v38 = vld [vmem:[#allocation5 + $0x1568] sm:$0xff]   ;;  %v12112_v42 = vld [vmem:[#allocation5 + $0x1570] sm:$0xff]  }
 0x2fa   :  { %11231 = vmatpush3.bf16.msra.mxu1 %v12083_v46  ;;  %11210 = vmatprep.subr.bf16.mxu0 %v12084_v29  ;;  %v12113_v46 = vld [vmem:[#allocation5 + $0x15f0] sm:$0xff]  }
 0x2fb   :  { %11232 = vmatprep.subr.bf16.mxu1 %v12085_v47  ;;  %v12114_v29 = vld [vmem:[#allocation5 + $0x1530] sm:$0xff]  }
 0x2fc   :  { %v12115_v47 = vld [vmem:[#allocation5 + $0x15b0] sm:$0xff]  }
 0x2fd   :  { %11211 = vmatpush3.bf16.msra.mxu0 %v12086_v49  ;;  %v12118_v49 = vld [vmem:[#allocation5 + $0x1538] sm:$0xff]  }
 0x2fe   :  { %11233 = vmatpush3.bf16.msra.mxu1 %v12087_v53  ;;  %11240 = vmatprep.subr.bf16.mxu0 %v12088_v58  ;;  %v179_v53 = vld [vmem:[#allocation2 + $0x2e8] sm:$0xff] }
 0x2ff   :  { %11262 = vmatprep.subr.bf16.mxu1 %v12089_v62  ;;  %v1036_v57 = vcombine.low %v155_v52, %v179_v53  ;;  %v1037_v58 = vcombine.high %v155_v52, %v179_v53  ;;  %v108_v52 = vld [vmem:[#allocation2 + $0xb0] sm:$0xff] }
 0x300   :  { %9118 = vmatmul.mubr.bf16.vlgmr.msra.gmra.mrb[80].mxu0 %v1318_v7  ;;  %v132_v53 = vld [vmem:[#allocation2 + $0x170] sm:$0xff] }
 0x301   :  { %9158 = vmatmul.mubr.bf16.vlgmr.msra.gmra.mrb[80].mxu1 %v1320_v10  ;;  %11241 = vmatpush3.bf16.msra.mxu0 %v12090_v2  ;;  %v1058_v62 = vrot.slane %v1036_v57, %v12437_v37  ;;  %v1065_v63 = vrot.slane %v1037_v58, %v12437_v37  ;;  %v1071_v57 = vcombine.high %v108_v52, %v132_v53 }
 0x302   :  { %11263 = vmatpush3.bf16.msra.mxu1 %v12091_v5  ;;  %11242 = vmatprep.subr.bf16.mxu0 %v12092_v8  ;;  %v12122_v5 = vld [vmem:[#allocation5 + $0x1600] sm:$0xff]   ;;  %v1072_v58 = vcombine.low %v156_v54, %v180_v55 }
 0x303   :  { %11264 = vmatprep.subr.bf16.mxu1 %v12093_v11  ;;  %v1067_v1 = vcombine.high %v1044_v59, %v1058_v62  ;;  %v1069_v2 = vcombine.high %v1051_v60, %v1065_v63  ;;  %v1066_v3 = vcombine.low %v1044_v59, %v1058_v62  ;;  %v1068_v4 = vcombine.low %v1051_v60, %v1065_v63  ;;  %v12124_v11 = vld [vmem:[#allocation5 + $0x1648] sm:$0xff]   ;;  %v12152_v60 = vld [vmem:[#allocation5 + $0x1740] sm:$0xff]  }
 0x304   :  { %v1073_v59 = vcombine.high %v156_v54, %v180_v55  ;;  %v1087_v62 = vrot.slane %v1071_v57, %v12437_v37  ;;  %v12153_v63 = vld [vmem:[#allocation5 + $0x17c0] sm:$0xff]   ;;  %v133_v54 = vld [vmem:[#allocation2 + $0x178] sm:$0xff] }
 0x305   :  { %11243 = vmatpush3.bf16.msra.mxu0 %v12094_v12  ;;  %v1323_v7 = vpack.c.bf16 %v1067_v1, %v1067_v1  ;;  %v1325_v8 = vpack.c.bf16 %v1069_v2, %v1069_v2  ;;  %v1322_v9 = vpack.c.bf16 %v1066_v3, %v1066_v3  ;;  %v1324_v10 = vpack.c.bf16 %v1068_v4, %v1068_v4  ;;  %v12125_v12 = vld [vmem:[#allocation5 + $0x16c8] sm:$0xff]   ;;  %v157_v55 = vld [vmem:[#allocation2 + $0x238] sm:$0xff] }
 0x306   :  { %11265 = vmatpush3.bf16.msra.mxu1 %v12095_v13  ;;  %11244 = vmatprep.subr.bf16.mxu0 %v12096_v14  ;;  %v12126_v13 = vld [vmem:[#allocation5 + $0x1608] sm:$0xff]   ;;  %v1101_v1 = vrot.slane %v1073_v59, %v12437_v37 }
 0x307   :  { %11266 = vmatprep.subr.bf16.mxu1 %v12097_v15  ;;  %9197 = vmatprep.mubr.bf16.mxu0 %v1323_v7  ;;  %v12127_v14 = vld [vmem:[#allocation5 + $0x1688] sm:$0xff]   ;;  %v12128_v15 = vld [vmem:[#allocation5 + $0x1650] sm:$0xff]   ;;  %v12155_v7 = vld [vmem:[#allocation5 + $0x1780] sm:$0xff]  }
 0x308   :  { %9237 = vmatprep.mubr.bf16.mxu1 %v1325_v8  ;;  %v1105_v3 = vcombine.high %v1087_v62, %v1101_v1 }
 0x309   :  { %11245 = vmatpush3.bf16.msra.mxu0 %v12098_v16  ;;  %v12129_v16 = vld [vmem:[#allocation5 + $0x16d0] sm:$0xff]  }
 0x30a   :  { %11267 = vmatpush3.bf16.msra.mxu1 %v12099_v17  ;;  %11246 = vmatprep.subr.bf16.mxu0 %v12100_v18  ;;  %v12130_v17 = vld [vmem:[#allocation5 + $0x1610] sm:$0xff]  }
 0x30b   :  { %11268 = vmatprep.subr.bf16.mxu1 %v12101_v19  ;;  %v12131_v18 = vld [vmem:[#allocation5 + $0x1690] sm:$0xff]   ;;  %v12132_v19 = vld [vmem:[#allocation5 + $0x1658] sm:$0xff]  }
 0x30d   :  { %11247 = vmatpush3.bf16.msra.mxu0 %v12102_v20  ;;  %v12133_v20 = vld [vmem:[#allocation5 + $0x16d8] sm:$0xff]  }
 0x30e   :  { %11269 = vmatpush3.bf16.msra.mxu1 %v12103_v21  ;;  %11248 = vmatprep.subr.bf16.mxu0 %v12104_v22  ;;  %v12134_v21 = vld [vmem:[#allocation5 + $0x1618] sm:$0xff]  }
 0x30f   :  { %11270 = vmatprep.subr.bf16.mxu1 %v12105_v24  ;;  %v12135_v22 = vld [vmem:[#allocation5 + $0x1698] sm:$0xff]   ;;  %v12136_v24 = vld [vmem:[#allocation5 + $0x1660] sm:$0xff]  }
 0x311   :  { %11249 = vmatpush3.bf16.msra.mxu0 %v12106_v26 }
 0x312   :  { %11271 = vmatpush3.bf16.msra.mxu1 %v12107_v34  ;;  %11250 = vmatprep.subr.bf16.mxu0 %v12108_v38  ;;  %v12139_v34 = vld [vmem:[#allocation5 + $0x16a0] sm:$0xff]  }
 0x313   :  { %v10948_v23 = vpop.f32.mrb[56].mxu0  ;;  %11272 = vmatprep.subr.bf16.mxu1 %v12109_v41  ;;  %v12140_v41 = vld [vmem:[#allocation5 + $0x1668] sm:$0xff]  }
 0x314   :  { %v10970_v25 = vpop.f32.mrb[56].mxu1  ;;  %v10949_v30 = vpop.f32.mrb[57].mxu0 }
 0x315   :  { %v10971_v31 = vpop.f32.mrb[57].mxu1  ;;  %v10950_v28 = vadd.f32 %v10949_v30, %v10948_v23  ;;  %v10951_v32 = vpop.f32.mrb[58].mxu0  ;;  %11251 = vmatpush3.bf16.msra.mxu0 %v12110_v39  ;;  %v12141_v39 = vld [vmem:[#allocation5 + $0x16e8] sm:$0xff]  }
 0x316   :  { %v10972_v36 = vadd.f32 %v10971_v31, %v10970_v25  ;;  %v10973_v27 = vpop.f32.mrb[58].mxu1  ;;  %v10952_v33 = vpop.f32.mrb[59].mxu0  ;;  %11273 = vmatpush3.bf16.msra.mxu1 %v12111_v40  ;;  %11252 = vmatprep.subr.bf16.mxu0 %v12112_v42  ;;  %v12137_v25 = vld [vmem:[#allocation5 + $0x16e0] sm:$0xff]   ;;  %v12142_v42 = vld [vmem:[#allocation5 + $0x1628] sm:$0xff]  }
 0x317   :  { %v8640_v35 = vadd.f32 %v10950_v28, %v12558_v43  ;;  %v10974_v44 = vpop.f32.mrb[59].mxu1  ;;  %v12117_v43 = vld [vmem:[#allocation5 + $0x15f8] sm:$0xff]   ;;  %11274 = vmatprep.subr.bf16.mxu1 %v12113_v46  ;;  %v12138_v31 = vld [vmem:[#allocation5 + $0x1620] sm:$0xff]   ;;  %v12143_v46 = vld [vmem:[#allocation5 + $0x16a8] sm:$0xff]  }
 0x319   :  { %v12565_v45 = vadd.f32 %v10972_v36, %v8640_v35  ;;  %11253 = vmatpush3.bf16.msra.mxu0 %v12114_v29  ;;  %v12144_v29 = vld [vmem:[#allocation5 + $0x1670] sm:$0xff]  }
 0x31a   :  { %11275 = vmatpush3.bf16.msra.mxu1 %v12115_v47  ;;  %11254 = vmatprep.subr.bf16.mxu0 %v12116_v48  ;;  %v12145_v47 = vld [vmem:[#allocation5 + $0x16f0] sm:$0xff]  }
 0x31b   :  { %11276 = vmatprep.subr.bf16.mxu1 %v12117_v43  ;;  %v12146_v48 = vld [vmem:[#allocation5 + $0x1630] sm:$0xff]  }
 0x31c   :  { %v12147_v43 = vld [vmem:[#allocation5 + $0x16b0] sm:$0xff]  }
 0x31d   :  { %11255 = vmatpush3.bf16.msra.mxu0 %v12118_v49  ;;  %v12149_v49 = vld [vmem:[#allocation5 + $0x16f8] sm:$0xff]  }
 0x31e   :  { %11277 = vmatpush3.bf16.msra.mxu1 %v12119_v56  ;;  %11284 = vmatprep.subr.bf16.mxu0 %v12120_v61  ;;  %v1070_v56 = vcombine.low %v108_v52, %v132_v53  ;;  %v12182_v52 = vld [vmem:[#allocation5 + $0x1738] sm:$0xff]  }
 0x31f   :  { %11306 = vmatprep.subr.bf16.mxu1 %v12121_v0  ;;  %v1094_v0 = vrot.slane %v1072_v58, %v12437_v37  ;;  %v12183_v53 = vld [vmem:[#allocation5 + $0x17b8] sm:$0xff]  }
 0x320   :  { %9198 = vmatmul.mubr.bf16.vlgmr.msra.gmra.mrb[84].mxu0 %v1322_v9  ;;  %v1080_v61 = vrot.slane %v1070_v56, %v12437_v37  ;;  %v1329_v9 = vpack.c.bf16 %v1105_v3, %v1105_v3  ;;  %v181_v56 = vld [vmem:[#allocation2 + $0x2f8] sm:$0xff] }
 0x321   :  { %9238 = vmatmul.mubr.bf16.vlgmr.msra.gmra.mrb[84].mxu1 %v1324_v10  ;;  %11285 = vmatpush3.bf16.msra.mxu0 %v12122_v5  ;;  %v12154_v5 = vld [vmem:[#allocation5 + $0x1700] sm:$0xff]   ;;  %v1108_v58 = vcombine.low %v157_v55, %v181_v56 }
 0x322   :  { %11307 = vmatpush3.bf16.msra.mxu1 %v12123_v6  ;;  %11286 = vmatprep.subr.bf16.mxu0 %v12124_v11  ;;  %v1103_v2 = vcombine.high %v1080_v61, %v1094_v0  ;;  %v1102_v4 = vcombine.low %v1080_v61, %v1094_v0  ;;  %v1104_v6 = vcombine.low %v1087_v62, %v1101_v1  ;;  %v12156_v11 = vld [vmem:[#allocation5 + $0x1748] sm:$0xff]  }
 0x323   :  { %11308 = vmatprep.subr.bf16.mxu1 %v12125_v12  ;;  %9317 = vmatprep.mubr.bf16.mxu1 %v1329_v9  ;;  %v1130_v62 = vrot.slane %v1108_v58, %v12437_v37 }
 0x324   :  { %v1327_v8 = vpack.c.bf16 %v1103_v2, %v1103_v2  ;;  %v1326_v10 = vpack.c.bf16 %v1102_v4, %v1102_v4  ;;  %v1328_v12 = vpack.c.bf16 %v1104_v6, %v1104_v6 }
 0x325   :  { %11287 = vmatpush3.bf16.msra.mxu0 %v12126_v13  ;;  %v12157_v13 = vld [vmem:[#allocation5 + $0x17c8] sm:$0xff]  }
 0x326   :  { %11309 = vmatpush3.bf16.msra.mxu1 %v12127_v14  ;;  %11288 = vmatprep.subr.bf16.mxu0 %v12128_v15  ;;  %v12158_v14 = vld [vmem:[#allocation5 + $0x1708] sm:$0xff]  }
 0x327   :  { %11310 = vmatprep.subr.bf16.mxu1 %v12129_v16  ;;  %9277 = vmatprep.mubr.bf16.mxu0 %v1327_v8  ;;  %v12159_v15 = vld [vmem:[#allocation5 + $0x1788] sm:$0xff]   ;;  %v12160_v16 = vld [vmem:[#allocation5 + $0x1750] sm:$0xff]  }
 0x329   :  { %11289 = vmatpush3.bf16.msra.mxu0 %v12130_v17  ;;  %v12161_v17 = vld [vmem:[#allocation5 + $0x17d0] sm:$0xff]  }
 0x32a   :  { %11311 = vmatpush3.bf16.msra.mxu1 %v12131_v18  ;;  %11290 = vmatprep.subr.bf16.mxu0 %v12132_v19  ;;  %v12162_v18 = vld [vmem:[#allocation5 + $0x1710] sm:$0xff]  }
 0x32b   :  { %11312 = vmatprep.subr.bf16.mxu1 %v12133_v20  ;;  %v12163_v19 = vld [vmem:[#allocation5 + $0x1790] sm:$0xff]   ;;  %v12164_v20 = vld [vmem:[#allocation5 + $0x1758] sm:$0xff]  }
 0x32d   :  { %11291 = vmatpush3.bf16.msra.mxu0 %v12134_v21  ;;  %v12165_v21 = vld [vmem:[#allocation5 + $0x17d8] sm:$0xff]  }
 0x32e   :  { %11313 = vmatpush3.bf16.msra.mxu1 %v12135_v22  ;;  %11292 = vmatprep.subr.bf16.mxu0 %v12136_v24  ;;  %v12166_v22 = vld [vmem:[#allocation5 + $0x1718] sm:$0xff]  }
 0x32f   :  { %11314 = vmatprep.subr.bf16.mxu1 %v12137_v25  ;;  %v12168_v25 = vld [vmem:[#allocation5 + $0x1760] sm:$0xff]  }
 0x331   :  { %11293 = vmatpush3.bf16.msra.mxu0 %v12138_v31 }
 0x332   :  { %11315 = vmatpush3.bf16.msra.mxu1 %v12139_v34  ;;  %11294 = vmatprep.subr.bf16.mxu0 %v12140_v41  ;;  %v12170_v34 = vld [vmem:[#allocation5 + $0x1720] sm:$0xff]  }
 0x333   :  { %v10992_v23 = vpop.f32.mrb[60].mxu0  ;;  %11316 = vmatprep.subr.bf16.mxu1 %v12141_v39 }
 0x334   :  { %v11014_v26 = vpop.f32.mrb[60].mxu1  ;;  %v10993_v30 = vpop.f32.mrb[61].mxu0 }
 0x335   :  { %v10994_v28 = vadd.f32 %v10993_v30, %v10992_v23  ;;  %v11015_v36 = vpop.f32.mrb[61].mxu1  ;;  %v10995_v38 = vpop.f32.mrb[62].mxu0  ;;  %11295 = vmatpush3.bf16.msra.mxu0 %v12142_v42  ;;  %v12167_v23 = vld [vmem:[#allocation5 + $0x1798] sm:$0xff]  }
 0x336   :  { %v11016_v32 = vadd.f32 %v11015_v36, %v11014_v26  ;;  %v11017_v27 = vpop.f32.mrb[62].mxu1  ;;  %v10996_v33 = vpop.f32.mrb[63].mxu0  ;;  %11317 = vmatpush3.bf16.msra.mxu1 %v12143_v46  ;;  %11296 = vmatprep.subr.bf16.mxu0 %v12144_v29  ;;  %v12169_v26 = vld [vmem:[#allocation5 + $0x17e0] sm:$0xff]   ;;  %v12174_v29 = vld [vmem:[#allocation5 + $0x1728] sm:$0xff]  }
 0x337   :  { %v8720_v35 = vadd.f32 %v10994_v28, %v12565_v45  ;;  %v11018_v44 = vpop.f32.mrb[63].mxu1  ;;  %v12148_v45 = vld [vmem:[#allocation5 + $0x1678] sm:$0xff]   ;;  %11318 = vmatprep.subr.bf16.mxu1 %v12145_v47  ;;  %v12171_v28 = vld [vmem:[#allocation5 + $0x17a0] sm:$0xff]   ;;  %v12172_v33 = vld [vmem:[#allocation5 + $0x1768] sm:$0xff]  }
 0x338   :  { %v12173_v44 = vld [vmem:[#allocation5 + $0x17e8] sm:$0xff]  }
 0x339   :  { %v12572_v40 = vadd.f32 %v11016_v32, %v8720_v35  ;;  %11297 = vmatpush3.bf16.msra.mxu0 %v12146_v48  ;;  %v12175_v47 = vld [vmem:[#allocation5 + $0x17a8] sm:$0xff]   ;;  %v12176_v48 = vld [vmem:[#allocation5 + $0x1770] sm:$0xff]  }
 0x33a   :  { %11319 = vmatpush3.bf16.msra.mxu1 %v12147_v43  ;;  %11298 = vmatprep.subr.bf16.mxu0 %v12148_v45  ;;  %v12177_v43 = vld [vmem:[#allocation5 + $0x17f0] sm:$0xff]  }
 0x33b   :  { %11320 = vmatprep.subr.bf16.mxu1 %v12149_v49  ;;  %v12178_v45 = vld [vmem:[#allocation5 + $0x1730] sm:$0xff]  }
 0x33c   :  { %v12179_v49 = vld [vmem:[#allocation5 + $0x17b0] sm:$0xff]  }
 0x33d   :  { %11299 = vmatpush3.bf16.msra.mxu0 %v12150_v50  ;;  %v12181_v50 = vld [vmem:[#allocation5 + $0x17f8] sm:$0xff]  }
 0x33e   :  { %11321 = vmatpush3.bf16.msra.mxu1 %v12151_v51  ;;  %11328 = vmatprep.subr.bf16.mxu0 %v12152_v60  ;;  %v109_v51 = vld [vmem:[#allocation2 + $0xb8] sm:$0xff]  ;;  %v1109_v60 = vcombine.high %v157_v55, %v181_v56 }
 0x33f   :  { %11350 = vmatprep.subr.bf16.mxu1 %v12153_v63  ;;  %v1106_v57 = vcombine.low %v109_v51, %v133_v54  ;;  %v1107_v59 = vcombine.high %v109_v51, %v133_v54  ;;  %v12189_v51 = vld [vmem:[#allocation8 + $0x28] sm:$0xff]  }
 0x340   :  { %9278 = vmatmul.mubr.bf16.vlgmr.msra.gmra.mrb[88].mxu0 %v1326_v10  ;;  %v1137_v0 = vrot.slane %v1109_v60, %v12437_v37 }
 0x341   :  { %9318 = vmatmul.mubr.bf16.vlgmr.msra.gmra.mrb[88].mxu1 %v1328_v12  ;;  %11329 = vmatpush3.bf16.msra.mxu0 %v12154_v5  ;;  %v1116_v61 = vrot.slane %v1106_v57, %v12437_v37  ;;  %v1123_v63 = vrot.slane %v1107_v59, %v12437_v37 }
 0x342   :  { %11351 = vmatpush3.bf16.msra.mxu1 %v12155_v7  ;;  %11330 = vmatprep.subr.bf16.mxu0 %v12156_v11 }
 0x343   :  { %11352 = vmatprep.subr.bf16.mxu1 %v12157_v13  ;;  %v1139_v1 = vcombine.high %v1116_v61, %v1130_v62  ;;  %v1138_v2 = vcombine.low %v1116_v61, %v1130_v62  ;;  %v1141_v3 = vcombine.high %v1123_v63, %v1137_v0  ;;  %v1140_v4 = vcombine.low %v1123_v63, %v1137_v0 }
 0x345   :  { %11331 = vmatpush3.bf16.msra.mxu0 %v12158_v14  ;;  %v1331_v5 = vpack.c.bf16 %v1139_v1, %v1139_v1  ;;  %v1330_v6 = vpack.c.bf16 %v1138_v2, %v1138_v2  ;;  %v1333_v7 = vpack.c.bf16 %v1141_v3, %v1141_v3  ;;  %v1332_v8 = vpack.c.bf16 %v1140_v4, %v1140_v4 }
 0x346   :  { %11353 = vmatpush3.bf16.msra.mxu1 %v12159_v15  ;;  %11332 = vmatprep.subr.bf16.mxu0 %v12160_v16 }
 0x347   :  { %11354 = vmatprep.subr.bf16.mxu1 %v12161_v17  ;;  %9357 = vmatprep.mubr.bf16.mxu0 %v1331_v5 }
 0x348   :  { %9397 = vmatprep.mubr.bf16.mxu1 %v1333_v7 }
 0x349   :  { %11333 = vmatpush3.bf16.msra.mxu0 %v12162_v18 }
 0x34a   :  { %11355 = vmatpush3.bf16.msra.mxu1 %v12163_v19  ;;  %11334 = vmatprep.subr.bf16.mxu0 %v12164_v20 }
 0x34b   :  { %11356 = vmatprep.subr.bf16.mxu1 %v12165_v21 }
 0x34d   :  { %11335 = vmatpush3.bf16.msra.mxu0 %v12166_v22 }
 0x34e   :  { %11357 = vmatpush3.bf16.msra.mxu1 %v12167_v23  ;;  %11336 = vmatprep.subr.bf16.mxu0 %v12168_v25 }
 0x34f   :  { %11358 = vmatprep.subr.bf16.mxu1 %v12169_v26 }
 0x351   :  { %11337 = vmatpush3.bf16.msra.mxu0 %v12170_v34 }
 0x352   :  { %11359 = vmatpush3.bf16.msra.mxu1 %v12171_v28  ;;  %11338 = vmatprep.subr.bf16.mxu0 %v12172_v33  ;;  %v12188_v33 = vld [vmem:[#allocation8 + $0x20] sm:$0xff]  }
 0x353   :  { %v11036_v24 = vpop.f32.mrb[64].mxu0  ;;  %11360 = vmatprep.subr.bf16.mxu1 %v12173_v44 }
 0x354   :  { %v11058_v30 = vpop.f32.mrb[64].mxu1  ;;  %v11037_v31 = vpop.f32.mrb[65].mxu0 }
 0x355   :  { %v11038_v36 = vadd.f32 %v11037_v31, %v11036_v24  ;;  %v11059_v32 = vpop.f32.mrb[65].mxu1  ;;  %v11039_v27 = vpop.f32.mrb[66].mxu0  ;;  %11339 = vmatpush3.bf16.msra.mxu0 %v12174_v29 }
 0x356   :  { %v11060_v38 = vadd.f32 %v11059_v32, %v11058_v30  ;;  %v11061_v35 = vpop.f32.mrb[66].mxu1  ;;  %v11040_v39 = vpop.f32.mrb[67].mxu0  ;;  %11361 = vmatpush3.bf16.msra.mxu1 %v12175_v47  ;;  %11340 = vmatprep.subr.bf16.mxu0 %v12176_v48  ;;  %v12184_v32 = vld [vmem:[#allocation8] sm:$0xff]   ;;  %v12185_v27 = vld [vmem:[#allocation8 + $0x8] sm:$0xff]  }
 0x357   :  { %v8800_v41 = vadd.f32 %v11038_v36, %v12572_v40  ;;  %v11062_v42 = vpop.f32.mrb[67].mxu1  ;;  %v12180_v40 = vld [vmem:[#allocation5 + $0x1778] sm:$0xff]   ;;  %11362 = vmatprep.subr.bf16.mxu1 %v12177_v43 }
 0x358   :  { %v12186_v35 = vld [vmem:[#allocation8 + $0x10] sm:$0xff]  }
 0x359   :  { %v8840_v46 = vadd.f32 %v11060_v38, %v8800_v41  ;;  %11341 = vmatpush3.bf16.msra.mxu0 %v12178_v45  ;;  %v12342_v38 = vmov 0.0   ;;  %v12187_v41 = vld [vmem:[#allocation8 + $0x18] sm:$0xff]  }
 0x35a   :  { %11363 = vmatpush3.bf16.msra.mxu1 %v12179_v49  ;;  %11342 = vmatprep.subr.bf16.mxu0 %v12180_v40 }
 0x35b   :  { %11364 = vmatprep.subr.bf16.mxu1 %v12181_v50 }
 0x35d   :  { %11343 = vmatpush3.bf16.msra.mxu0 %v12182_v52  ;;  %v12190_v52 = vld [vmem:[#allocation8 + $0x30] sm:$0xff]  }
 0x35e   :  { %11365 = vmatpush3.bf16.msra.mxu1 %v12183_v53  ;;  %11381 = vmatprep.subr.bf16.mxu0 %v12342_v38  ;;  %v12191_v53 = vld [vmem:[#allocation8 + $0x38] sm:$0xff]  }
 0x360   :  { %9358 = vmatmul.mubr.bf16.vlgmr.msra.gmra.mrb[92].mxu0 %v1330_v6 }
 0x361   :  { %9398 = vmatmul.mubr.bf16.vlgmr.msra.gmra.mrb[92].mxu1 %v1332_v8  ;;  %11382 = vmatpush3.bf16.msra.mxu0 %v12184_v32 }
 0x362   :  { %11383 = vmatprep.subr.bf16.mxu0 %v12342_v38  ;;  %11397 = vmatprep.mubr.msk.bf16.mxu0 %vm12343_vm0, %v12342_v38 }
 0x365   :  { %11384 = vmatpush3.bf16.msra.mxu0 %v12185_v27 }
 0x366   :  { %11385 = vmatprep.subr.bf16.mxu0 %v12342_v38 }
 0x369   :  { %11386 = vmatpush3.bf16.msra.mxu0 %v12186_v35 }
 0x36a   :  { %11387 = vmatprep.subr.bf16.mxu0 %v12342_v38 }
 0x36d   :  { %11388 = vmatpush3.bf16.msra.mxu0 %v12187_v41 }
 0x36e   :  { %11389 = vmatprep.subr.bf16.mxu0 %v12342_v38 }
 0x371   :  { %11390 = vmatpush3.bf16.msra.mxu0 %v12188_v33 }
 0x372   :  { %11391 = vmatprep.subr.bf16.mxu0 %v12342_v38 }
 0x373   :  { %v11080_v9 = vpop.f32.mrb[68].mxu0 }
 0x374   :  { %v11102_v10 = vpop.f32.mrb[68].mxu1  ;;  %v11081_v11 = vpop.f32.mrb[69].mxu0 }
 0x375   :  { %v11082_v12 = vadd.f32 %v11081_v11, %v11080_v9  ;;  %v11103_v13 = vpop.f32.mrb[69].mxu1  ;;  %v11083_v37 = vpop.f32.mrb[70].mxu0  ;;  %11392 = vmatpush3.bf16.msra.mxu0 %v12189_v51 }
 0x376   :  { %v11104_v14 = vadd.f32 %v11103_v13, %v11102_v10  ;;  %v11105_v15 = vpop.f32.mrb[70].mxu1  ;;  %v11084_v16 = vpop.f32.mrb[71].mxu0  ;;  %11393 = vmatprep.subr.bf16.mxu0 %v12342_v38 }
 0x377   :  { %v8880_v17 = vadd.f32 %v11082_v12, %v8840_v46  ;;  %v11106_v18 = vpop.f32.mrb[71].mxu1 }
 0x379   :  { %v8920_v19 = vadd.f32 %v11104_v14, %v8880_v17  ;;  %11394 = vmatpush3.bf16.msra.mxu0 %v12190_v52 }
 0x37a   :  { %11395 = vmatprep.subr.bf16.mxu0 %v12342_v38 }
 0x37d   :  { %11396 = vmatpush3.bf16.msra.mxu0 %v12191_v53 }
 0x393   :  { %v11124_v20 = vpop.f32.mrb[72].mxu0 }
 0x394   :  { %v11146_v21 = vpop.f32.mrb[72].mxu1  ;;  %v11125_v22 = vpop.f32.mrb[73].mxu0 }
 0x395   :  { %v11147_v23 = vpop.f32.mrb[73].mxu1  ;;  %v11126_v24 = vadd.f32 %v11125_v22, %v11124_v20  ;;  %v11127_v26 = vpop.f32.mrb[74].mxu0 }
 0x396   :  { %v11148_v25 = vadd.f32 %v11147_v23, %v11146_v21  ;;  %v11149_v30 = vpop.f32.mrb[74].mxu1  ;;  %v11128_v31 = vpop.f32.mrb[75].mxu0 }
 0x397   :  { %v11150_v34 = vpop.f32.mrb[75].mxu1  ;;  %v8960_v28 = vadd.f32 %v11126_v24, %v8920_v19 }
 0x399   :  { %v9000_v36 = vadd.f32 %v11148_v25, %v8960_v28 }
 0x3b3   :  { %v11168_v39 = vpop.f32.mrb[76].mxu0 }
 0x3b4   :  { %v11190_v44 = vpop.f32.mrb[76].mxu1  ;;  %v11169_v42 = vpop.f32.mrb[77].mxu0 }
 0x3b5   :  { %v11191_v46 = vpop.f32.mrb[77].mxu1  ;;  %v11170_v29 = vadd.f32 %v11169_v42, %v11168_v39  ;;  %v11171_v48 = vpop.f32.mrb[78].mxu0 }
 0x3b6   :  { %v11192_v47 = vadd.f32 %v11191_v46, %v11190_v44  ;;  %v11193_v43 = vpop.f32.mrb[78].mxu1  ;;  %v11172_v45 = vpop.f32.mrb[79].mxu0  ;;  %v10307_v44 = vld [vmem:[#allocation10] ss:$0 sm:$0xff] }
 0x3b7   :  { %v11194_v49 = vpop.f32.mrb[79].mxu1  ;;  %v9040_v40 = vadd.f32 %v11170_v29, %v9000_v36 }
 0x3b9   :  { %v9080_v50 = vadd.f32 %v11192_v47, %v9040_v40 }
 0x3d3   :  { %v11212_v54 = vpop.f32.mrb[80].mxu0 }
 0x3d4   :  { %v11234_v55 = vpop.f32.mrb[80].mxu1  ;;  %v11213_v56 = vpop.f32.mrb[81].mxu0 }
 0x3d5   :  { %v11214_v57 = vadd.f32 %v11213_v56, %v11212_v54  ;;  %v11235_v58 = vpop.f32.mrb[81].mxu1  ;;  %v11215_v59 = vpop.f32.mrb[82].mxu0 }
 0x3d6   :  { %v11236_v60 = vadd.f32 %v11235_v58, %v11234_v55  ;;  %v11237_v61 = vpop.f32.mrb[82].mxu1  ;;  %v11216_v62 = vpop.f32.mrb[83].mxu0 }
 0x3d7   :  { %v9120_v63 = vadd.f32 %v11214_v57, %v9080_v50  ;;  %v11238_v0 = vpop.f32.mrb[83].mxu1 }
 0x3d9   :  { %v9160_v1 = vadd.f32 %v11236_v60, %v9120_v63 }
 0x3f3   :  { %v11256_v2 = vpop.f32.mrb[84].mxu0 }
 0x3f4   :  { %v11278_v3 = vpop.f32.mrb[84].mxu1  ;;  %v11257_v4 = vpop.f32.mrb[85].mxu0 }
 0x3f5   :  { %v11279_v5 = vpop.f32.mrb[85].mxu1  ;;  %v11258_v6 = vadd.f32 %v11257_v4, %v11256_v2  ;;  %v11259_v8 = vpop.f32.mrb[86].mxu0 }
 0x3f6   :  { %v11280_v7 = vadd.f32 %v11279_v5, %v11278_v3  ;;  %v11281_v9 = vpop.f32.mrb[86].mxu1  ;;  %v11260_v10 = vpop.f32.mrb[87].mxu0 }
 0x3f7   :  { %v11282_v11 = vpop.f32.mrb[87].mxu1  ;;  %v9200_v12 = vadd.f32 %v11258_v6, %v9160_v1 }
 0x3f9   :  { %v9240_v13 = vadd.f32 %v11280_v7, %v9200_v12 }
 0x413   :  { %v11300_v37 = vpop.f32.mrb[88].mxu0 }
 0x414   :  { %v11322_v14 = vpop.f32.mrb[88].mxu1  ;;  %v11301_v15 = vpop.f32.mrb[89].mxu0 }
 0x415   :  { %v11323_v16 = vpop.f32.mrb[89].mxu1  ;;  %v11302_v17 = vadd.f32 %v11301_v15, %v11300_v37  ;;  %v11303_v19 = vpop.f32.mrb[90].mxu0 }
 0x416   :  { %v11324_v18 = vadd.f32 %v11323_v16, %v11322_v14  ;;  %v11325_v20 = vpop.f32.mrb[90].mxu1  ;;  %v11304_v21 = vpop.f32.mrb[91].mxu0 }
 0x417   :  { %v11326_v22 = vpop.f32.mrb[91].mxu1  ;;  %v9280_v23 = vadd.f32 %v11302_v17, %v9240_v13 }
 0x419   :  { %v9320_v24 = vadd.f32 %v11324_v18, %v9280_v23 }
 0x433   :  { %v11344_v25 = vpop.f32.mrb[92].mxu0 }
 0x434   :  { %v11366_v26 = vpop.f32.mrb[92].mxu1  ;;  %v11345_v30 = vpop.f32.mrb[93].mxu0 }
 0x435   :  { %v11346_v31 = vadd.f32 %v11345_v30, %v11344_v25  ;;  %v11367_v34 = vpop.f32.mrb[93].mxu1  ;;  %v11347_v28 = vpop.f32.mrb[94].mxu0 }
 0x436   :  { %v11368_v36 = vadd.f32 %v11367_v34, %v11366_v26  ;;  %v11369_v32 = vpop.f32.mrb[94].mxu1  ;;  %v11348_v38 = vpop.f32.mrb[95].mxu0 }
 0x437   :  { %v9360_v27 = vadd.f32 %v11346_v31, %v9320_v24  ;;  %v11370_v35 = vpop.f32.mrb[95].mxu1 }
 0x439   :  { %v9400_v41 = vadd.f32 %v11368_v36, %v9360_v27 }
 0x43b   :  { %v9405_v33 = vmax.f32 %v9400_v41, 0.0 }
 0x43d   :  { %v9406_v39 = vpack.c.bf16 %v9405_v33, %v9405_v33 }
 0x43f   :  { %11398 = vmatmul.mubr.bf16.vlgmr.msra.gmra.mrb[96].mxu0 %v9406_v39 }
 0x512   :  { %v9512_v42 = vpop.f32.mrb[96].mxu0 }
 0x513   :  { %v9513_v46 = vadd.f32 %v10307_v44, %v9512_v42  ;;  %v11399_v29 = vpop.f32.mrb[97].mxu0 }
 0x514   :  { %v9515_v47 = vpop.f32.mrb[98].mxu0 }
 0x515   :  { %9518 = vst [vmem:[#allocation11] sm:$0xff] %v9513_v46  ;;  %v11400_v48 = vpop.f32.mrb[99].mxu0 }
 0x516   :  { %9523 = vsyncadd [#allocation4], 96  ;;  %s12344_s4 = smov [#allocation11]  }
 0x517   :  { %s9524_s28 = sshll.u32 %s12344_s4, 4  ;;  %s9525_s28 = int_to_ptr.vmem [resolvable:$true] %s9524_s28 }
 0x518   :  { %s12302_s29 = scalar_lea.vmem %s9525_s28, 32  ;;  %s12306_s6 = scalar_lea.vmem %s9525_s28, 128 }
 0x519   :  { %p12303_p12 = scmp.ne.s32.totalorder %s9525_s28, %s12302_s29  ;;  %p12307_p13 = scmp.lt.s32.totalorder %s9525_s28, %s9525_s28 }
 0x51a   :  { %p12308_p0 = scmp.lt.s32.totalorder %s12306_s6, %s12302_s29 }
 0x51c   :  { %p12309_p1 = por %p12308_p0, %p12307_p13 }
 0x51e   :  { %p12310_p2 = pnand %p12309_p1, %p12303_p12 }
 0x520   :  { %12313 = shalt.err (!%p12310_p2)
}
 0x521   :  { %s12314_s9 = scalar_lea.hbm %s12600_s5, 32 }
 0x522   :  { %p12315_p3 = scmp.ne.s32.totalorder %s12600_s5, %s12314_s9  ;;  %p12318_p4 = scmp.lt.u32.totalorder %s12314_s9, %s12600_s5 }
 0x524   :  { %p12320_p5 = pnand %p12318_p4, %p12315_p3 }
 0x526   :  { %12323 = shalt.err (!%p12320_p5)
}
 0x527   :  { %s12345_s15 = smov 32   ;;  %s12346_s16 = smov 2  }
 0x528   :  { %9530 = dma.vmem_to_hbm [thread:$0]  %s9525_s28, 32, %s12600_s5, [#allocation4], %s12345_s15, %s12345_s15, %s12346_s16  }
 0x529   :  { %12330 = dma.done.wait [#allocation4], 128  }
 0x52a   :  { %12331 = vsyncadd [#allocation4], 4294967168 }
 0x52b   :  { %9534 = vsyncpa [#allocation3], 1 }
 0x52c   :  { %9535 = vsyncpa [#allocation6], 1 }
 0x52d   :  { %9536 = vsyncpa [#allocation9], 1 }
 0x52e   :  { %9537 = vsyncpa [#allocation4], 1 }

</bundles_post_ra>
